<compile_context>
chip_gen: v5e
topology: v5e:2x2
jax: 0.10.0
libtpu: 0.0.40
codegen_flags: <defaults>
</compile_context>

<pallas_src>
import functools
import math

import jax
import jax.numpy as jnp
from jax.experimental import pallas as pl
from jax.experimental.pallas import tpu as pltpu


def _ghost_bottleneck_kernel(x_ref, masks_ref, pref, out_ref, *,
                             H, W, inp, hidden, oup, init1, init2, cmid,
                             use_se, off):
  HW = H * W

  # Boundary masks (host-precomputed); center tap (t == 4) needs no mask.
  m = [masks_ref[t] if t != 4 else None for t in range(9)]      # (1, HW) each

  def dw3x3(y, koff, c):
    """Zero-padded stride-1 3x3 depthwise cross-correlation on one channel."""
    acc = y * pref[koff + c * 9 + 4]                   # center tap: no roll/mask
    for dh in (-1, 0, 1):
      for dwi in (-1, 0, 1):
        if dh == 0 and dwi == 0:
          continue
        t = (dh + 1) * 3 + (dwi + 1)
        sh = dh * W + dwi
        rolled = pltpu.roll(y, shift=(-sh) % HW, axis=1)
        acc = acc + (rolled * m[t]) * pref[koff + c * 9 + t]
    return acc

  # Input / residual channels, each (bt, HW).
  xs = [x_ref[:, c, :] for c in range(inp)]

  # ---------------- GhostModule 1 (inp -> hidden, relu=True) ----------------
  y1 = []
  for o in range(init1):
    v = xs[0] * pref[off["w1p"] + o * inp]
    for i in range(1, inp):
      v = v + xs[i] * pref[off["w1p"] + o * inp + i]
    v = v * pref[off["s1p"] + o] + pref[off["b1p"] + o]
    y1.append(jnp.maximum(v, 0.0))

  take1 = hidden - init1
  y2 = []
  for c in range(take1):
    v = dw3x3(y1[c], off["k1"], c)
    v = v * pref[off["s1c"] + c] + pref[off["b1c"] + c]
    y2.append(jnp.maximum(v, 0.0))
  h = y1 + y2                                           # `hidden` channels

  # ---------------- SELayer (clamp-to-[0,1] gating) ----------------
  if use_se:
    inv_hw = 1.0 / HW
    s = [jnp.sum(hc, axis=1, keepdims=True) * inv_hw for hc in h]   # (bt, 1)
    z1 = []
    for mi in range(cmid):
      v = s[0] * pref[off["wfc1"] + mi * hidden]
      for c in range(1, hidden):
        v = v + s[c] * pref[off["wfc1"] + mi * hidden + c]
      z1.append(jnp.maximum(v + pref[off["bfc1"] + mi], 0.0))
    for c in range(hidden):
      v = z1[0] * pref[off["wfc2"] + c * cmid]
      for mi in range(1, cmid):
        v = v + z1[mi] * pref[off["wfc2"] + c * cmid + mi]
      gate = jnp.clip(v + pref[off["bfc2"] + c], 0.0, 1.0)
      h[c] = h[c] * gate

  # ---------------- GhostModule 2 (hidden -> oup, relu=False) ----------------
  p2 = []
  for o in range(init2):
    v = h[0] * pref[off["w2p"] + o * hidden]
    for c in range(1, hidden):
      v = v + h[c] * pref[off["w2p"] + o * hidden + c]
    p2.append(v * pref[off["s2p"] + o] + pref[off["b2p"] + o])

  take2 = oup - init2
  c2 = []
  for c in range(take2):
    v = dw3x3(p2[c], off["k2"], c)
    c2.append(v * pref[off["s2c"] + c] + pref[off["b2c"] + c])

  outc = p2 + c2                                        # `oup` channels

  # ---------------- residual add (identity shortcut) + store ----------------
  for c in range(oup):
    out_ref[:, c, :] = (outc[c] + xs[c]).astype(out_ref.dtype)


def _pick_bt(B, cap=8):
  """Batch elements per grid step: prefer >= 2 grid steps (v7x dual-TC) while
  packing up to `cap` batch rows into the sublane dim for vreg density."""
  cands = [d for d in range(1, min(B, cap) + 1) if B % d == 0]
  par = [d for d in cands if B // d >= 2]
  return max(par) if par else max(cands)


def _boundary_masks(H, W):
  """Zero-padding masks for the 9 taps of a 3x3 conv, shape (9, 1, H*W)."""
  HW = H * W
  pos = jnp.arange(HW, dtype=jnp.int32)
  hi = pos // W
  wi = pos % W
  ones = jnp.ones((HW,), jnp.float32)
  mh = {-1: (hi >= 1).astype(jnp.float32), 0: ones,
        1: (hi <= H - 2).astype(jnp.float32)}
  mw = {-1: (wi >= 1).astype(jnp.float32), 0: ones,
        1: (wi <= W - 2).astype(jnp.float32)}
  masks = jnp.stack([mh[dh] * mw[dw] for dh in (-1, 0, 1) for dw in (-1, 0, 1)])
  return masks.reshape(9, 1, HW)


_PARAM_ORDER = ("w1p", "s1p", "b1p", "k1", "s1c", "b1c",
                "wfc1", "bfc1", "wfc2", "bfc2",
                "w2p", "s2p", "b2p", "k2", "s2c", "b2c")


def _pack_params(params):
  """Flatten all (tiny) parameters into one f32 SMEM table + static offsets."""
  offsets, flats, off = {}, [], 0
  for name in _PARAM_ORDER:
    a = jnp.asarray(params[name], jnp.float32).reshape(-1)
    offsets[name] = off
    off += a.shape[0]
    flats.append(a)
  return jnp.concatenate(flats), offsets


def ghost_bottleneck_forward(x_nchw, params, *, hidden, oup, use_se=True):
  B, inp, H, W = x_nchw.shape
  assert inp == oup, "identity-shortcut configuration requires inp == oup"
  HW = H * W
  init1 = math.ceil(hidden / 2)
  init2 = math.ceil(oup / 2)
  cmid = hidden // 4
  bt = _pick_bt(B)
  G = B // bt

  x = x_nchw.reshape(B, inp, HW).astype(jnp.float32)   # pure reshape, no transpose
  masks = _boundary_masks(H, W)
  pflat, off = _pack_params(params)

  kernel = functools.partial(
      _ghost_bottleneck_kernel,
      H=H, W=W, inp=inp, hidden=hidden, oup=oup,
      init1=init1, init2=init2, cmid=cmid, use_se=use_se, off=off)

  out = pl.pallas_call(
      kernel,
      out_shape=jax.ShapeDtypeStruct((B, oup, HW), jnp.float32),
      grid_spec=pltpu.PrefetchScalarGridSpec(
          num_scalar_prefetch=0,
          grid=(G,),
          in_specs=[
              pl.BlockSpec((bt, inp, HW), lambda g: (g, 0, 0)),
              pl.BlockSpec((9, 1, HW), lambda g: (0, 0, 0)),
              pl.BlockSpec(memory_space=pltpu.MemorySpace.SMEM),
          ],
          out_specs=pl.BlockSpec((bt, oup, HW), lambda g: (g, 0, 0)),
      ),
      compiler_params=pltpu.CompilerParams(
          dimension_semantics=("parallel",)),
  )(x, masks, pflat)

  return out.reshape(B, oup, H, W)


def _folded_bn(key, c):
  """Deterministic eval-mode BatchNorm, folded to per-channel (scale, bias)."""
  k1, k2, k3, k4 = jax.random.split(key, 4)
  gamma = 1.0 + 0.1 * jax.random.normal(k1, (c,), jnp.float32)
  beta = 0.1 * jax.random.normal(k2, (c,), jnp.float32)
  mean = 0.1 * jax.random.normal(k3, (c,), jnp.float32)
  var = jnp.abs(jax.random.normal(k4, (c,), jnp.float32)) + 0.5
  scale = gamma * jax.lax.rsqrt(var + 1e-5)
  bias = beta - mean * scale
  return scale, bias


def init_params(key, inp, hidden, oup):
  init1 = math.ceil(hidden / 2)      # GhostModule1: ratio=2 -> new1 == init1
  init2 = math.ceil(oup / 2)
  cmid = hidden // 4                 # SELayer reduction=4
  ks = jax.random.split(key, 12)
  p = {}
  # GhostModule 1 (inp -> hidden), kernel_size=1, dw_size=3, relu=True
  p["w1p"] = 0.3 * jax.random.normal(ks[0], (init1, inp), jnp.float32)
  p["s1p"], p["b1p"] = _folded_bn(ks[1], init1)
  p["k1"] = 0.3 * jax.random.normal(ks[2], (init1, 3, 3), jnp.float32)
  p["s1c"], p["b1c"] = _folded_bn(ks[3], init1)
  # SELayer(hidden, reduction=4)
  p["wfc1"] = 0.3 * jax.random.normal(ks[4], (cmid, hidden), jnp.float32)
  p["bfc1"] = 0.1 * jax.random.normal(ks[5], (cmid,), jnp.float32)
  p["wfc2"] = 0.3 * jax.random.normal(ks[6], (hidden, cmid), jnp.float32)
  p["bfc2"] = 0.1 * jax.random.normal(ks[7], (hidden,), jnp.float32)
  # GhostModule 2 (hidden -> oup), kernel_size=1, dw_size=3, relu=False
  p["w2p"] = 0.3 * jax.random.normal(ks[8], (init2, hidden), jnp.float32)
  p["s2p"], p["b2p"] = _folded_bn(ks[9], init2)
  p["k2"] = 0.3 * jax.random.normal(ks[10], (init2, 3, 3), jnp.float32)
  p["s2c"], p["b2c"] = _folded_bn(ks[11], init2)
  return p


def _reference_forward(x, p, *, hidden, oup, use_se=True):
  """Pure-JAX (non-Pallas) forward for correctness checking."""
  B, inp, H, W = x.shape

  def bn(y, s, b):
    return y * s.reshape(1, -1, 1, 1) + b.reshape(1, -1, 1, 1)

  def dw3(y, k):                     # k: (C, 3, 3), cross-correlation, pad 1
    yp = jnp.pad(y, ((0, 0), (0, 0), (1, 1), (1, 1)))
    out = jnp.zeros_like(y)
    for i in range(3):
      for j in range(3):
        out = out + yp[:, :, i:i + H, j:j + W] * k[:, i, j].reshape(1, -1, 1, 1)
    return out

  def ghost(y, w, sp, bp, k, sc, bc, outc, relu):
    y1 = bn(jnp.einsum("oc,bchw->bohw", w, y), sp, bp)
    if relu:
      y1 = jnp.maximum(y1, 0.0)
    y2 = bn(dw3(y1, k), sc, bc)
    if relu:
      y2 = jnp.maximum(y2, 0.0)
    return jnp.concatenate([y1, y2], axis=1)[:, :outc]

  h = ghost(x, p["w1p"], p["s1p"], p["b1p"], p["k1"], p["s1c"], p["b1c"], hidden, True)
  if use_se:
    s = jnp.mean(h, axis=(2, 3))                                   # (B, hidden)
    z = jnp.maximum(s @ p["wfc1"].T + p["bfc1"], 0.0)
    z = z @ p["wfc2"].T + p["bfc2"]
    z = jnp.clip(z, 0.0, 1.0)
    h = h * z[:, :, None, None]
  h = ghost(h, p["w2p"], p["s2p"], p["b2p"], p["k2"], p["s2c"], p["b2c"], oup, False)
  return h + x


if __name__ == "__main__":
  B, inp, hidden, oup, H, W = 2, 4, 8, 4, 16, 16   # stride=1, use_se=True, inp==oup
  key = jax.random.PRNGKey(0)
  kx, kp = jax.random.split(key)
  x = jax.random.normal(kx, (B, inp, H, W), jnp.float32)
  params = init_params(kp, inp, hidden, oup)

  out = ghost_bottleneck_forward(x, params, hidden=hidden, oup=oup, use_se=True)
  out = jax.block_until_ready(out)
  assert out.shape == (B, oup, H, W) and out.dtype == jnp.float32

  ref = _reference_forward(x, params, hidden=hidden, oup=oup, use_se=True)
  max_err = float(jnp.max(jnp.abs(out - ref)))
  assert max_err < 1e-4, f"kernel mismatch vs reference: max_abs_err={max_err}"
  print("KERNEL_OK")
</pallas_src>

<mosaic_0001>
module attributes {stable_mosaic.version = 11 : i64} {
  func.func @_ghost_bottleneck_kernel(%arg0: i32, %arg1: memref<1x4x256xf32, #tpu.memory_space<vmem>>, %arg2: memref<9x1x256xf32, #tpu.memory_space<vmem>>, %arg3: memref<152xf32, #tpu.memory_space<smem>>, %arg4: memref<1x4x256xf32, #tpu.memory_space<vmem>>) attributes {dimension_semantics = [#tpu.dimension_semantics<parallel>], iteration_bounds = array<i64: 2>, scalar_prefetch = 0 : i64, scratch_operands = 0 : i64, tpu.core_type = #tpu.core_type<tc>, window_params = [{transform_indices = @transform_0, window_bounds = array<i64: 1, 4, 256>}, {pipeline_mode = #tpu.pipeline_mode<synchronous>, transform_indices = @transform_1, window_bounds = array<i64: 9, 1, 256>}, {transform_indices = @transform_2, window_bounds = array<i64: 152>}, {transform_indices = @transform_3, window_bounds = array<i64: 1, 4, 256>}]} {
    %c0 = arith.constant 0 : index
    %c0_0 = arith.constant 0 : index
    %c0_1 = arith.constant 0 : index
    %0 = vector.load %arg2[%c0, %c0_0, %c0_1] : memref<9x1x256xf32, #tpu.memory_space<vmem>>, vector<1x1x256xf32>
    %1 = vector.shape_cast %0 : vector<1x1x256xf32> to vector<1x256xf32>
    %c1 = arith.constant 1 : index
    %c0_2 = arith.constant 0 : index
    %c0_3 = arith.constant 0 : index
    %2 = vector.load %arg2[%c1, %c0_2, %c0_3] : memref<9x1x256xf32, #tpu.memory_space<vmem>>, vector<1x1x256xf32>
    %3 = vector.shape_cast %2 : vector<1x1x256xf32> to vector<1x256xf32>
    %c2 = arith.constant 2 : index
    %c0_4 = arith.constant 0 : index
    %c0_5 = arith.constant 0 : index
    %4 = vector.load %arg2[%c2, %c0_4, %c0_5] : memref<9x1x256xf32, #tpu.memory_space<vmem>>, vector<1x1x256xf32>
    %5 = vector.shape_cast %4 : vector<1x1x256xf32> to vector<1x256xf32>
    %c3 = arith.constant 3 : index
    %c0_6 = arith.constant 0 : index
    %c0_7 = arith.constant 0 : index
    %6 = vector.load %arg2[%c3, %c0_6, %c0_7] : memref<9x1x256xf32, #tpu.memory_space<vmem>>, vector<1x1x256xf32>
    %7 = vector.shape_cast %6 : vector<1x1x256xf32> to vector<1x256xf32>
    %c5 = arith.constant 5 : index
    %c0_8 = arith.constant 0 : index
    %c0_9 = arith.constant 0 : index
    %8 = vector.load %arg2[%c5, %c0_8, %c0_9] : memref<9x1x256xf32, #tpu.memory_space<vmem>>, vector<1x1x256xf32>
    %9 = vector.shape_cast %8 : vector<1x1x256xf32> to vector<1x256xf32>
    %c6 = arith.constant 6 : index
    %c0_10 = arith.constant 0 : index
    %c0_11 = arith.constant 0 : index
    %10 = vector.load %arg2[%c6, %c0_10, %c0_11] : memref<9x1x256xf32, #tpu.memory_space<vmem>>, vector<1x1x256xf32>
    %11 = vector.shape_cast %10 : vector<1x1x256xf32> to vector<1x256xf32>
    %c7 = arith.constant 7 : index
    %c0_12 = arith.constant 0 : index
    %c0_13 = arith.constant 0 : index
    %12 = vector.load %arg2[%c7, %c0_12, %c0_13] : memref<9x1x256xf32, #tpu.memory_space<vmem>>, vector<1x1x256xf32>
    %13 = vector.shape_cast %12 : vector<1x1x256xf32> to vector<1x256xf32>
    %c8 = arith.constant 8 : index
    %c0_14 = arith.constant 0 : index
    %c0_15 = arith.constant 0 : index
    %14 = vector.load %arg2[%c8, %c0_14, %c0_15] : memref<9x1x256xf32, #tpu.memory_space<vmem>>, vector<1x1x256xf32>
    %15 = vector.shape_cast %14 : vector<1x1x256xf32> to vector<1x256xf32>
    %c0_16 = arith.constant 0 : index
    %c0_17 = arith.constant 0 : index
    %c0_18 = arith.constant 0 : index
    %16 = vector.load %arg1[%c0_16, %c0_17, %c0_18] : memref<1x4x256xf32, #tpu.memory_space<vmem>>, vector<1x1x256xf32>
    %17 = vector.shape_cast %16 : vector<1x1x256xf32> to vector<1x256xf32>
    %c0_19 = arith.constant 0 : index
    %c1_20 = arith.constant 1 : index
    %c0_21 = arith.constant 0 : index
    %18 = vector.load %arg1[%c0_19, %c1_20, %c0_21] : memref<1x4x256xf32, #tpu.memory_space<vmem>>, vector<1x1x256xf32>
    %19 = vector.shape_cast %18 : vector<1x1x256xf32> to vector<1x256xf32>
    %c0_22 = arith.constant 0 : index
    %c2_23 = arith.constant 2 : index
    %c0_24 = arith.constant 0 : index
    %20 = vector.load %arg1[%c0_22, %c2_23, %c0_24] : memref<1x4x256xf32, #tpu.memory_space<vmem>>, vector<1x1x256xf32>
    %21 = vector.shape_cast %20 : vector<1x1x256xf32> to vector<1x256xf32>
    %c0_25 = arith.constant 0 : index
    %c3_26 = arith.constant 3 : index
    %c0_27 = arith.constant 0 : index
    %22 = vector.load %arg1[%c0_25, %c3_26, %c0_27] : memref<1x4x256xf32, #tpu.memory_space<vmem>>, vector<1x1x256xf32>
    %23 = vector.shape_cast %22 : vector<1x1x256xf32> to vector<1x256xf32>
    %c0_28 = arith.constant 0 : index
    %24 = memref.load %arg3[%c0_28] : memref<152xf32, #tpu.memory_space<smem>>
    %25 = vector.broadcast %24 : f32 to vector<1x256xf32>
    %26 = arith.mulf %17, %25 : vector<1x256xf32>
    %c1_29 = arith.constant 1 : index
    %27 = memref.load %arg3[%c1_29] : memref<152xf32, #tpu.memory_space<smem>>
    %28 = vector.broadcast %27 : f32 to vector<1x256xf32>
    %29 = arith.mulf %19, %28 : vector<1x256xf32>
    %30 = arith.addf %26, %29 : vector<1x256xf32>
    %c2_30 = arith.constant 2 : index
    %31 = memref.load %arg3[%c2_30] : memref<152xf32, #tpu.memory_space<smem>>
    %32 = vector.broadcast %31 : f32 to vector<1x256xf32>
    %33 = arith.mulf %21, %32 : vector<1x256xf32>
    %34 = arith.addf %30, %33 : vector<1x256xf32>
    %c3_31 = arith.constant 3 : index
    %35 = memref.load %arg3[%c3_31] : memref<152xf32, #tpu.memory_space<smem>>
    %36 = vector.broadcast %35 : f32 to vector<1x256xf32>
    %37 = arith.mulf %23, %36 : vector<1x256xf32>
    %38 = arith.addf %34, %37 : vector<1x256xf32>
    %c16 = arith.constant 16 : index
    %39 = memref.load %arg3[%c16] : memref<152xf32, #tpu.memory_space<smem>>
    %40 = vector.broadcast %39 : f32 to vector<1x256xf32>
    %41 = arith.mulf %38, %40 : vector<1x256xf32>
    %c20 = arith.constant 20 : index
    %42 = memref.load %arg3[%c20] : memref<152xf32, #tpu.memory_space<smem>>
    %43 = vector.broadcast %42 : f32 to vector<1x256xf32>
    %44 = arith.addf %41, %43 : vector<1x256xf32>
    %cst = arith.constant 0.000000e+00 : f32
    %45 = vector.broadcast %cst : f32 to vector<1x256xf32>
    %46 = arith.maximumf %44, %45 : vector<1x256xf32>
    %c4 = arith.constant 4 : index
    %47 = memref.load %arg3[%c4] : memref<152xf32, #tpu.memory_space<smem>>
    %48 = vector.broadcast %47 : f32 to vector<1x256xf32>
    %49 = arith.mulf %17, %48 : vector<1x256xf32>
    %c5_32 = arith.constant 5 : index
    %50 = memref.load %arg3[%c5_32] : memref<152xf32, #tpu.memory_space<smem>>
    %51 = vector.broadcast %50 : f32 to vector<1x256xf32>
    %52 = arith.mulf %19, %51 : vector<1x256xf32>
    %53 = arith.addf %49, %52 : vector<1x256xf32>
    %c6_33 = arith.constant 6 : index
    %54 = memref.load %arg3[%c6_33] : memref<152xf32, #tpu.memory_space<smem>>
    %55 = vector.broadcast %54 : f32 to vector<1x256xf32>
    %56 = arith.mulf %21, %55 : vector<1x256xf32>
    %57 = arith.addf %53, %56 : vector<1x256xf32>
    %c7_34 = arith.constant 7 : index
    %58 = memref.load %arg3[%c7_34] : memref<152xf32, #tpu.memory_space<smem>>
    %59 = vector.broadcast %58 : f32 to vector<1x256xf32>
    %60 = arith.mulf %23, %59 : vector<1x256xf32>
    %61 = arith.addf %57, %60 : vector<1x256xf32>
    %c17 = arith.constant 17 : index
    %62 = memref.load %arg3[%c17] : memref<152xf32, #tpu.memory_space<smem>>
    %63 = vector.broadcast %62 : f32 to vector<1x256xf32>
    %64 = arith.mulf %61, %63 : vector<1x256xf32>
    %c21 = arith.constant 21 : index
    %65 = memref.load %arg3[%c21] : memref<152xf32, #tpu.memory_space<smem>>
    %66 = vector.broadcast %65 : f32 to vector<1x256xf32>
    %67 = arith.addf %64, %66 : vector<1x256xf32>
    %cst_35 = arith.constant 0.000000e+00 : f32
    %68 = vector.broadcast %cst_35 : f32 to vector<1x256xf32>
    %69 = arith.maximumf %67, %68 : vector<1x256xf32>
    %c8_36 = arith.constant 8 : index
    %70 = memref.load %arg3[%c8_36] : memref<152xf32, #tpu.memory_space<smem>>
    %71 = vector.broadcast %70 : f32 to vector<1x256xf32>
    %72 = arith.mulf %17, %71 : vector<1x256xf32>
    %c9 = arith.constant 9 : index
    %73 = memref.load %arg3[%c9] : memref<152xf32, #tpu.memory_space<smem>>
    %74 = vector.broadcast %73 : f32 to vector<1x256xf32>
    %75 = arith.mulf %19, %74 : vector<1x256xf32>
    %76 = arith.addf %72, %75 : vector<1x256xf32>
    %c10 = arith.constant 10 : index
    %77 = memref.load %arg3[%c10] : memref<152xf32, #tpu.memory_space<smem>>
    %78 = vector.broadcast %77 : f32 to vector<1x256xf32>
    %79 = arith.mulf %21, %78 : vector<1x256xf32>
    %80 = arith.addf %76, %79 : vector<1x256xf32>
    %c11 = arith.constant 11 : index
    %81 = memref.load %arg3[%c11] : memref<152xf32, #tpu.memory_space<smem>>
    %82 = vector.broadcast %81 : f32 to vector<1x256xf32>
    %83 = arith.mulf %23, %82 : vector<1x256xf32>
    %84 = arith.addf %80, %83 : vector<1x256xf32>
    %c18 = arith.constant 18 : index
    %85 = memref.load %arg3[%c18] : memref<152xf32, #tpu.memory_space<smem>>
    %86 = vector.broadcast %85 : f32 to vector<1x256xf32>
    %87 = arith.mulf %84, %86 : vector<1x256xf32>
    %c22 = arith.constant 22 : index
    %88 = memref.load %arg3[%c22] : memref<152xf32, #tpu.memory_space<smem>>
    %89 = vector.broadcast %88 : f32 to vector<1x256xf32>
    %90 = arith.addf %87, %89 : vector<1x256xf32>
    %cst_37 = arith.constant 0.000000e+00 : f32
    %91 = vector.broadcast %cst_37 : f32 to vector<1x256xf32>
    %92 = arith.maximumf %90, %91 : vector<1x256xf32>
    %c12 = arith.constant 12 : index
    %93 = memref.load %arg3[%c12] : memref<152xf32, #tpu.memory_space<smem>>
    %94 = vector.broadcast %93 : f32 to vector<1x256xf32>
    %95 = arith.mulf %17, %94 : vector<1x256xf32>
    %c13 = arith.constant 13 : index
    %96 = memref.load %arg3[%c13] : memref<152xf32, #tpu.memory_space<smem>>
    %97 = vector.broadcast %96 : f32 to vector<1x256xf32>
    %98 = arith.mulf %19, %97 : vector<1x256xf32>
    %99 = arith.addf %95, %98 : vector<1x256xf32>
    %c14 = arith.constant 14 : index
    %100 = memref.load %arg3[%c14] : memref<152xf32, #tpu.memory_space<smem>>
    %101 = vector.broadcast %100 : f32 to vector<1x256xf32>
    %102 = arith.mulf %21, %101 : vector<1x256xf32>
    %103 = arith.addf %99, %102 : vector<1x256xf32>
    %c15 = arith.constant 15 : index
    %104 = memref.load %arg3[%c15] : memref<152xf32, #tpu.memory_space<smem>>
    %105 = vector.broadcast %104 : f32 to vector<1x256xf32>
    %106 = arith.mulf %23, %105 : vector<1x256xf32>
    %107 = arith.addf %103, %106 : vector<1x256xf32>
    %c19 = arith.constant 19 : index
    %108 = memref.load %arg3[%c19] : memref<152xf32, #tpu.memory_space<smem>>
    %109 = vector.broadcast %108 : f32 to vector<1x256xf32>
    %110 = arith.mulf %107, %109 : vector<1x256xf32>
    %c23 = arith.constant 23 : index
    %111 = memref.load %arg3[%c23] : memref<152xf32, #tpu.memory_space<smem>>
    %112 = vector.broadcast %111 : f32 to vector<1x256xf32>
    %113 = arith.addf %110, %112 : vector<1x256xf32>
    %cst_38 = arith.constant 0.000000e+00 : f32
    %114 = vector.broadcast %cst_38 : f32 to vector<1x256xf32>
    %115 = arith.maximumf %113, %114 : vector<1x256xf32>
    %c28 = arith.constant 28 : index
    %116 = memref.load %arg3[%c28] : memref<152xf32, #tpu.memory_space<smem>>
    %117 = vector.broadcast %116 : f32 to vector<1x256xf32>
    %118 = arith.mulf %46, %117 : vector<1x256xf32>
    %c17_i32 = arith.constant 17 : i32
    %119 = tpu.dynamic_rotate %46 by %c17_i32 dim 1 : vector<1x256xf32>, i32 -> vector<1x256xf32>
    %120 = arith.mulf %119, %1 : vector<1x256xf32>
    %c24 = arith.constant 24 : index
    %121 = memref.load %arg3[%c24] : memref<152xf32, #tpu.memory_space<smem>>
    %122 = vector.broadcast %121 : f32 to vector<1x256xf32>
    %123 = arith.mulf %120, %122 : vector<1x256xf32>
    %124 = arith.addf %118, %123 : vector<1x256xf32>
    %c16_i32 = arith.constant 16 : i32
    %125 = tpu.dynamic_rotate %46 by %c16_i32 dim 1 : vector<1x256xf32>, i32 -> vector<1x256xf32>
    %126 = arith.mulf %125, %3 : vector<1x256xf32>
    %c25 = arith.constant 25 : index
    %127 = memref.load %arg3[%c25] : memref<152xf32, #tpu.memory_space<smem>>
    %128 = vector.broadcast %127 : f32 to vector<1x256xf32>
    %129 = arith.mulf %126, %128 : vector<1x256xf32>
    %130 = arith.addf %124, %129 : vector<1x256xf32>
    %c15_i32 = arith.constant 15 : i32
    %131 = tpu.dynamic_rotate %46 by %c15_i32 dim 1 : vector<1x256xf32>, i32 -> vector<1x256xf32>
    %132 = arith.mulf %131, %5 : vector<1x256xf32>
    %c26 = arith.constant 26 : index
    %133 = memref.load %arg3[%c26] : memref<152xf32, #tpu.memory_space<smem>>
    %134 = vector.broadcast %133 : f32 to vector<1x256xf32>
    %135 = arith.mulf %132, %134 : vector<1x256xf32>
    %136 = arith.addf %130, %135 : vector<1x256xf32>
    %c1_i32 = arith.constant 1 : i32
    %137 = tpu.dynamic_rotate %46 by %c1_i32 dim 1 : vector<1x256xf32>, i32 -> vector<1x256xf32>
    %138 = arith.mulf %137, %7 : vector<1x256xf32>
    %c27 = arith.constant 27 : index
    %139 = memref.load %arg3[%c27] : memref<152xf32, #tpu.memory_space<smem>>
    %140 = vector.broadcast %139 : f32 to vector<1x256xf32>
    %141 = arith.mulf %138, %140 : vector<1x256xf32>
    %142 = arith.addf %136, %141 : vector<1x256xf32>
    %c255_i32 = arith.constant 255 : i32
    %143 = tpu.dynamic_rotate %46 by %c255_i32 dim 1 : vector<1x256xf32>, i32 -> vector<1x256xf32>
    %144 = arith.mulf %143, %9 : vector<1x256xf32>
    %c29 = arith.constant 29 : index
    %145 = memref.load %arg3[%c29] : memref<152xf32, #tpu.memory_space<smem>>
    %146 = vector.broadcast %145 : f32 to vector<1x256xf32>
    %147 = arith.mulf %144, %146 : vector<1x256xf32>
    %148 = arith.addf %142, %147 : vector<1x256xf32>
    %c241_i32 = arith.constant 241 : i32
    %149 = tpu.dynamic_rotate %46 by %c241_i32 dim 1 : vector<1x256xf32>, i32 -> vector<1x256xf32>
    %150 = arith.mulf %149, %11 : vector<1x256xf32>
    %c30 = arith.constant 30 : index
    %151 = memref.load %arg3[%c30] : memref<152xf32, #tpu.memory_space<smem>>
    %152 = vector.broadcast %151 : f32 to vector<1x256xf32>
    %153 = arith.mulf %150, %152 : vector<1x256xf32>
    %154 = arith.addf %148, %153 : vector<1x256xf32>
    %c240_i32 = arith.constant 240 : i32
    %155 = tpu.dynamic_rotate %46 by %c240_i32 dim 1 : vector<1x256xf32>, i32 -> vector<1x256xf32>
    %156 = arith.mulf %155, %13 : vector<1x256xf32>
    %c31 = arith.constant 31 : index
    %157 = memref.load %arg3[%c31] : memref<152xf32, #tpu.memory_space<smem>>
    %158 = vector.broadcast %157 : f32 to vector<1x256xf32>
    %159 = arith.mulf %156, %158 : vector<1x256xf32>
    %160 = arith.addf %154, %159 : vector<1x256xf32>
    %c239_i32 = arith.constant 239 : i32
    %161 = tpu.dynamic_rotate %46 by %c239_i32 dim 1 : vector<1x256xf32>, i32 -> vector<1x256xf32>
    %162 = arith.mulf %161, %15 : vector<1x256xf32>
    %c32 = arith.constant 32 : index
    %163 = memref.load %arg3[%c32] : memref<152xf32, #tpu.memory_space<smem>>
    %164 = vector.broadcast %163 : f32 to vector<1x256xf32>
    %165 = arith.mulf %162, %164 : vector<1x256xf32>
    %166 = arith.addf %160, %165 : vector<1x256xf32>
    %c60 = arith.constant 60 : index
    %167 = memref.load %arg3[%c60] : memref<152xf32, #tpu.memory_space<smem>>
    %168 = vector.broadcast %167 : f32 to vector<1x256xf32>
    %169 = arith.mulf %166, %168 : vector<1x256xf32>
    %c64 = arith.constant 64 : index
    %170 = memref.load %arg3[%c64] : memref<152xf32, #tpu.memory_space<smem>>
    %171 = vector.broadcast %170 : f32 to vector<1x256xf32>
    %172 = arith.addf %169, %171 : vector<1x256xf32>
    %cst_39 = arith.constant 0.000000e+00 : f32
    %173 = vector.broadcast %cst_39 : f32 to vector<1x256xf32>
    %174 = arith.maximumf %172, %173 : vector<1x256xf32>
    %c37 = arith.constant 37 : index
    %175 = memref.load %arg3[%c37] : memref<152xf32, #tpu.memory_space<smem>>
    %176 = vector.broadcast %175 : f32 to vector<1x256xf32>
    %177 = arith.mulf %69, %176 : vector<1x256xf32>
    %c17_i32_40 = arith.constant 17 : i32
    %178 = tpu.dynamic_rotate %69 by %c17_i32_40 dim 1 : vector<1x256xf32>, i32 -> vector<1x256xf32>
    %179 = arith.mulf %178, %1 : vector<1x256xf32>
    %c33 = arith.constant 33 : index
    %180 = memref.load %arg3[%c33] : memref<152xf32, #tpu.memory_space<smem>>
    %181 = vector.broadcast %180 : f32 to vector<1x256xf32>
    %182 = arith.mulf %179, %181 : vector<1x256xf32>
    %183 = arith.addf %177, %182 : vector<1x256xf32>
    %c16_i32_41 = arith.constant 16 : i32
    %184 = tpu.dynamic_rotate %69 by %c16_i32_41 dim 1 : vector<1x256xf32>, i32 -> vector<1x256xf32>
    %185 = arith.mulf %184, %3 : vector<1x256xf32>
    %c34 = arith.constant 34 : index
    %186 = memref.load %arg3[%c34] : memref<152xf32, #tpu.memory_space<smem>>
    %187 = vector.broadcast %186 : f32 to vector<1x256xf32>
    %188 = arith.mulf %185, %187 : vector<1x256xf32>
    %189 = arith.addf %183, %188 : vector<1x256xf32>
    %c15_i32_42 = arith.constant 15 : i32
    %190 = tpu.dynamic_rotate %69 by %c15_i32_42 dim 1 : vector<1x256xf32>, i32 -> vector<1x256xf32>
    %191 = arith.mulf %190, %5 : vector<1x256xf32>
    %c35 = arith.constant 35 : index
    %192 = memref.load %arg3[%c35] : memref<152xf32, #tpu.memory_space<smem>>
    %193 = vector.broadcast %192 : f32 to vector<1x256xf32>
    %194 = arith.mulf %191, %193 : vector<1x256xf32>
    %195 = arith.addf %189, %194 : vector<1x256xf32>
    %c1_i32_43 = arith.constant 1 : i32
    %196 = tpu.dynamic_rotate %69 by %c1_i32_43 dim 1 : vector<1x256xf32>, i32 -> vector<1x256xf32>
    %197 = arith.mulf %196, %7 : vector<1x256xf32>
    %c36 = arith.constant 36 : index
    %198 = memref.load %arg3[%c36] : memref<152xf32, #tpu.memory_space<smem>>
    %199 = vector.broadcast %198 : f32 to vector<1x256xf32>
    %200 = arith.mulf %197, %199 : vector<1x256xf32>
    %201 = arith.addf %195, %200 : vector<1x256xf32>
    %c255_i32_44 = arith.constant 255 : i32
    %202 = tpu.dynamic_rotate %69 by %c255_i32_44 dim 1 : vector<1x256xf32>, i32 -> vector<1x256xf32>
    %203 = arith.mulf %202, %9 : vector<1x256xf32>
    %c38 = arith.constant 38 : index
    %204 = memref.load %arg3[%c38] : memref<152xf32, #tpu.memory_space<smem>>
    %205 = vector.broadcast %204 : f32 to vector<1x256xf32>
    %206 = arith.mulf %203, %205 : vector<1x256xf32>
    %207 = arith.addf %201, %206 : vector<1x256xf32>
    %c241_i32_45 = arith.constant 241 : i32
    %208 = tpu.dynamic_rotate %69 by %c241_i32_45 dim 1 : vector<1x256xf32>, i32 -> vector<1x256xf32>
    %209 = arith.mulf %208, %11 : vector<1x256xf32>
    %c39 = arith.constant 39 : index
    %210 = memref.load %arg3[%c39] : memref<152xf32, #tpu.memory_space<smem>>
    %211 = vector.broadcast %210 : f32 to vector<1x256xf32>
    %212 = arith.mulf %209, %211 : vector<1x256xf32>
    %213 = arith.addf %207, %212 : vector<1x256xf32>
    %c240_i32_46 = arith.constant 240 : i32
    %214 = tpu.dynamic_rotate %69 by %c240_i32_46 dim 1 : vector<1x256xf32>, i32 -> vector<1x256xf32>
    %215 = arith.mulf %214, %13 : vector<1x256xf32>
    %c40 = arith.constant 40 : index
    %216 = memref.load %arg3[%c40] : memref<152xf32, #tpu.memory_space<smem>>
    %217 = vector.broadcast %216 : f32 to vector<1x256xf32>
    %218 = arith.mulf %215, %217 : vector<1x256xf32>
    %219 = arith.addf %213, %218 : vector<1x256xf32>
    %c239_i32_47 = arith.constant 239 : i32
    %220 = tpu.dynamic_rotate %69 by %c239_i32_47 dim 1 : vector<1x256xf32>, i32 -> vector<1x256xf32>
    %221 = arith.mulf %220, %15 : vector<1x256xf32>
    %c41 = arith.constant 41 : index
    %222 = memref.load %arg3[%c41] : memref<152xf32, #tpu.memory_space<smem>>
    %223 = vector.broadcast %222 : f32 to vector<1x256xf32>
    %224 = arith.mulf %221, %223 : vector<1x256xf32>
    %225 = arith.addf %219, %224 : vector<1x256xf32>
    %c61 = arith.constant 61 : index
    %226 = memref.load %arg3[%c61] : memref<152xf32, #tpu.memory_space<smem>>
    %227 = vector.broadcast %226 : f32 to vector<1x256xf32>
    %228 = arith.mulf %225, %227 : vector<1x256xf32>
    %c65 = arith.constant 65 : index
    %229 = memref.load %arg3[%c65] : memref<152xf32, #tpu.memory_space<smem>>
    %230 = vector.broadcast %229 : f32 to vector<1x256xf32>
    %231 = arith.addf %228, %230 : vector<1x256xf32>
    %cst_48 = arith.constant 0.000000e+00 : f32
    %232 = vector.broadcast %cst_48 : f32 to vector<1x256xf32>
    %233 = arith.maximumf %231, %232 : vector<1x256xf32>
    %c46 = arith.constant 46 : index
    %234 = memref.load %arg3[%c46] : memref<152xf32, #tpu.memory_space<smem>>
    %235 = vector.broadcast %234 : f32 to vector<1x256xf32>
    %236 = arith.mulf %92, %235 : vector<1x256xf32>
    %c17_i32_49 = arith.constant 17 : i32
    %237 = tpu.dynamic_rotate %92 by %c17_i32_49 dim 1 : vector<1x256xf32>, i32 -> vector<1x256xf32>
    %238 = arith.mulf %237, %1 : vector<1x256xf32>
    %c42 = arith.constant 42 : index
    %239 = memref.load %arg3[%c42] : memref<152xf32, #tpu.memory_space<smem>>
    %240 = vector.broadcast %239 : f32 to vector<1x256xf32>
    %241 = arith.mulf %238, %240 : vector<1x256xf32>
    %242 = arith.addf %236, %241 : vector<1x256xf32>
    %c16_i32_50 = arith.constant 16 : i32
    %243 = tpu.dynamic_rotate %92 by %c16_i32_50 dim 1 : vector<1x256xf32>, i32 -> vector<1x256xf32>
    %244 = arith.mulf %243, %3 : vector<1x256xf32>
    %c43 = arith.constant 43 : index
    %245 = memref.load %arg3[%c43] : memref<152xf32, #tpu.memory_space<smem>>
    %246 = vector.broadcast %245 : f32 to vector<1x256xf32>
    %247 = arith.mulf %244, %246 : vector<1x256xf32>
    %248 = arith.addf %242, %247 : vector<1x256xf32>
    %c15_i32_51 = arith.constant 15 : i32
    %249 = tpu.dynamic_rotate %92 by %c15_i32_51 dim 1 : vector<1x256xf32>, i32 -> vector<1x256xf32>
    %250 = arith.mulf %249, %5 : vector<1x256xf32>
    %c44 = arith.constant 44 : index
    %251 = memref.load %arg3[%c44] : memref<152xf32, #tpu.memory_space<smem>>
    %252 = vector.broadcast %251 : f32 to vector<1x256xf32>
    %253 = arith.mulf %250, %252 : vector<1x256xf32>
    %254 = arith.addf %248, %253 : vector<1x256xf32>
    %c1_i32_52 = arith.constant 1 : i32
    %255 = tpu.dynamic_rotate %92 by %c1_i32_52 dim 1 : vector<1x256xf32>, i32 -> vector<1x256xf32>
    %256 = arith.mulf %255, %7 : vector<1x256xf32>
    %c45 = arith.constant 45 : index
    %257 = memref.load %arg3[%c45] : memref<152xf32, #tpu.memory_space<smem>>
    %258 = vector.broadcast %257 : f32 to vector<1x256xf32>
    %259 = arith.mulf %256, %258 : vector<1x256xf32>
    %260 = arith.addf %254, %259 : vector<1x256xf32>
    %c255_i32_53 = arith.constant 255 : i32
    %261 = tpu.dynamic_rotate %92 by %c255_i32_53 dim 1 : vector<1x256xf32>, i32 -> vector<1x256xf32>
    %262 = arith.mulf %261, %9 : vector<1x256xf32>
    %c47 = arith.constant 47 : index
    %263 = memref.load %arg3[%c47] : memref<152xf32, #tpu.memory_space<smem>>
    %264 = vector.broadcast %263 : f32 to vector<1x256xf32>
    %265 = arith.mulf %262, %264 : vector<1x256xf32>
    %266 = arith.addf %260, %265 : vector<1x256xf32>
    %c241_i32_54 = arith.constant 241 : i32
    %267 = tpu.dynamic_rotate %92 by %c241_i32_54 dim 1 : vector<1x256xf32>, i32 -> vector<1x256xf32>
    %268 = arith.mulf %267, %11 : vector<1x256xf32>
    %c48 = arith.constant 48 : index
    %269 = memref.load %arg3[%c48] : memref<152xf32, #tpu.memory_space<smem>>
    %270 = vector.broadcast %269 : f32 to vector<1x256xf32>
    %271 = arith.mulf %268, %270 : vector<1x256xf32>
    %272 = arith.addf %266, %271 : vector<1x256xf32>
    %c240_i32_55 = arith.constant 240 : i32
    %273 = tpu.dynamic_rotate %92 by %c240_i32_55 dim 1 : vector<1x256xf32>, i32 -> vector<1x256xf32>
    %274 = arith.mulf %273, %13 : vector<1x256xf32>
    %c49 = arith.constant 49 : index
    %275 = memref.load %arg3[%c49] : memref<152xf32, #tpu.memory_space<smem>>
    %276 = vector.broadcast %275 : f32 to vector<1x256xf32>
    %277 = arith.mulf %274, %276 : vector<1x256xf32>
    %278 = arith.addf %272, %277 : vector<1x256xf32>
    %c239_i32_56 = arith.constant 239 : i32
    %279 = tpu.dynamic_rotate %92 by %c239_i32_56 dim 1 : vector<1x256xf32>, i32 -> vector<1x256xf32>
    %280 = arith.mulf %279, %15 : vector<1x256xf32>
    %c50 = arith.constant 50 : index
    %281 = memref.load %arg3[%c50] : memref<152xf32, #tpu.memory_space<smem>>
    %282 = vector.broadcast %281 : f32 to vector<1x256xf32>
    %283 = arith.mulf %280, %282 : vector<1x256xf32>
    %284 = arith.addf %278, %283 : vector<1x256xf32>
    %c62 = arith.constant 62 : index
    %285 = memref.load %arg3[%c62] : memref<152xf32, #tpu.memory_space<smem>>
    %286 = vector.broadcast %285 : f32 to vector<1x256xf32>
    %287 = arith.mulf %284, %286 : vector<1x256xf32>
    %c66 = arith.constant 66 : index
    %288 = memref.load %arg3[%c66] : memref<152xf32, #tpu.memory_space<smem>>
    %289 = vector.broadcast %288 : f32 to vector<1x256xf32>
    %290 = arith.addf %287, %289 : vector<1x256xf32>
    %cst_57 = arith.constant 0.000000e+00 : f32
    %291 = vector.broadcast %cst_57 : f32 to vector<1x256xf32>
    %292 = arith.maximumf %290, %291 : vector<1x256xf32>
    %c55 = arith.constant 55 : index
    %293 = memref.load %arg3[%c55] : memref<152xf32, #tpu.memory_space<smem>>
    %294 = vector.broadcast %293 : f32 to vector<1x256xf32>
    %295 = arith.mulf %115, %294 : vector<1x256xf32>
    %c17_i32_58 = arith.constant 17 : i32
    %296 = tpu.dynamic_rotate %115 by %c17_i32_58 dim 1 : vector<1x256xf32>, i32 -> vector<1x256xf32>
    %297 = arith.mulf %296, %1 : vector<1x256xf32>
    %c51 = arith.constant 51 : index
    %298 = memref.load %arg3[%c51] : memref<152xf32, #tpu.memory_space<smem>>
    %299 = vector.broadcast %298 : f32 to vector<1x256xf32>
    %300 = arith.mulf %297, %299 : vector<1x256xf32>
    %301 = arith.addf %295, %300 : vector<1x256xf32>
    %c16_i32_59 = arith.constant 16 : i32
    %302 = tpu.dynamic_rotate %115 by %c16_i32_59 dim 1 : vector<1x256xf32>, i32 -> vector<1x256xf32>
    %303 = arith.mulf %302, %3 : vector<1x256xf32>
    %c52 = arith.constant 52 : index
    %304 = memref.load %arg3[%c52] : memref<152xf32, #tpu.memory_space<smem>>
    %305 = vector.broadcast %304 : f32 to vector<1x256xf32>
    %306 = arith.mulf %303, %305 : vector<1x256xf32>
    %307 = arith.addf %301, %306 : vector<1x256xf32>
    %c15_i32_60 = arith.constant 15 : i32
    %308 = tpu.dynamic_rotate %115 by %c15_i32_60 dim 1 : vector<1x256xf32>, i32 -> vector<1x256xf32>
    %309 = arith.mulf %308, %5 : vector<1x256xf32>
    %c53 = arith.constant 53 : index
    %310 = memref.load %arg3[%c53] : memref<152xf32, #tpu.memory_space<smem>>
    %311 = vector.broadcast %310 : f32 to vector<1x256xf32>
    %312 = arith.mulf %309, %311 : vector<1x256xf32>
    %313 = arith.addf %307, %312 : vector<1x256xf32>
    %c1_i32_61 = arith.constant 1 : i32
    %314 = tpu.dynamic_rotate %115 by %c1_i32_61 dim 1 : vector<1x256xf32>, i32 -> vector<1x256xf32>
    %315 = arith.mulf %314, %7 : vector<1x256xf32>
    %c54 = arith.constant 54 : index
    %316 = memref.load %arg3[%c54] : memref<152xf32, #tpu.memory_space<smem>>
    %317 = vector.broadcast %316 : f32 to vector<1x256xf32>
    %318 = arith.mulf %315, %317 : vector<1x256xf32>
    %319 = arith.addf %313, %318 : vector<1x256xf32>
    %c255_i32_62 = arith.constant 255 : i32
    %320 = tpu.dynamic_rotate %115 by %c255_i32_62 dim 1 : vector<1x256xf32>, i32 -> vector<1x256xf32>
    %321 = arith.mulf %320, %9 : vector<1x256xf32>
    %c56 = arith.constant 56 : index
    %322 = memref.load %arg3[%c56] : memref<152xf32, #tpu.memory_space<smem>>
    %323 = vector.broadcast %322 : f32 to vector<1x256xf32>
    %324 = arith.mulf %321, %323 : vector<1x256xf32>
    %325 = arith.addf %319, %324 : vector<1x256xf32>
    %c241_i32_63 = arith.constant 241 : i32
    %326 = tpu.dynamic_rotate %115 by %c241_i32_63 dim 1 : vector<1x256xf32>, i32 -> vector<1x256xf32>
    %327 = arith.mulf %326, %11 : vector<1x256xf32>
    %c57 = arith.constant 57 : index
    %328 = memref.load %arg3[%c57] : memref<152xf32, #tpu.memory_space<smem>>
    %329 = vector.broadcast %328 : f32 to vector<1x256xf32>
    %330 = arith.mulf %327, %329 : vector<1x256xf32>
    %331 = arith.addf %325, %330 : vector<1x256xf32>
    %c240_i32_64 = arith.constant 240 : i32
    %332 = tpu.dynamic_rotate %115 by %c240_i32_64 dim 1 : vector<1x256xf32>, i32 -> vector<1x256xf32>
    %333 = arith.mulf %332, %13 : vector<1x256xf32>
    %c58 = arith.constant 58 : index
    %334 = memref.load %arg3[%c58] : memref<152xf32, #tpu.memory_space<smem>>
    %335 = vector.broadcast %334 : f32 to vector<1x256xf32>
    %336 = arith.mulf %333, %335 : vector<1x256xf32>
    %337 = arith.addf %331, %336 : vector<1x256xf32>
    %c239_i32_65 = arith.constant 239 : i32
    %338 = tpu.dynamic_rotate %115 by %c239_i32_65 dim 1 : vector<1x256xf32>, i32 -> vector<1x256xf32>
    %339 = arith.mulf %338, %15 : vector<1x256xf32>
    %c59 = arith.constant 59 : index
    %340 = memref.load %arg3[%c59] : memref<152xf32, #tpu.memory_space<smem>>
    %341 = vector.broadcast %340 : f32 to vector<1x256xf32>
    %342 = arith.mulf %339, %341 : vector<1x256xf32>
    %343 = arith.addf %337, %342 : vector<1x256xf32>
    %c63 = arith.constant 63 : index
    %344 = memref.load %arg3[%c63] : memref<152xf32, #tpu.memory_space<smem>>
    %345 = vector.broadcast %344 : f32 to vector<1x256xf32>
    %346 = arith.mulf %343, %345 : vector<1x256xf32>
    %c67 = arith.constant 67 : index
    %347 = memref.load %arg3[%c67] : memref<152xf32, #tpu.memory_space<smem>>
    %348 = vector.broadcast %347 : f32 to vector<1x256xf32>
    %349 = arith.addf %346, %348 : vector<1x256xf32>
    %cst_66 = arith.constant 0.000000e+00 : f32
    %350 = vector.broadcast %cst_66 : f32 to vector<1x256xf32>
    %351 = arith.maximumf %349, %350 : vector<1x256xf32>
    %cst_67 = arith.constant dense<0.000000e+00> : vector<1xf32>
    %352 = vector.multi_reduction <add>, %46, %cst_67 [1] : vector<1x256xf32> to vector<1xf32>
    %353 = vector.shape_cast %352 : vector<1xf32> to vector<1x1xf32>
    %cst_68 = arith.constant 3.906250e-03 : f32
    %354 = vector.broadcast %cst_68 : f32 to vector<1x1xf32>
    %355 = arith.mulf %353, %354 : vector<1x1xf32>
    %cst_69 = arith.constant dense<0.000000e+00> : vector<1xf32>
    %356 = vector.multi_reduction <add>, %69, %cst_69 [1] : vector<1x256xf32> to vector<1xf32>
    %357 = vector.shape_cast %356 : vector<1xf32> to vector<1x1xf32>
    %cst_70 = arith.constant 3.906250e-03 : f32
    %358 = vector.broadcast %cst_70 : f32 to vector<1x1xf32>
    %359 = arith.mulf %357, %358 : vector<1x1xf32>
    %cst_71 = arith.constant dense<0.000000e+00> : vector<1xf32>
    %360 = vector.multi_reduction <add>, %92, %cst_71 [1] : vector<1x256xf32> to vector<1xf32>
    %361 = vector.shape_cast %360 : vector<1xf32> to vector<1x1xf32>
    %cst_72 = arith.constant 3.906250e-03 : f32
    %362 = vector.broadcast %cst_72 : f32 to vector<1x1xf32>
    %363 = arith.mulf %361, %362 : vector<1x1xf32>
    %cst_73 = arith.constant dense<0.000000e+00> : vector<1xf32>
    %364 = vector.multi_reduction <add>, %115, %cst_73 [1] : vector<1x256xf32> to vector<1xf32>
    %365 = vector.shape_cast %364 : vector<1xf32> to vector<1x1xf32>
    %cst_74 = arith.constant 3.906250e-03 : f32
    %366 = vector.broadcast %cst_74 : f32 to vector<1x1xf32>
    %367 = arith.mulf %365, %366 : vector<1x1xf32>
    %cst_75 = arith.constant dense<0.000000e+00> : vector<1xf32>
    %368 = vector.multi_reduction <add>, %174, %cst_75 [1] : vector<1x256xf32> to vector<1xf32>
    %369 = vector.shape_cast %368 : vector<1xf32> to vector<1x1xf32>
    %cst_76 = arith.constant 3.906250e-03 : f32
    %370 = vector.broadcast %cst_76 : f32 to vector<1x1xf32>
    %371 = arith.mulf %369, %370 : vector<1x1xf32>
    %cst_77 = arith.constant dense<0.000000e+00> : vector<1xf32>
    %372 = vector.multi_reduction <add>, %233, %cst_77 [1] : vector<1x256xf32> to vector<1xf32>
    %373 = vector.shape_cast %372 : vector<1xf32> to vector<1x1xf32>
    %cst_78 = arith.constant 3.906250e-03 : f32
    %374 = vector.broadcast %cst_78 : f32 to vector<1x1xf32>
    %375 = arith.mulf %373, %374 : vector<1x1xf32>
    %cst_79 = arith.constant dense<0.000000e+00> : vector<1xf32>
    %376 = vector.multi_reduction <add>, %292, %cst_79 [1] : vector<1x256xf32> to vector<1xf32>
    %377 = vector.shape_cast %376 : vector<1xf32> to vector<1x1xf32>
    %cst_80 = arith.constant 3.906250e-03 : f32
    %378 = vector.broadcast %cst_80 : f32 to vector<1x1xf32>
    %379 = arith.mulf %377, %378 : vector<1x1xf32>
    %cst_81 = arith.constant dense<0.000000e+00> : vector<1xf32>
    %380 = vector.multi_reduction <add>, %351, %cst_81 [1] : vector<1x256xf32> to vector<1xf32>
    %381 = vector.shape_cast %380 : vector<1xf32> to vector<1x1xf32>
    %cst_82 = arith.constant 3.906250e-03 : f32
    %382 = vector.broadcast %cst_82 : f32 to vector<1x1xf32>
    %383 = arith.mulf %381, %382 : vector<1x1xf32>
    %c68 = arith.constant 68 : index
    %384 = memref.load %arg3[%c68] : memref<152xf32, #tpu.memory_space<smem>>
    %385 = vector.broadcast %384 : f32 to vector<1x1xf32>
    %386 = arith.mulf %355, %385 : vector<1x1xf32>
    %c69 = arith.constant 69 : index
    %387 = memref.load %arg3[%c69] : memref<152xf32, #tpu.memory_space<smem>>
    %388 = vector.broadcast %387 : f32 to vector<1x1xf32>
    %389 = arith.mulf %359, %388 : vector<1x1xf32>
    %390 = arith.addf %386, %389 : vector<1x1xf32>
    %c70 = arith.constant 70 : index
    %391 = memref.load %arg3[%c70] : memref<152xf32, #tpu.memory_space<smem>>
    %392 = vector.broadcast %391 : f32 to vector<1x1xf32>
    %393 = arith.mulf %363, %392 : vector<1x1xf32>
    %394 = arith.addf %390, %393 : vector<1x1xf32>
    %c71 = arith.constant 71 : index
    %395 = memref.load %arg3[%c71] : memref<152xf32, #tpu.memory_space<smem>>
    %396 = vector.broadcast %395 : f32 to vector<1x1xf32>
    %397 = arith.mulf %367, %396 : vector<1x1xf32>
    %398 = arith.addf %394, %397 : vector<1x1xf32>
    %c72 = arith.constant 72 : index
    %399 = memref.load %arg3[%c72] : memref<152xf32, #tpu.memory_space<smem>>
    %400 = vector.broadcast %399 : f32 to vector<1x1xf32>
    %401 = arith.mulf %371, %400 : vector<1x1xf32>
    %402 = arith.addf %398, %401 : vector<1x1xf32>
    %c73 = arith.constant 73 : index
    %403 = memref.load %arg3[%c73] : memref<152xf32, #tpu.memory_space<smem>>
    %404 = vector.broadcast %403 : f32 to vector<1x1xf32>
    %405 = arith.mulf %375, %404 : vector<1x1xf32>
    %406 = arith.addf %402, %405 : vector<1x1xf32>
    %c74 = arith.constant 74 : index
    %407 = memref.load %arg3[%c74] : memref<152xf32, #tpu.memory_space<smem>>
    %408 = vector.broadcast %407 : f32 to vector<1x1xf32>
    %409 = arith.mulf %379, %408 : vector<1x1xf32>
    %410 = arith.addf %406, %409 : vector<1x1xf32>
    %c75 = arith.constant 75 : index
    %411 = memref.load %arg3[%c75] : memref<152xf32, #tpu.memory_space<smem>>
    %412 = vector.broadcast %411 : f32 to vector<1x1xf32>
    %413 = arith.mulf %383, %412 : vector<1x1xf32>
    %414 = arith.addf %410, %413 : vector<1x1xf32>
    %c84 = arith.constant 84 : index
    %415 = memref.load %arg3[%c84] : memref<152xf32, #tpu.memory_space<smem>>
    %416 = vector.broadcast %415 : f32 to vector<1x1xf32>
    %417 = arith.addf %414, %416 : vector<1x1xf32>
    %cst_83 = arith.constant 0.000000e+00 : f32
    %418 = vector.broadcast %cst_83 : f32 to vector<1x1xf32>
    %419 = arith.maximumf %417, %418 : vector<1x1xf32>
    %c76 = arith.constant 76 : index
    %420 = memref.load %arg3[%c76] : memref<152xf32, #tpu.memory_space<smem>>
    %421 = vector.broadcast %420 : f32 to vector<1x1xf32>
    %422 = arith.mulf %355, %421 : vector<1x1xf32>
    %c77 = arith.constant 77 : index
    %423 = memref.load %arg3[%c77] : memref<152xf32, #tpu.memory_space<smem>>
    %424 = vector.broadcast %423 : f32 to vector<1x1xf32>
    %425 = arith.mulf %359, %424 : vector<1x1xf32>
    %426 = arith.addf %422, %425 : vector<1x1xf32>
    %c78 = arith.constant 78 : index
    %427 = memref.load %arg3[%c78] : memref<152xf32, #tpu.memory_space<smem>>
    %428 = vector.broadcast %427 : f32 to vector<1x1xf32>
    %429 = arith.mulf %363, %428 : vector<1x1xf32>
    %430 = arith.addf %426, %429 : vector<1x1xf32>
    %c79 = arith.constant 79 : index
    %431 = memref.load %arg3[%c79] : memref<152xf32, #tpu.memory_space<smem>>
    %432 = vector.broadcast %431 : f32 to vector<1x1xf32>
    %433 = arith.mulf %367, %432 : vector<1x1xf32>
    %434 = arith.addf %430, %433 : vector<1x1xf32>
    %c80 = arith.constant 80 : index
    %435 = memref.load %arg3[%c80] : memref<152xf32, #tpu.memory_space<smem>>
    %436 = vector.broadcast %435 : f32 to vector<1x1xf32>
    %437 = arith.mulf %371, %436 : vector<1x1xf32>
    %438 = arith.addf %434, %437 : vector<1x1xf32>
    %c81 = arith.constant 81 : index
    %439 = memref.load %arg3[%c81] : memref<152xf32, #tpu.memory_space<smem>>
    %440 = vector.broadcast %439 : f32 to vector<1x1xf32>
    %441 = arith.mulf %375, %440 : vector<1x1xf32>
    %442 = arith.addf %438, %441 : vector<1x1xf32>
    %c82 = arith.constant 82 : index
    %443 = memref.load %arg3[%c82] : memref<152xf32, #tpu.memory_space<smem>>
    %444 = vector.broadcast %443 : f32 to vector<1x1xf32>
    %445 = arith.mulf %379, %444 : vector<1x1xf32>
    %446 = arith.addf %442, %445 : vector<1x1xf32>
    %c83 = arith.constant 83 : index
    %447 = memref.load %arg3[%c83] : memref<152xf32, #tpu.memory_space<smem>>
    %448 = vector.broadcast %447 : f32 to vector<1x1xf32>
    %449 = arith.mulf %383, %448 : vector<1x1xf32>
    %450 = arith.addf %446, %449 : vector<1x1xf32>
    %c85 = arith.constant 85 : index
    %451 = memref.load %arg3[%c85] : memref<152xf32, #tpu.memory_space<smem>>
    %452 = vector.broadcast %451 : f32 to vector<1x1xf32>
    %453 = arith.addf %450, %452 : vector<1x1xf32>
    %cst_84 = arith.constant 0.000000e+00 : f32
    %454 = vector.broadcast %cst_84 : f32 to vector<1x1xf32>
    %455 = arith.maximumf %453, %454 : vector<1x1xf32>
    %c86 = arith.constant 86 : index
    %456 = memref.load %arg3[%c86] : memref<152xf32, #tpu.memory_space<smem>>
    %457 = vector.broadcast %456 : f32 to vector<1x1xf32>
    %458 = arith.mulf %419, %457 : vector<1x1xf32>
    %c87 = arith.constant 87 : index
    %459 = memref.load %arg3[%c87] : memref<152xf32, #tpu.memory_space<smem>>
    %460 = vector.broadcast %459 : f32 to vector<1x1xf32>
    %461 = arith.mulf %455, %460 : vector<1x1xf32>
    %462 = arith.addf %458, %461 : vector<1x1xf32>
    %c102 = arith.constant 102 : index
    %463 = memref.load %arg3[%c102] : memref<152xf32, #tpu.memory_space<smem>>
    %464 = vector.broadcast %463 : f32 to vector<1x1xf32>
    %465 = arith.addf %462, %464 : vector<1x1xf32>
    %cst_85 = arith.constant 0.000000e+00 : f32
    %cst_86 = arith.constant 1.000000e+00 : f32
    %466 = vector.broadcast %cst_85 : f32 to vector<1x1xf32>
    %467 = arith.maximumf %466, %465 : vector<1x1xf32>
    %468 = vector.broadcast %cst_86 : f32 to vector<1x1xf32>
    %469 = arith.minimumf %468, %467 : vector<1x1xf32>
    %470 = vector.broadcast %469 : vector<1x1xf32> to vector<1x256xf32>
    %471 = arith.mulf %46, %470 : vector<1x256xf32>
    %c88 = arith.constant 88 : index
    %472 = memref.load %arg3[%c88] : memref<152xf32, #tpu.memory_space<smem>>
    %473 = vector.broadcast %472 : f32 to vector<1x1xf32>
    %474 = arith.mulf %419, %473 : vector<1x1xf32>
    %c89 = arith.constant 89 : index
    %475 = memref.load %arg3[%c89] : memref<152xf32, #tpu.memory_space<smem>>
    %476 = vector.broadcast %475 : f32 to vector<1x1xf32>
    %477 = arith.mulf %455, %476 : vector<1x1xf32>
    %478 = arith.addf %474, %477 : vector<1x1xf32>
    %c103 = arith.constant 103 : index
    %479 = memref.load %arg3[%c103] : memref<152xf32, #tpu.memory_space<smem>>
    %480 = vector.broadcast %479 : f32 to vector<1x1xf32>
    %481 = arith.addf %478, %480 : vector<1x1xf32>
    %cst_87 = arith.constant 0.000000e+00 : f32
    %cst_88 = arith.constant 1.000000e+00 : f32
    %482 = vector.broadcast %cst_87 : f32 to vector<1x1xf32>
    %483 = arith.maximumf %482, %481 : vector<1x1xf32>
    %484 = vector.broadcast %cst_88 : f32 to vector<1x1xf32>
    %485 = arith.minimumf %484, %483 : vector<1x1xf32>
    %486 = vector.broadcast %485 : vector<1x1xf32> to vector<1x256xf32>
    %487 = arith.mulf %69, %486 : vector<1x256xf32>
    %c90 = arith.constant 90 : index
    %488 = memref.load %arg3[%c90] : memref<152xf32, #tpu.memory_space<smem>>
    %489 = vector.broadcast %488 : f32 to vector<1x1xf32>
    %490 = arith.mulf %419, %489 : vector<1x1xf32>
    %c91 = arith.constant 91 : index
    %491 = memref.load %arg3[%c91] : memref<152xf32, #tpu.memory_space<smem>>
    %492 = vector.broadcast %491 : f32 to vector<1x1xf32>
    %493 = arith.mulf %455, %492 : vector<1x1xf32>
    %494 = arith.addf %490, %493 : vector<1x1xf32>
    %c104 = arith.constant 104 : index
    %495 = memref.load %arg3[%c104] : memref<152xf32, #tpu.memory_space<smem>>
    %496 = vector.broadcast %495 : f32 to vector<1x1xf32>
    %497 = arith.addf %494, %496 : vector<1x1xf32>
    %cst_89 = arith.constant 0.000000e+00 : f32
    %cst_90 = arith.constant 1.000000e+00 : f32
    %498 = vector.broadcast %cst_89 : f32 to vector<1x1xf32>
    %499 = arith.maximumf %498, %497 : vector<1x1xf32>
    %500 = vector.broadcast %cst_90 : f32 to vector<1x1xf32>
    %501 = arith.minimumf %500, %499 : vector<1x1xf32>
    %502 = vector.broadcast %501 : vector<1x1xf32> to vector<1x256xf32>
    %503 = arith.mulf %92, %502 : vector<1x256xf32>
    %c92 = arith.constant 92 : index
    %504 = memref.load %arg3[%c92] : memref<152xf32, #tpu.memory_space<smem>>
    %505 = vector.broadcast %504 : f32 to vector<1x1xf32>
    %506 = arith.mulf %419, %505 : vector<1x1xf32>
    %c93 = arith.constant 93 : index
    %507 = memref.load %arg3[%c93] : memref<152xf32, #tpu.memory_space<smem>>
    %508 = vector.broadcast %507 : f32 to vector<1x1xf32>
    %509 = arith.mulf %455, %508 : vector<1x1xf32>
    %510 = arith.addf %506, %509 : vector<1x1xf32>
    %c105 = arith.constant 105 : index
    %511 = memref.load %arg3[%c105] : memref<152xf32, #tpu.memory_space<smem>>
    %512 = vector.broadcast %511 : f32 to vector<1x1xf32>
    %513 = arith.addf %510, %512 : vector<1x1xf32>
    %cst_91 = arith.constant 0.000000e+00 : f32
    %cst_92 = arith.constant 1.000000e+00 : f32
    %514 = vector.broadcast %cst_91 : f32 to vector<1x1xf32>
    %515 = arith.maximumf %514, %513 : vector<1x1xf32>
    %516 = vector.broadcast %cst_92 : f32 to vector<1x1xf32>
    %517 = arith.minimumf %516, %515 : vector<1x1xf32>
    %518 = vector.broadcast %517 : vector<1x1xf32> to vector<1x256xf32>
    %519 = arith.mulf %115, %518 : vector<1x256xf32>
    %c94 = arith.constant 94 : index
    %520 = memref.load %arg3[%c94] : memref<152xf32, #tpu.memory_space<smem>>
    %521 = vector.broadcast %520 : f32 to vector<1x1xf32>
    %522 = arith.mulf %419, %521 : vector<1x1xf32>
    %c95 = arith.constant 95 : index
    %523 = memref.load %arg3[%c95] : memref<152xf32, #tpu.memory_space<smem>>
    %524 = vector.broadcast %523 : f32 to vector<1x1xf32>
    %525 = arith.mulf %455, %524 : vector<1x1xf32>
    %526 = arith.addf %522, %525 : vector<1x1xf32>
    %c106 = arith.constant 106 : index
    %527 = memref.load %arg3[%c106] : memref<152xf32, #tpu.memory_space<smem>>
    %528 = vector.broadcast %527 : f32 to vector<1x1xf32>
    %529 = arith.addf %526, %528 : vector<1x1xf32>
    %cst_93 = arith.constant 0.000000e+00 : f32
    %cst_94 = arith.constant 1.000000e+00 : f32
    %530 = vector.broadcast %cst_93 : f32 to vector<1x1xf32>
    %531 = arith.maximumf %530, %529 : vector<1x1xf32>
    %532 = vector.broadcast %cst_94 : f32 to vector<1x1xf32>
    %533 = arith.minimumf %532, %531 : vector<1x1xf32>
    %534 = vector.broadcast %533 : vector<1x1xf32> to vector<1x256xf32>
    %535 = arith.mulf %174, %534 : vector<1x256xf32>
    %c96 = arith.constant 96 : index
    %536 = memref.load %arg3[%c96] : memref<152xf32, #tpu.memory_space<smem>>
    %537 = vector.broadcast %536 : f32 to vector<1x1xf32>
    %538 = arith.mulf %419, %537 : vector<1x1xf32>
    %c97 = arith.constant 97 : index
    %539 = memref.load %arg3[%c97] : memref<152xf32, #tpu.memory_space<smem>>
    %540 = vector.broadcast %539 : f32 to vector<1x1xf32>
    %541 = arith.mulf %455, %540 : vector<1x1xf32>
    %542 = arith.addf %538, %541 : vector<1x1xf32>
    %c107 = arith.constant 107 : index
    %543 = memref.load %arg3[%c107] : memref<152xf32, #tpu.memory_space<smem>>
    %544 = vector.broadcast %543 : f32 to vector<1x1xf32>
    %545 = arith.addf %542, %544 : vector<1x1xf32>
    %cst_95 = arith.constant 0.000000e+00 : f32
    %cst_96 = arith.constant 1.000000e+00 : f32
    %546 = vector.broadcast %cst_95 : f32 to vector<1x1xf32>
    %547 = arith.maximumf %546, %545 : vector<1x1xf32>
    %548 = vector.broadcast %cst_96 : f32 to vector<1x1xf32>
    %549 = arith.minimumf %548, %547 : vector<1x1xf32>
    %550 = vector.broadcast %549 : vector<1x1xf32> to vector<1x256xf32>
    %551 = arith.mulf %233, %550 : vector<1x256xf32>
    %c98 = arith.constant 98 : index
    %552 = memref.load %arg3[%c98] : memref<152xf32, #tpu.memory_space<smem>>
    %553 = vector.broadcast %552 : f32 to vector<1x1xf32>
    %554 = arith.mulf %419, %553 : vector<1x1xf32>
    %c99 = arith.constant 99 : index
    %555 = memref.load %arg3[%c99] : memref<152xf32, #tpu.memory_space<smem>>
    %556 = vector.broadcast %555 : f32 to vector<1x1xf32>
    %557 = arith.mulf %455, %556 : vector<1x1xf32>
    %558 = arith.addf %554, %557 : vector<1x1xf32>
    %c108 = arith.constant 108 : index
    %559 = memref.load %arg3[%c108] : memref<152xf32, #tpu.memory_space<smem>>
    %560 = vector.broadcast %559 : f32 to vector<1x1xf32>
    %561 = arith.addf %558, %560 : vector<1x1xf32>
    %cst_97 = arith.constant 0.000000e+00 : f32
    %cst_98 = arith.constant 1.000000e+00 : f32
    %562 = vector.broadcast %cst_97 : f32 to vector<1x1xf32>
    %563 = arith.maximumf %562, %561 : vector<1x1xf32>
    %564 = vector.broadcast %cst_98 : f32 to vector<1x1xf32>
    %565 = arith.minimumf %564, %563 : vector<1x1xf32>
    %566 = vector.broadcast %565 : vector<1x1xf32> to vector<1x256xf32>
    %567 = arith.mulf %292, %566 : vector<1x256xf32>
    %c100 = arith.constant 100 : index
    %568 = memref.load %arg3[%c100] : memref<152xf32, #tpu.memory_space<smem>>
    %569 = vector.broadcast %568 : f32 to vector<1x1xf32>
    %570 = arith.mulf %419, %569 : vector<1x1xf32>
    %c101 = arith.constant 101 : index
    %571 = memref.load %arg3[%c101] : memref<152xf32, #tpu.memory_space<smem>>
    %572 = vector.broadcast %571 : f32 to vector<1x1xf32>
    %573 = arith.mulf %455, %572 : vector<1x1xf32>
    %574 = arith.addf %570, %573 : vector<1x1xf32>
    %c109 = arith.constant 109 : index
    %575 = memref.load %arg3[%c109] : memref<152xf32, #tpu.memory_space<smem>>
    %576 = vector.broadcast %575 : f32 to vector<1x1xf32>
    %577 = arith.addf %574, %576 : vector<1x1xf32>
    %cst_99 = arith.constant 0.000000e+00 : f32
    %cst_100 = arith.constant 1.000000e+00 : f32
    %578 = vector.broadcast %cst_99 : f32 to vector<1x1xf32>
    %579 = arith.maximumf %578, %577 : vector<1x1xf32>
    %580 = vector.broadcast %cst_100 : f32 to vector<1x1xf32>
    %581 = arith.minimumf %580, %579 : vector<1x1xf32>
    %582 = vector.broadcast %581 : vector<1x1xf32> to vector<1x256xf32>
    %583 = arith.mulf %351, %582 : vector<1x256xf32>
    %c110 = arith.constant 110 : index
    %584 = memref.load %arg3[%c110] : memref<152xf32, #tpu.memory_space<smem>>
    %585 = vector.broadcast %584 : f32 to vector<1x256xf32>
    %586 = arith.mulf %471, %585 : vector<1x256xf32>
    %c111 = arith.constant 111 : index
    %587 = memref.load %arg3[%c111] : memref<152xf32, #tpu.memory_space<smem>>
    %588 = vector.broadcast %587 : f32 to vector<1x256xf32>
    %589 = arith.mulf %487, %588 : vector<1x256xf32>
    %590 = arith.addf %586, %589 : vector<1x256xf32>
    %c112 = arith.constant 112 : index
    %591 = memref.load %arg3[%c112] : memref<152xf32, #tpu.memory_space<smem>>
    %592 = vector.broadcast %591 : f32 to vector<1x256xf32>
    %593 = arith.mulf %503, %592 : vector<1x256xf32>
    %594 = arith.addf %590, %593 : vector<1x256xf32>
    %c113 = arith.constant 113 : index
    %595 = memref.load %arg3[%c113] : memref<152xf32, #tpu.memory_space<smem>>
    %596 = vector.broadcast %595 : f32 to vector<1x256xf32>
    %597 = arith.mulf %519, %596 : vector<1x256xf32>
    %598 = arith.addf %594, %597 : vector<1x256xf32>
    %c114 = arith.constant 114 : index
    %599 = memref.load %arg3[%c114] : memref<152xf32, #tpu.memory_space<smem>>
    %600 = vector.broadcast %599 : f32 to vector<1x256xf32>
    %601 = arith.mulf %535, %600 : vector<1x256xf32>
    %602 = arith.addf %598, %601 : vector<1x256xf32>
    %c115 = arith.constant 115 : index
    %603 = memref.load %arg3[%c115] : memref<152xf32, #tpu.memory_space<smem>>
    %604 = vector.broadcast %603 : f32 to vector<1x256xf32>
    %605 = arith.mulf %551, %604 : vector<1x256xf32>
    %606 = arith.addf %602, %605 : vector<1x256xf32>
    %c116 = arith.constant 116 : index
    %607 = memref.load %arg3[%c116] : memref<152xf32, #tpu.memory_space<smem>>
    %608 = vector.broadcast %607 : f32 to vector<1x256xf32>
    %609 = arith.mulf %567, %608 : vector<1x256xf32>
    %610 = arith.addf %606, %609 : vector<1x256xf32>
    %c117 = arith.constant 117 : index
    %611 = memref.load %arg3[%c117] : memref<152xf32, #tpu.memory_space<smem>>
    %612 = vector.broadcast %611 : f32 to vector<1x256xf32>
    %613 = arith.mulf %583, %612 : vector<1x256xf32>
    %614 = arith.addf %610, %613 : vector<1x256xf32>
    %c126 = arith.constant 126 : index
    %615 = memref.load %arg3[%c126] : memref<152xf32, #tpu.memory_space<smem>>
    %616 = vector.broadcast %615 : f32 to vector<1x256xf32>
    %617 = arith.mulf %614, %616 : vector<1x256xf32>
    %c128 = arith.constant 128 : index
    %618 = memref.load %arg3[%c128] : memref<152xf32, #tpu.memory_space<smem>>
    %619 = vector.broadcast %618 : f32 to vector<1x256xf32>
    %620 = arith.addf %617, %619 : vector<1x256xf32>
    %c118 = arith.constant 118 : index
    %621 = memref.load %arg3[%c118] : memref<152xf32, #tpu.memory_space<smem>>
    %622 = vector.broadcast %621 : f32 to vector<1x256xf32>
    %623 = arith.mulf %471, %622 : vector<1x256xf32>
    %c119 = arith.constant 119 : index
    %624 = memref.load %arg3[%c119] : memref<152xf32, #tpu.memory_space<smem>>
    %625 = vector.broadcast %624 : f32 to vector<1x256xf32>
    %626 = arith.mulf %487, %625 : vector<1x256xf32>
    %627 = arith.addf %623, %626 : vector<1x256xf32>
    %c120 = arith.constant 120 : index
    %628 = memref.load %arg3[%c120] : memref<152xf32, #tpu.memory_space<smem>>
    %629 = vector.broadcast %628 : f32 to vector<1x256xf32>
    %630 = arith.mulf %503, %629 : vector<1x256xf32>
    %631 = arith.addf %627, %630 : vector<1x256xf32>
    %c121 = arith.constant 121 : index
    %632 = memref.load %arg3[%c121] : memref<152xf32, #tpu.memory_space<smem>>
    %633 = vector.broadcast %632 : f32 to vector<1x256xf32>
    %634 = arith.mulf %519, %633 : vector<1x256xf32>
    %635 = arith.addf %631, %634 : vector<1x256xf32>
    %c122 = arith.constant 122 : index
    %636 = memref.load %arg3[%c122] : memref<152xf32, #tpu.memory_space<smem>>
    %637 = vector.broadcast %636 : f32 to vector<1x256xf32>
    %638 = arith.mulf %535, %637 : vector<1x256xf32>
    %639 = arith.addf %635, %638 : vector<1x256xf32>
    %c123 = arith.constant 123 : index
    %640 = memref.load %arg3[%c123] : memref<152xf32, #tpu.memory_space<smem>>
    %641 = vector.broadcast %640 : f32 to vector<1x256xf32>
    %642 = arith.mulf %551, %641 : vector<1x256xf32>
    %643 = arith.addf %639, %642 : vector<1x256xf32>
    %c124 = arith.constant 124 : index
    %644 = memref.load %arg3[%c124] : memref<152xf32, #tpu.memory_space<smem>>
    %645 = vector.broadcast %644 : f32 to vector<1x256xf32>
    %646 = arith.mulf %567, %645 : vector<1x256xf32>
    %647 = arith.addf %643, %646 : vector<1x256xf32>
    %c125 = arith.constant 125 : index
    %648 = memref.load %arg3[%c125] : memref<152xf32, #tpu.memory_space<smem>>
    %649 = vector.broadcast %648 : f32 to vector<1x256xf32>
    %650 = arith.mulf %583, %649 : vector<1x256xf32>
    %651 = arith.addf %647, %650 : vector<1x256xf32>
    %c127 = arith.constant 127 : index
    %652 = memref.load %arg3[%c127] : memref<152xf32, #tpu.memory_space<smem>>
    %653 = vector.broadcast %652 : f32 to vector<1x256xf32>
    %654 = arith.mulf %651, %653 : vector<1x256xf32>
    %c129 = arith.constant 129 : index
    %655 = memref.load %arg3[%c129] : memref<152xf32, #tpu.memory_space<smem>>
    %656 = vector.broadcast %655 : f32 to vector<1x256xf32>
    %657 = arith.addf %654, %656 : vector<1x256xf32>
    %c134 = arith.constant 134 : index
    %658 = memref.load %arg3[%c134] : memref<152xf32, #tpu.memory_space<smem>>
    %659 = vector.broadcast %658 : f32 to vector<1x256xf32>
    %660 = arith.mulf %620, %659 : vector<1x256xf32>
    %c17_i32_101 = arith.constant 17 : i32
    %661 = tpu.dynamic_rotate %620 by %c17_i32_101 dim 1 : vector<1x256xf32>, i32 -> vector<1x256xf32>
    %662 = arith.mulf %661, %1 : vector<1x256xf32>
    %c130 = arith.constant 130 : index
    %663 = memref.load %arg3[%c130] : memref<152xf32, #tpu.memory_space<smem>>
    %664 = vector.broadcast %663 : f32 to vector<1x256xf32>
    %665 = arith.mulf %662, %664 : vector<1x256xf32>
    %666 = arith.addf %660, %665 : vector<1x256xf32>
    %c16_i32_102 = arith.constant 16 : i32
    %667 = tpu.dynamic_rotate %620 by %c16_i32_102 dim 1 : vector<1x256xf32>, i32 -> vector<1x256xf32>
    %668 = arith.mulf %667, %3 : vector<1x256xf32>
    %c131 = arith.constant 131 : index
    %669 = memref.load %arg3[%c131] : memref<152xf32, #tpu.memory_space<smem>>
    %670 = vector.broadcast %669 : f32 to vector<1x256xf32>
    %671 = arith.mulf %668, %670 : vector<1x256xf32>
    %672 = arith.addf %666, %671 : vector<1x256xf32>
    %c15_i32_103 = arith.constant 15 : i32
    %673 = tpu.dynamic_rotate %620 by %c15_i32_103 dim 1 : vector<1x256xf32>, i32 -> vector<1x256xf32>
    %674 = arith.mulf %673, %5 : vector<1x256xf32>
    %c132 = arith.constant 132 : index
    %675 = memref.load %arg3[%c132] : memref<152xf32, #tpu.memory_space<smem>>
    %676 = vector.broadcast %675 : f32 to vector<1x256xf32>
    %677 = arith.mulf %674, %676 : vector<1x256xf32>
    %678 = arith.addf %672, %677 : vector<1x256xf32>
    %c1_i32_104 = arith.constant 1 : i32
    %679 = tpu.dynamic_rotate %620 by %c1_i32_104 dim 1 : vector<1x256xf32>, i32 -> vector<1x256xf32>
    %680 = arith.mulf %679, %7 : vector<1x256xf32>
    %c133 = arith.constant 133 : index
    %681 = memref.load %arg3[%c133] : memref<152xf32, #tpu.memory_space<smem>>
    %682 = vector.broadcast %681 : f32 to vector<1x256xf32>
    %683 = arith.mulf %680, %682 : vector<1x256xf32>
    %684 = arith.addf %678, %683 : vector<1x256xf32>
    %c255_i32_105 = arith.constant 255 : i32
    %685 = tpu.dynamic_rotate %620 by %c255_i32_105 dim 1 : vector<1x256xf32>, i32 -> vector<1x256xf32>
    %686 = arith.mulf %685, %9 : vector<1x256xf32>
    %c135 = arith.constant 135 : index
    %687 = memref.load %arg3[%c135] : memref<152xf32, #tpu.memory_space<smem>>
    %688 = vector.broadcast %687 : f32 to vector<1x256xf32>
    %689 = arith.mulf %686, %688 : vector<1x256xf32>
    %690 = arith.addf %684, %689 : vector<1x256xf32>
    %c241_i32_106 = arith.constant 241 : i32
    %691 = tpu.dynamic_rotate %620 by %c241_i32_106 dim 1 : vector<1x256xf32>, i32 -> vector<1x256xf32>
    %692 = arith.mulf %691, %11 : vector<1x256xf32>
    %c136 = arith.constant 136 : index
    %693 = memref.load %arg3[%c136] : memref<152xf32, #tpu.memory_space<smem>>
    %694 = vector.broadcast %693 : f32 to vector<1x256xf32>
    %695 = arith.mulf %692, %694 : vector<1x256xf32>
    %696 = arith.addf %690, %695 : vector<1x256xf32>
    %c240_i32_107 = arith.constant 240 : i32
    %697 = tpu.dynamic_rotate %620 by %c240_i32_107 dim 1 : vector<1x256xf32>, i32 -> vector<1x256xf32>
    %698 = arith.mulf %697, %13 : vector<1x256xf32>
    %c137 = arith.constant 137 : index
    %699 = memref.load %arg3[%c137] : memref<152xf32, #tpu.memory_space<smem>>
    %700 = vector.broadcast %699 : f32 to vector<1x256xf32>
    %701 = arith.mulf %698, %700 : vector<1x256xf32>
    %702 = arith.addf %696, %701 : vector<1x256xf32>
    %c239_i32_108 = arith.constant 239 : i32
    %703 = tpu.dynamic_rotate %620 by %c239_i32_108 dim 1 : vector<1x256xf32>, i32 -> vector<1x256xf32>
    %704 = arith.mulf %703, %15 : vector<1x256xf32>
    %c138 = arith.constant 138 : index
    %705 = memref.load %arg3[%c138] : memref<152xf32, #tpu.memory_space<smem>>
    %706 = vector.broadcast %705 : f32 to vector<1x256xf32>
    %707 = arith.mulf %704, %706 : vector<1x256xf32>
    %708 = arith.addf %702, %707 : vector<1x256xf32>
    %c148 = arith.constant 148 : index
    %709 = memref.load %arg3[%c148] : memref<152xf32, #tpu.memory_space<smem>>
    %710 = vector.broadcast %709 : f32 to vector<1x256xf32>
    %711 = arith.mulf %708, %710 : vector<1x256xf32>
    %c150 = arith.constant 150 : index
    %712 = memref.load %arg3[%c150] : memref<152xf32, #tpu.memory_space<smem>>
    %713 = vector.broadcast %712 : f32 to vector<1x256xf32>
    %714 = arith.addf %711, %713 : vector<1x256xf32>
    %c143 = arith.constant 143 : index
    %715 = memref.load %arg3[%c143] : memref<152xf32, #tpu.memory_space<smem>>
    %716 = vector.broadcast %715 : f32 to vector<1x256xf32>
    %717 = arith.mulf %657, %716 : vector<1x256xf32>
    %c17_i32_109 = arith.constant 17 : i32
    %718 = tpu.dynamic_rotate %657 by %c17_i32_109 dim 1 : vector<1x256xf32>, i32 -> vector<1x256xf32>
    %719 = arith.mulf %718, %1 : vector<1x256xf32>
    %c139 = arith.constant 139 : index
    %720 = memref.load %arg3[%c139] : memref<152xf32, #tpu.memory_space<smem>>
    %721 = vector.broadcast %720 : f32 to vector<1x256xf32>
    %722 = arith.mulf %719, %721 : vector<1x256xf32>
    %723 = arith.addf %717, %722 : vector<1x256xf32>
    %c16_i32_110 = arith.constant 16 : i32
    %724 = tpu.dynamic_rotate %657 by %c16_i32_110 dim 1 : vector<1x256xf32>, i32 -> vector<1x256xf32>
    %725 = arith.mulf %724, %3 : vector<1x256xf32>
    %c140 = arith.constant 140 : index
    %726 = memref.load %arg3[%c140] : memref<152xf32, #tpu.memory_space<smem>>
    %727 = vector.broadcast %726 : f32 to vector<1x256xf32>
    %728 = arith.mulf %725, %727 : vector<1x256xf32>
    %729 = arith.addf %723, %728 : vector<1x256xf32>
    %c15_i32_111 = arith.constant 15 : i32
    %730 = tpu.dynamic_rotate %657 by %c15_i32_111 dim 1 : vector<1x256xf32>, i32 -> vector<1x256xf32>
    %731 = arith.mulf %730, %5 : vector<1x256xf32>
    %c141 = arith.constant 141 : index
    %732 = memref.load %arg3[%c141] : memref<152xf32, #tpu.memory_space<smem>>
    %733 = vector.broadcast %732 : f32 to vector<1x256xf32>
    %734 = arith.mulf %731, %733 : vector<1x256xf32>
    %735 = arith.addf %729, %734 : vector<1x256xf32>
    %c1_i32_112 = arith.constant 1 : i32
    %736 = tpu.dynamic_rotate %657 by %c1_i32_112 dim 1 : vector<1x256xf32>, i32 -> vector<1x256xf32>
    %737 = arith.mulf %736, %7 : vector<1x256xf32>
    %c142 = arith.constant 142 : index
    %738 = memref.load %arg3[%c142] : memref<152xf32, #tpu.memory_space<smem>>
    %739 = vector.broadcast %738 : f32 to vector<1x256xf32>
    %740 = arith.mulf %737, %739 : vector<1x256xf32>
    %741 = arith.addf %735, %740 : vector<1x256xf32>
    %c255_i32_113 = arith.constant 255 : i32
    %742 = tpu.dynamic_rotate %657 by %c255_i32_113 dim 1 : vector<1x256xf32>, i32 -> vector<1x256xf32>
    %743 = arith.mulf %742, %9 : vector<1x256xf32>
    %c144 = arith.constant 144 : index
    %744 = memref.load %arg3[%c144] : memref<152xf32, #tpu.memory_space<smem>>
    %745 = vector.broadcast %744 : f32 to vector<1x256xf32>
    %746 = arith.mulf %743, %745 : vector<1x256xf32>
    %747 = arith.addf %741, %746 : vector<1x256xf32>
    %c241_i32_114 = arith.constant 241 : i32
    %748 = tpu.dynamic_rotate %657 by %c241_i32_114 dim 1 : vector<1x256xf32>, i32 -> vector<1x256xf32>
    %749 = arith.mulf %748, %11 : vector<1x256xf32>
    %c145 = arith.constant 145 : index
    %750 = memref.load %arg3[%c145] : memref<152xf32, #tpu.memory_space<smem>>
    %751 = vector.broadcast %750 : f32 to vector<1x256xf32>
    %752 = arith.mulf %749, %751 : vector<1x256xf32>
    %753 = arith.addf %747, %752 : vector<1x256xf32>
    %c240_i32_115 = arith.constant 240 : i32
    %754 = tpu.dynamic_rotate %657 by %c240_i32_115 dim 1 : vector<1x256xf32>, i32 -> vector<1x256xf32>
    %755 = arith.mulf %754, %13 : vector<1x256xf32>
    %c146 = arith.constant 146 : index
    %756 = memref.load %arg3[%c146] : memref<152xf32, #tpu.memory_space<smem>>
    %757 = vector.broadcast %756 : f32 to vector<1x256xf32>
    %758 = arith.mulf %755, %757 : vector<1x256xf32>
    %759 = arith.addf %753, %758 : vector<1x256xf32>
    %c239_i32_116 = arith.constant 239 : i32
    %760 = tpu.dynamic_rotate %657 by %c239_i32_116 dim 1 : vector<1x256xf32>, i32 -> vector<1x256xf32>
    %761 = arith.mulf %760, %15 : vector<1x256xf32>
    %c147 = arith.constant 147 : index
    %762 = memref.load %arg3[%c147] : memref<152xf32, #tpu.memory_space<smem>>
    %763 = vector.broadcast %762 : f32 to vector<1x256xf32>
    %764 = arith.mulf %761, %763 : vector<1x256xf32>
    %765 = arith.addf %759, %764 : vector<1x256xf32>
    %c149 = arith.constant 149 : index
    %766 = memref.load %arg3[%c149] : memref<152xf32, #tpu.memory_space<smem>>
    %767 = vector.broadcast %766 : f32 to vector<1x256xf32>
    %768 = arith.mulf %765, %767 : vector<1x256xf32>
    %c151 = arith.constant 151 : index
    %769 = memref.load %arg3[%c151] : memref<152xf32, #tpu.memory_space<smem>>
    %770 = vector.broadcast %769 : f32 to vector<1x256xf32>
    %771 = arith.addf %768, %770 : vector<1x256xf32>
    %772 = arith.addf %620, %17 : vector<1x256xf32>
    %c0_117 = arith.constant 0 : index
    %c0_118 = arith.constant 0 : index
    %c0_119 = arith.constant 0 : index
    %773 = vector.load %arg4[%c0_117, %c0_118, %c0_119] : memref<1x4x256xf32, #tpu.memory_space<vmem>>, vector<1x1x256xf32>
    %774 = vector.shape_cast %773 : vector<1x1x256xf32> to vector<1x256xf32>
    %775 = vector.shape_cast %772 : vector<1x256xf32> to vector<1x1x256xf32>
    tpu.vector_store %arg4[%c0_117, %c0_118, %c0_119], %775 {strides = array<i32>} : memref<1x4x256xf32, #tpu.memory_space<vmem>>, vector<1x1x256xf32>,
    %776 = arith.addf %657, %19 : vector<1x256xf32>
    %c0_120 = arith.constant 0 : index
    %c1_121 = arith.constant 1 : index
    %c0_122 = arith.constant 0 : index
    %777 = vector.load %arg4[%c0_120, %c1_121, %c0_122] : memref<1x4x256xf32, #tpu.memory_space<vmem>>, vector<1x1x256xf32>
    %778 = vector.shape_cast %777 : vector<1x1x256xf32> to vector<1x256xf32>
    %779 = vector.shape_cast %776 : vector<1x256xf32> to vector<1x1x256xf32>
    tpu.vector_store %arg4[%c0_120, %c1_121, %c0_122], %779 {strides = array<i32>} : memref<1x4x256xf32, #tpu.memory_space<vmem>>, vector<1x1x256xf32>,
    %780 = arith.addf %714, %21 : vector<1x256xf32>
    %c0_123 = arith.constant 0 : index
    %c2_124 = arith.constant 2 : index
    %c0_125 = arith.constant 0 : index
    %781 = vector.load %arg4[%c0_123, %c2_124, %c0_125] : memref<1x4x256xf32, #tpu.memory_space<vmem>>, vector<1x1x256xf32>
    %782 = vector.shape_cast %781 : vector<1x1x256xf32> to vector<1x256xf32>
    %783 = vector.shape_cast %780 : vector<1x256xf32> to vector<1x1x256xf32>
    tpu.vector_store %arg4[%c0_123, %c2_124, %c0_125], %783 {strides = array<i32>} : memref<1x4x256xf32, #tpu.memory_space<vmem>>, vector<1x1x256xf32>,
    %784 = arith.addf %771, %23 : vector<1x256xf32>
    %c0_126 = arith.constant 0 : index
    %c3_127 = arith.constant 3 : index
    %c0_128 = arith.constant 0 : index
    %785 = vector.load %arg4[%c0_126, %c3_127, %c0_128] : memref<1x4x256xf32, #tpu.memory_space<vmem>>, vector<1x1x256xf32>
    %786 = vector.shape_cast %785 : vector<1x1x256xf32> to vector<1x256xf32>
    %787 = vector.shape_cast %784 : vector<1x256xf32> to vector<1x1x256xf32>
    tpu.vector_store %arg4[%c0_126, %c3_127, %c0_128], %787 {strides = array<i32>} : memref<1x4x256xf32, #tpu.memory_space<vmem>>, vector<1x1x256xf32>,
    return
  }
  func.func @transform_0(%arg0: i32) -> (i32, i32, i32) {
    %c0_i32 = arith.constant 0 : i32
    %c0_i32_0 = arith.constant 0 : i32
    %c0_i32_1 = arith.constant 0 : i32
    return %arg0, %c0_i32, %c0_i32_0 : i32, i32, i32
  }
  func.func @transform_1(%arg0: i32) -> (i32, i32, i32) {
    %c0_i32 = arith.constant 0 : i32
    %c0_i32_0 = arith.constant 0 : i32
    %c0_i32_1 = arith.constant 0 : i32
    %c0_i32_2 = arith.constant 0 : i32
    return %c0_i32, %c0_i32_0, %c0_i32_1 : i32, i32, i32
  }
  func.func @transform_2(%arg0: i32) -> i32 {
    %c0_i32 = arith.constant 0 : i32
    %c0_i32_0 = arith.constant 0 : i32
    return %c0_i32 : i32
  }
  func.func @transform_3(%arg0: i32) -> (i32, i32, i32) {
    %c0_i32 = arith.constant 0 : i32
    %c0_i32_0 = arith.constant 0 : i32
    %c0_i32_1 = arith.constant 0 : i32
    return %arg0, %c0_i32, %c0_i32_0 : i32, i32, i32
  }
}

</mosaic_0001>

<bundles_post_ra>
// kernel: tpu_custom_call.1
= control target key start
LH: loop header
LB: loop body
LE: loop exit
PB: predicated region body
PF: predicated region fallthrough
CT: control target
= control target key end

     0   :  { %s3643_s0 = inlined_call_operand.hbm [shape: f32[2,4,256], index: 0, kind: input, shape index: {}]   ;;  %s3644_s1 = inlined_call_operand.hbm [shape: f32[9,1,256], index: 1, kind: input, shape index: {}]   ;;  %s3645_s2 = inlined_call_operand.hbm [shape: f32[152], index: 2, kind: input, shape index: {}]   ;;  %s3646_s3 = inlined_call_operand.hbm [shape: f32[2,4,256], index: 3, kind: output, shape index: {}]  }
   0x1   :  { %3693 = sst [smem:[#allocation32_spill]] %s3643_s0 }
   0x2   :  { %3694 = sst [smem:[#allocation33_spill]] %s3644_s1 }
   0x3   :  { %3695 = sst [smem:[#allocation34_spill]] %s3645_s2 }
   0x4   :  { %3696 = sst [smem:[#allocation35_spill]] %s3646_s3 }
   0x5   :  { %8 = vsyncpa [#allocation3], 0 }
   0x6   :  { %10 = vsyncpa [#allocation3 + $0x1], 0 }
   0x7   :  { %11 = vsyncpa [#allocation7], 0 }
   0x8   :  { %12 = vsyncpa [#allocation5], 0 }
   0x9   :  { %13 = vsyncpa [#allocation4], 0 }
   0xa   :  { %15 = vsyncpa [#allocation4 + $0x1], 0  ;;  %s2238_s12 = smov 0   ;;  %s2240_s13 = smov 0  }
   0xb   :  { %s2242_s14 = smov 0   ;;  %s2244_s15 = smov 0  }
   0xc LB: > { %3697 = sst [smem:[#allocation14_spill]] %s2192_s12  ;;  %s2262_s19 = sadd.s32 4294967295, %s2204_s15   ;;  %s2204_s15 = sphi %s2244_s15, %s3759_s15   ;;  %s2200_s14 = sphi %s2242_s14, %s3762_s14   ;;  %s2196_s13 = sphi %s2240_s13, %s3761_s13   ;;  %s2192_s12 = sphi %s2238_s12, %s3760_s12  }
   0xd   : > { %3698 = sst [smem:[#allocation15_spill]] %s2196_s13  ;;  %p1798_p0 = scmp.ge.s32.totalorder %s2204_s15, 1 }
   0xe   : > { %3699 = sst [smem:[#allocation16_spill]] %s2200_s14  ;;  %p42_p1 = scmp.eq.s32.totalorder %s2262_s19, 0 }
   0xf   : > { %3700 = sst [smem:[#allocation17_spill]] %s2204_s15  ;;  %p120_p2 = scmp.lt.s32.totalorder %s2204_s15, 3 }
  0x10   : > { %s3701_s1 = sld [smem:[#allocation33_spill]]  ;;  %s2206_s21 = smov [#allocation6]  }
  0x11   : > { %3702 = sst [smem:[#allocation18_spill]] %s2262_s19  ;;  %p2267_p3 = pnand %p1798_p0, %p120_p2 }
  0x12   : > { %s133_s22 = sshll.u32 %s2206_s21, 4  ;;  %s3704_s2 = sld [smem:[#allocation34_spill]]  ;;  %s134_s22 = int_to_ptr.vmem [resolvable:$true] %s133_s22 }
  0x13   : > { %p1986_p4 = pneg %p2267_p3  ;;  %s2207_s26 = smov 32  }
  0x14   : > { %s2208_s27 = smov 2   ;;  %s2209_s28 = smov [#allocation8]  }
  0x15   : > { %p1987_p6 = pnand %p1986_p4, %p42_p1  ;;  %s1797_s29 = sadd.s32 4294967294, %s2204_s15  }
  0x16   : > { %s131_s18 = sshll.u32 %s3701_s1, 4  ;;  %s2281_s30 = sadd.s32 1, %s2204_s15   ;;  %s132_s18 = int_to_ptr.hbm [resolvable:$true] %s131_s18 }
  0x17   : > { %1989 = dma.hbm_to_vmem [thread:$0]  (!%p1987_p6), %s132_s18, 288, %s134_s22, [#allocation7], %s2207_s26, %s2207_s26, %s2208_s27  }
  0x18   : > { %s146_s25 = sshll.u32 %s3704_s2, 4  ;;  %3705 = sst [smem:[#allocation19_spill]] %s2281_s30  ;;  %s147_s25 = int_to_ptr.hbm [resolvable:$true] %s146_s25 }
  0x19   : > { %1992 = dma.hbm_to_smem (!%p1987_p6), %s147_s25, 32, %s2209_s28, [#allocation5]  }
  0x1a   : > { %s25_s4 = ssub.s32 %s2204_s15, %s2281_s30  ;;  %s28_s5 = sadd.s32 1, %s2200_s14 }
  0x1b   : > { %p26_p7 = scmp.eq.s32.totalorder %s25_s4, 0  ;;  %p35_p8 = scmp.ne.s32.totalorder %s2200_s14, %s2196_s13 }
  0x1c   : > { %p36_p9 = scmp.eq.s32.totalorder %s2204_s15, 0  ;;  %p41_p10 = scmp.ne.s32.totalorder %s2196_s13, %s2192_s12 }
  0x1d   : > { %s2292_s6 = scalar_select %p26_p7, %s2200_s14, %s28_s5  }
  0x1e   : > { %p2294_p11 = por %p36_p9, %p35_p8  ;;  %p2300_p12 = por %p42_p1, %p41_p10 }
  0x1f   : > { %3706 = sst [smem:[#allocation20_spill]] %s2292_s6  ;;  %p107_p13 = scmp.eq.s32.totalorder %s2262_s19, 1 }
  0x20   : > { %p113_p0 = scmp.eq.s32.totalorder %s1797_s29, 1  ;;  %p2003_p2 = scmp.lt.s32.totalorder %s2204_s15, 2 }
  0x21   : > { %s157_s9 = sand.u32 1, %s2200_s14   ;;  %p2307_p4 = por %p107_p13, %p35_p8 }
  0x22   : > { %p2311_p6 = por %p113_p0, %p41_p10  ;;  %s1802_s16 = sshll.u32 %s157_s9, 3 }
  0x23   : > { %s3709_s10 = scalar_select %p2307_p4, 1, 0 }
  0x24   : > { %s3711_s11 = scalar_select %p2311_p6, 1, 0 }
  0x25   : > { %3710 = sst [smem:[#allocation21_spill]] %s3709_s10  ;;  %s1972_s17 = sshll.u32 %s2204_s15, 3 }
  0x26   : > { %3712 = sst [smem:[#allocation22_spill]] %s3711_s11  ;;  %s161_s23 = scalar_lea.vmem [#allocation2], %s1802_s16 }
  0x27   : > { %s3713_s0 = sld [smem:[#allocation32_spill]]  ;;  %s170_s24 = sshll.u32 %s161_s23, 4  ;;  %s171_s24 = int_to_ptr.vmem [resolvable:$true] %s170_s24 }
  0x28   : > { %p2321_p7 = pnand %p2003_p2, %p2294_p11  ;;  %s158_s27 = scalar_lea.sflag [#allocation3], %s157_s9 }
  0x2a   : > { %p2104_p9 = pneg %p2321_p7 }
  0x2d   : > { %s166_s22 = scalar_lea.hbm %s3713_s0, %s1972_s17  ;;  %s2107_s16 = scalar_lea.hbm %s3713_s0, 16 }
  0x2e   : > { %s168_s25 = sshll.u32 %s166_s22, 4  ;;  %s169_s25 = int_to_ptr.hbm [resolvable:$true] %s168_s25 }
  0x2f   : > { %s2100_s28 = sshra.s32 %s169_s25, 4  ;;  %s2101_s28 = int_to_ptr.hbm [resolvable:$true] %s2100_s28 }
  0x30   : > { %s2102_s29 = scalar_lea.hbm %s2101_s28, 8  ;;  %p2108_p11 = scmp.lt.s32.totalorder %s2101_s28, %s3713_s0 }
  0x31   : > { %p2103_p8 = scmp.ne.s32.totalorder %s2101_s28, %s2102_s29  ;;  %p2109_p0 = scmp.lt.s32.totalorder %s2107_s16, %s2102_s29 }
  0x33   : > { %p2105_p10 = pnand %p2104_p9, %p2103_p8  ;;  %p2110_p2 = por %p2109_p0, %p2108_p11 }
  0x35   : > { %p2106_p13 = pneg %p2105_p10 }
  0x37   : > { %p2111_p5 = pnand %p2110_p2, %p2106_p13 }
  0x39   : > { %2114 = shalt.err (!%p2111_p5)
}
  0x3a   : > { %1996 = dma.hbm_to_vmem [thread:$0]  (!%p2321_p7), %s169_s25, 128, %s171_s24, %s158_s27  }
  0x3b   : > { %179 = sbr.rel (%p2267_p3) target bundleno = 781 (0x30d), region = 32 }
  0x40   : > { %s2338_s9 = sand.u32 1, %s2196_s13  }
  0x41   : > { %3715 = sst [smem:[#allocation23_spill]] %s2338_s9  ;;  %s3663_s18 = sshll.u32 %s2338_s9, 3 }
  0x42   : > { %s182_s21 = scalar_lea.sflag [#allocation3], %s2338_s9  ;;  %s2344_s22 = scalar_lea.vmem [#allocation2], %s3663_s18 }
  0x43   : > { %3716 = sst [smem:[#allocation24_spill]] %s2344_s22 }
  0x44   : > { %2175 = dma.done.wait (%p2300_p12), %s182_s21, 128  }
  0x45   : > { %2177 = vsyncadd (%p2300_p12), %s182_s21, 4294967168 }
  0x46   : > { %2179 = dma.done.wait (%p42_p1), [#allocation7], 288  }
  0x47   : > { %2181 = vsyncadd (%p42_p1), [#allocation7], 4294967008 }
  0x48   : > { %2183 = dma.done.wait (%p42_p1), [#allocation5], 32  }
  0x49   : > { %2185 = vsyncadd (%p42_p1), [#allocation5], 4294967264 }
  0x4a   : > { %201 = sfence }
  0x4b   : > { %s242_s20 = sld [smem:[#allocation8]]  ;;  %v2359_v0 = vld [vmem:[%s2344_s22] ss:$4 sm:$0x3]  ;;  %s3661_s29 = smov 15   ;;  %vm361_vm3 = vcmask 1040384  }
  0x4c   : > { %s1813_s8 = sld [smem:[#allocation8 + $0x1]]  ;;  %v2362_v1 = vld [vmem:[%s2344_s22 + $0x1] ss:$4 sm:$0x3]  ;;  %s3664_s4 = smov 16  }
  0x4d   : > { %s1814_s23 = sld [smem:[#allocation8 + $0x2]]  ;;  %v2365_v2 = vld [vmem:[%s2344_s22 + $0x2] ss:$4 sm:$0x3]  ;;  %s3666_s5 = smov 17  }
  0x4e   : > { %s1815_s24 = sld [smem:[#allocation8 + $0x3]]  ;;  %v2368_v4 = vld [vmem:[%s2344_s22 + $0x3] ss:$4 sm:$0x3]  ;;  %s3657_s21 = smov 127  }
  0x4f   : > { %s1816_s25 = sld [smem:[#allocation8 + $0x10]] }
  0x50   : > { %s1817_s26 = sld [smem:[#allocation8 + $0x14]] }
  0x51   : > { %v243_v3 = vstv %s242_s20  ;;  %s1818_s27 = sld [smem:[#allocation8 + $0x4]]  ;;  %s3659_s20 = smov 1  }
  0x52   : > { %v244_v5 = vmul.f32 %v243_v3, %v2359_v0  ;;  %v246_v6 = vstv %s1813_s8  ;;  %s1819_s28 = sld [smem:[#allocation8 + $0x5]] }
  0x53   : > { %v247_v7 = vmul.f32 %v2362_v1, %v246_v6  ;;  %v250_v8 = vstv %s1814_s23  ;;  %s1820_s16 = sld [smem:[#allocation8 + $0x6]]  ;;  %s3655_s23 = smov 113  }
  0x54   : > { %v251_v9 = vmul.f32 %v2365_v2, %v250_v8  ;;  %v254_v10 = vstv %s1815_s24  ;;  %s1821_s17 = sld [smem:[#allocation8 + $0x7]]  ;;  %s3651_s24 = smov 111  }
  0x55   : > { %v248_v11 = vadd.f32 %v247_v7, %v244_v5  ;;  %v255_v12 = vmul.f32 %v2368_v4, %v254_v10  ;;  %v258_v14 = vstv %s1816_s25  ;;  %s1822_s7 = sld [smem:[#allocation8 + $0x11]]  ;;  %s3653_s25 = smov 112  }
  0x56   : > { %v261_v16 = vstv %s1817_s26  ;;  %s1823_s8 = sld [smem:[#allocation8 + $0x15]] }
  0x57   : > { %v252_v13 = vadd.f32 %v251_v9, %v248_v11  ;;  %v265_v22 = vstv %s1818_s27  ;;  %s1824_s26 = sld [smem:[#allocation8 + $0x8]] }
  0x58   : > { %v268_v23 = vstv %s1819_s28  ;;  %v266_v24 = vmul.f32 %v265_v22, %v2359_v0  ;;  %s1825_s27 = sld [smem:[#allocation8 + $0x9]] }
  0x59   : > { %v256_v15 = vadd.f32 %v255_v12, %v252_v13  ;;  %v269_v25 = vmul.f32 %v2362_v1, %v268_v23  ;;  %v272_v26 = vstv %s1820_s16  ;;  %s1826_s28 = sld [smem:[#allocation8 + $0xa]]  ;;  %v224_v23 = vld [vmem:[#allocation6 + $0x4] sm:$0x3] }
  0x5a   : > { %v273_v28 = vmul.f32 %v2365_v2, %v272_v26  ;;  %v276_v29 = vstv %s1821_s17  ;;  %s1827_s16 = sld [smem:[#allocation8 + $0xb]]  ;;  %v2524_v26 = vperm.slane %v224_v23, 1 }
  0x5b   : > { %v259_v17 = vmul.f32 %v258_v14, %v256_v15  ;;  %v270_v27 = vadd.f32 %v269_v25, %v266_v24  ;;  %v277_v31 = vmul.f32 %v2368_v4, %v276_v29  ;;  %v280_v33 = vstv %s1822_s7  ;;  %s1828_s17 = sld [smem:[#allocation8 + $0x12]]  ;;  %v222_v24 = vld [vmem:[#allocation6 + $0x2] sm:$0x3]  ;;  %v220_v25 = vld [vmem:[#allocation6] sm:$0x3] }
  0x5c   : > { %v283_v35 = vstv %s1823_s8  ;;  %s1830_s7 = sld [smem:[#allocation8 + $0xc]]  ;;  %v3647_v15 = vlaneseq  ;;  %v2538_v29 = vperm.slane %v220_v25, 0 }
  0x5d   : > { %v262_v18 = vadd.f32 %v261_v16, %v259_v17  ;;  %v274_v30 = vadd.f32 %v273_v28, %v270_v27  ;;  %v287_v40 = vstv %s1824_s26  ;;  %s1831_s8 = sld [smem:[#allocation8 + $0xd]]  ;;  %v2533_v28 = vperm.slane %v222_v24, 1 }
  0x5e   : > { %v290_v41 = vstv %s1825_s27  ;;  %v288_v42 = vmul.f32 %v287_v40, %v2359_v0  ;;  %s1829_s26 = sld [smem:[#allocation8 + $0x16]]  ;;  %v2511_v16 = vand.u32 127, %v3647_v15 }
  0x5f   : > { %v2374_v19 = vmax.f32 %v262_v18, 0.0  ;;  %v278_v32 = vadd.f32 %v277_v31, %v274_v30  ;;  %v291_v43 = vmul.f32 %v2362_v1, %v290_v41  ;;  %v294_v44 = vstv %s1826_s28  ;;  %s1832_s27 = sld [smem:[#allocation8 + $0xe]] }
  0x60   : > { %v295_v46 = vmul.f32 %v2365_v2, %v294_v44  ;;  %v298_v47 = vstv %s1827_s16  ;;  %s1833_s28 = sld [smem:[#allocation8 + $0xf]]  ;;  %vm393_vm0 = vcmp.lt.s32.totalorder %v2511_v16, 15  ;;  %vm369_vm1 = vcmp.lt.s32.totalorder %v2511_v16, 16 }
  0x61   : > { %3717 = vst [vmem:[#allocation25_spill] sm:$0xff] %v2374_v19  ;;  %v2377_v20 = vperm.slane %v2374_v19, 0  ;;  %v2386_v21 = vperm.slane %v2374_v19, 1  ;;  %v281_v34 = vmul.f32 %v280_v33, %v278_v32  ;;  %v292_v45 = vadd.f32 %v291_v43, %v288_v42  ;;  %s1834_s16 = sld [smem:[#allocation8 + $0x13]] }
  0x62   : > { %v299_v49 = vmul.f32 %v2368_v4, %v298_v47  ;;  %v302_v51 = vstv %s1828_s17  ;;  %v309_v52 = vstv %s1830_s7  ;;  %s1835_s17 = sld [smem:[#allocation8 + $0x17]]  ;;  %vm344_vm2 = vcmp.lt.s32.totalorder %v2511_v16, 17 }
  0x63   : > { %389 = vrot.lane.b32.xlu2 %v2377_v20, %s3661_s29  ;;  %365 = vrot.lane.b32.xlu1 %v2377_v20, %s3664_s4  ;;  %v284_v36 = vadd.f32 %v283_v35, %v281_v34  ;;  %v296_v48 = vadd.f32 %v295_v46, %v292_v45  ;;  %v312_v53 = vstv %s1831_s8  ;;  %v310_v55 = vmul.f32 %v309_v52, %v2359_v0  ;;  %s2513_s7 = sld [smem:[#allocation8 + $0x1a]] }
  0x64   : > { %338 = vrot.lane.b32.xlu0 %v2377_v20, %s3666_s5  ;;  %v313_v56 = vmul.f32 %v2362_v1, %v312_v53  ;;  %v305_v57 = vstv %s1829_s26  ;;  %s2515_s8 = sld [smem:[#allocation8 + $0x19]]  ;;  %v2540_v30 = vperm.slane %v220_v25, 1  ;;  %v2543_v32 = vperm.slane %v224_v23, 0 }
  0x65   : > { %v2414_v37 = vmax.f32 %v284_v36, 0.0  ;;  %v300_v50 = vadd.f32 %v299_v49, %v296_v48  ;;  %v316_v58 = vstv %s1832_s27  ;;  %s2519_s26 = sld [smem:[#allocation8 + $0x18]]  ;;  %v2546_v35 = vperm.slane %v222_v24, 0 }
  0x66   : > { %v314_v60 = vadd.f32 %v313_v56, %v310_v55  ;;  %v317_v61 = vmul.f32 %v2365_v2, %v316_v58  ;;  %v320_v62 = vstv %s1833_s28  ;;  %s2522_s27 = sld [smem:[#allocation8 + $0x1c]]  ;;  %vm417_vm4 = vcmp.lt.s32.totalorder %v2511_v16, 1 }
  0x67   : > { %v2419_v38 = vperm.slane %v2414_v37, 1  ;;  %v2422_v39 = vperm.slane %v2414_v37, 0  ;;  %v303_v54 = vmul.f32 %v302_v51, %v300_v50  ;;  %v321_v1 = vmul.f32 %v2368_v4, %v320_v62  ;;  %s2602_s28 = sld [smem:[#allocation8 + $0x1b]] }
  0x68   : > { %v318_v0 = vadd.f32 %v317_v61, %v314_v60  ;;  %v324_v5 = vstv %s1834_s16  ;;  %v327_v4 = vstv %s1835_s17  ;;  %s2611_s16 = sld [smem:[#allocation8 + $0x1d]]  ;;  %vm441_vm5 = vcmp.lt.s32.totalorder %v2511_v16, 127 }
  0x69   : > { %v306_v59 = vadd.f32 %v305_v57, %v303_v54  ;;  %v404_v31 = vstv %s2513_s7  ;;  %s2619_s17 = sld [smem:[#allocation8 + $0x1e]]  ;;  %vm465_vm6 = vcmp.lt.s32.totalorder %v2511_v16, 113  ;;  %vm489_vm7 = vcmp.lt.s32.totalorder %v2511_v16, 112 }
  0x6a   : > { %v322_v2 = vadd.f32 %v321_v1, %v318_v0  ;;  %v380_v33 = vstv %s2515_s8  ;;  %s2632_s7 = sld [smem:[#allocation8 + $0x1f]]  ;;  %vm513_vm8 = vcmp.lt.s32.totalorder %v2511_v16, 111 }
  0x6b   : > { %391 = vrot.lane.b32.xlu2 %v2386_v21, %s3661_s29  ;;  %367 = vrot.lane.b32.xlu1 %v2386_v21, %s3664_s4  ;;  %v2459_v63 = vmax.f32 %v306_v59, 0.0  ;;  %v355_v43 = vstv %s2519_s26  ;;  %s2639_s8 = sld [smem:[#allocation8 + $0x21]] }
  0x6c   : > { %340 = vrot.lane.b32.xlu0 %v2386_v21, %s3666_s5  ;;  %v325_v6 = vmul.f32 %v324_v5, %v322_v2  ;;  %v331_v49 = vstv %s2522_s27  ;;  %s2653_s26 = sld [smem:[#allocation8 + $0x20]] }
  0x6d   : > { %v2465_v3 = vperm.slane %v2459_v63, 0  ;;  %v2474_v7 = vperm.slane %v2459_v63, 1  ;;  %v332_v57 = vmul.f32 %v331_v49, %v2374_v19  ;;  %s2676_s27 = sld [smem:[#allocation8 + $0x22]] }
  0x6e   : > { %v328_v8 = vadd.f32 %v327_v4, %v325_v6  ;;  %s3136_s18 = sld [smem:[#allocation8 + $0x52]] }
  0x6f   : > { %s3142_s0 = sld [smem:[#allocation8 + $0x53]] }
  0x70   : > { %v2480_v9 = vmax.f32 %v328_v8, 0.0  ;;  %s3144_s1 = sld [smem:[#allocation8 + $0x55]] }
  0x71   : > { %s3146_s2 = sld [smem:[#allocation8 + $0x56]] }
  0x72   : > { %3718 = vst [vmem:[#allocation26_spill] sm:$0xff] %v2480_v9  ;;  %v2485_v11 = vperm.slane %v2480_v9, 1  ;;  %v2488_v12 = vperm.slane %v2480_v9, 0  ;;  %s3150_s6 = sld [smem:[#allocation8 + $0x57]] }
  0x73   : > { %437 = vrot.lane.b32.xlu2 %v2377_v20, %s3657_s21  ;;  %415 = vrot.lane.b32.xlu1 %v2386_v21, %s3659_s20  ;;  %s3154_s14 = sld [smem:[#allocation8 + $0x66]] }
  0x74   : > { %413 = vrot.lane.b32.xlu0 %v2377_v20, %s3659_s20  ;;  %s3156_s13 = sld [smem:[#allocation8 + $0x58]] }
  0x75   : > { %s3158_s30 = sld [smem:[#allocation8 + $0x59]] }
  0x76   : > { %s3171_s15 = sld [smem:[#allocation8 + $0x5c]] }
  0x77   : > { %s3178_s11 = sld [smem:[#allocation8 + $0x5e]] }
  0x78   : > { %s3182_s12 = sld [smem:[#allocation8 + $0x6a]] }
  0x79   : > { %s3188_s10 = sld [smem:[#allocation8 + $0x61]] }
  0x7a   : > { %s3191_s3 = sld [smem:[#allocation8 + $0x6b]] }
  0x7b   : > { %463 = vrot.lane.b32.xlu2 %v2386_v21, %s3655_s23  ;;  %461 = vrot.lane.b32.xlu1 %v2377_v20, %s3655_s23  ;;  %s3194_s19 = sld [smem:[#allocation8 + $0x62]] }
  0x7c   : > { %439 = vrot.lane.b32.xlu0 %v2386_v21, %s3657_s21  ;;  %s3206_s9 = sld [smem:[#allocation8 + $0x6d]] }
  0x7d   : > { %s3208_s22 = sld [smem:[#allocation8 + $0x6e]] }
  0x83   : > { %509 = vrot.lane.b32.xlu2 %v2377_v20, %s3651_s24  ;;  %487 = vrot.lane.b32.xlu1 %v2386_v21, %s3653_s25 }
  0x84   : > { %485 = vrot.lane.b32.xlu0 %v2377_v20, %s3653_s25 }
  0x8b   : > { %550 = vrot.lane.b32.xlu2 %v2419_v38, %s3666_s5  ;;  %548 = vrot.lane.b32.xlu1 %v2422_v39, %s3666_s5 }
  0x8c   : > { %511 = vrot.lane.b32.xlu0 %v2386_v21, %s3651_s24 }
  0x93   : > { %584 = vrot.lane.b32.xlu2 %v2422_v39, %s3661_s29  ;;  %568 = vrot.lane.b32.xlu1 %v2419_v38, %s3664_s4 }
  0x94   : > { %566 = vrot.lane.b32.xlu0 %v2422_v39, %s3664_s4 }
  0x9b   : > { %604 = vrot.lane.b32.xlu2 %v2419_v38, %s3659_s20  ;;  %602 = vrot.lane.b32.xlu1 %v2422_v39, %s3659_s20 }
  0x9c   : > { %586 = vrot.lane.b32.xlu0 %v2419_v38, %s3661_s29 }
  0xa3   : > { %638 = vrot.lane.b32.xlu2 %v2422_v39, %s3655_s23  ;;  %622 = vrot.lane.b32.xlu1 %v2419_v38, %s3657_s21 }
  0xa4   : > { %620 = vrot.lane.b32.xlu0 %v2422_v39, %s3657_s21 }
  0xab   : > { %658 = vrot.lane.b32.xlu2 %v2419_v38, %s3653_s25  ;;  %656 = vrot.lane.b32.xlu1 %v2422_v39, %s3653_s25 }
  0xac   : > { %640 = vrot.lane.b32.xlu0 %v2419_v38, %s3655_s23 }
  0xb3   : > { %707 = vrot.lane.b32.xlu2 %v2465_v3, %s3666_s5  ;;  %676 = vrot.lane.b32.xlu1 %v2419_v38, %s3651_s24 }
  0xb4   : > { %674 = vrot.lane.b32.xlu0 %v2422_v39, %s3651_s24 }
  0xbb   : > { %727 = vrot.lane.b32.xlu2 %v2474_v7, %s3664_s4  ;;  %725 = vrot.lane.b32.xlu1 %v2465_v3, %s3664_s4 }
  0xbc   : > { %709 = vrot.lane.b32.xlu0 %v2474_v7, %s3666_s5 }
  0xbd   : > { %v390_v10 = vpop.permute.xlu2 %389 }
  0xc3   : > { %743 = vrot.lane.b32.xlu2 %v2465_v3, %s3661_s29  ;;  %868 = vrot.lane.b32.xlu1 %v2485_v11, %s3666_s5 }
  0xc4   : > { %866 = vrot.lane.b32.xlu0 %v2488_v12, %s3666_s5  ;;  %s3140_s5 = sld [smem:[#allocation8 + $0x54]] }
  0xc5   : > { %v392_v13 = vpop.permute.xlu2 %391 }
  0xc6   : > { %v394_v27 = vsel %vm393_vm0, %v390_v10, %v392_v13  ;;  %v395_v40 = vsel %vm393_vm0, %v392_v13, %v390_v10 }
  0xc7   : > { %v402_v41 = vmul.f32 %v2524_v26, %v394_v27  ;;  %v401_v53 = vmul.f32 %v2543_v32, %v395_v40 }
  0xc9   : > { %v406_v54 = vmul.f32 %v404_v31, %v402_v41  ;;  %v405_v0 = vmul.f32 %v404_v31, %v401_v53 }
  0xcb   : > { %886 = vrot.lane.b32.xlu2 %v2485_v11, %s3664_s4  ;;  %884 = vrot.lane.b32.xlu1 %v2488_v12, %s3664_s4  ;;  %v409_v1 = vrot.slane %v406_v54, 7  ;;  %s3138_s4 = sld [smem:[#allocation8 + $0x4b]] }
  0xcc   : > { %745 = vrot.lane.b32.xlu0 %v2474_v7, %s3661_s29 }
  0xcd   : > { %v2502_v14 = vpop.permute.xlu2 %437  ;;  %v410_v13 = vsel %vm361_vm3, %v405_v0, %v409_v1  ;;  %v476_v0 = vstv %s2619_s17  ;;  %s2726_s17 = sld [smem:[#allocation8 + $0x24]] }
  0xd3   : > { %902 = vrot.lane.b32.xlu2 %v2488_v12, %s3661_s29  ;;  %763 = vrot.lane.b32.xlu1 %v2474_v7, %s3659_s20 }
  0xd4   : > { %761 = vrot.lane.b32.xlu0 %v2465_v3, %s3659_s20 }
  0xd5   : > { %v366_v17 = vpop.permute.xlu1 %365  ;;  %v2517_v18 = vpop.permute.xlu2 %463 }
  0xd6   : > { %v339_v22 = vpop.permute.xlu0 %338 }
  0xdb   : > { %781 = vrot.lane.b32.xlu2 %v2474_v7, %s3657_s21  ;;  %779 = vrot.lane.b32.xlu1 %v2465_v3, %s3657_s21 }
  0xdc   : > { %904 = vrot.lane.b32.xlu0 %v2485_v11, %s3661_s29  ;;  %s3134_s29 = sld [smem:[#allocation8 + $0x4a]] }
  0xdd   : > { %v368_v34 = vpop.permute.xlu1 %367  ;;  %v2548_v36 = vpop.permute.xlu2 %509 }
  0xde   : > { %v370_v42 = vsel %vm369_vm1, %v366_v17, %v368_v34  ;;  %v341_v44 = vpop.permute.xlu0 %340  ;;  %v371_v45 = vsel %vm369_vm1, %v368_v34, %v366_v17  ;;  %v228_v34 = vld [vmem:[#allocation6 + $0xa] sm:$0x3] }
  0xdf   : > { %v378_v46 = vmul.f32 %v2533_v28, %v370_v42  ;;  %v345_v47 = vsel %vm344_vm2, %v339_v22, %v341_v44  ;;  %v346_v48 = vsel %vm344_vm2, %v341_v44, %v339_v22  ;;  %v377_v55 = vmul.f32 %v2546_v35, %v371_v45  ;;  %v230_v45 = vld [vmem:[#allocation6 + $0xc] sm:$0x3] }
  0xe0   : > { %v352_v50 = vmul.f32 %v2538_v29, %v346_v48  ;;  %v353_v51 = vmul.f32 %v2540_v30, %v345_v47  ;;  %v232_v48 = vld [vmem:[#allocation6 + $0xe] sm:$0x3]  ;;  %v2667_v1 = vperm.slane %v228_v34, 0 }
  0xe1   : > { %v382_v52 = vmul.f32 %v380_v33, %v378_v46  ;;  %v381_v2 = vmul.f32 %v380_v33, %v377_v55  ;;  %v226_v33 = vld [vmem:[#allocation6 + $0x6] sm:$0x3]  ;;  %v2626_v46 = vperm.slane %v228_v34, 1  ;;  %v2651_v55 = vperm.slane %v232_v48, 1 }
  0xe2   : > { %v357_v56 = vmul.f32 %v355_v43, %v353_v51  ;;  %v356_v59 = vmul.f32 %v355_v43, %v352_v50  ;;  %v2617_v42 = vperm.slane %v226_v33, 1  ;;  %v428_v50 = vstv %s2602_s28  ;;  %s2699_s28 = sld [smem:[#allocation8 + $0x23]] }
  0xe3   : > { %797 = vrot.lane.b32.xlu2 %v2465_v3, %s3655_s23  ;;  %922 = vrot.lane.b32.xlu1 %v2485_v11, %s3659_s20  ;;  %v385_v58 = vrot.slane %v382_v52, 7  ;;  %v2637_v51 = vperm.slane %v230_v45, 1  ;;  %v2645_v52 = vperm.slane %v226_v33, 0  ;;  %3719 = vst [vmem:[#allocation27_spill] sm:$0xff] %v2651_v55 }
  0xe4   : > { %v360_v60 = vrot.slane %v357_v56, 7  ;;  %920 = vrot.lane.b32.xlu0 %v2488_v12, %s3659_s20  ;;  %s3132_s20 = sld [smem:[#allocation8 + $0x51]] }
  0xe5   : > { %v416_v61 = vpop.permute.xlu1 %415  ;;  %v2575_v62 = vpop.permute.xlu2 %550  ;;  %v386_v8 = vsel %vm361_vm3, %v381_v2, %v385_v58  ;;  %v234_v2 = vld [vmem:[#allocation6 + $0x10] sm:$0x3] }
  0xe6   : > { %v362_v5 = vsel %vm361_vm3, %v356_v59, %v360_v60  ;;  %v414_v6 = vpop.permute.xlu0 %413 }
  0xe7   : > { %v364_v4 = vadd.f32 %v362_v5, %v332_v57  ;;  %v418_v44 = vsel %vm417_vm4, %v414_v6, %v416_v61  ;;  %v419_v56 = vsel %vm417_vm4, %v416_v61, %v414_v6  ;;  %v452_v57 = vstv %s2611_s16  ;;  %s2707_s16 = sld [smem:[#allocation8 + $0x25]] }
  0xe8   : > { %v426_v49 = vmul.f32 %v2617_v42, %v418_v44  ;;  %v500_v44 = vstv %s2632_s7  ;;  %s2739_s7 = sld [smem:[#allocation8 + $0x26]] }
  0xe9   : > { %v388_v10 = vadd.f32 %v386_v8, %v364_v4  ;;  %v2669_v4 = vperm.slane %v230_v45, 0  ;;  %v2686_v45 = vperm.slane %v232_v48, 0 }
  0xea   : > { %v430_v60 = vmul.f32 %v428_v50, %v426_v49 }
  0xeb   : > { %v2580_v17 = vadd.f32 %v410_v13, %v388_v10  ;;  %940 = vrot.lane.b32.xlu2 %v2485_v11, %s3657_s21  ;;  %938 = vrot.lane.b32.xlu1 %v2488_v12, %s3657_s21  ;;  %3720 = vst [vmem:[#allocation28_spill] sm:$0xff] %v2669_v4  ;;  %v425_v10 = vmul.f32 %v2645_v52, %v419_v56  ;;  %s3130_s21 = sld [smem:[#allocation8 + $0x49]] }
  0xec   : > { %799 = vrot.lane.b32.xlu0 %v2474_v7, %s3655_s23  ;;  %3721 = vst [vmem:[#allocation29_spill] sm:$0xff] %v2686_v45 }
  0xed   : > { %v462_v22 = vpop.permute.xlu1 %461  ;;  %v2588_v23 = vpop.permute.xlu2 %584  ;;  %v429_v56 = vmul.f32 %v428_v50, %v425_v10 }
  0xee   : > { %v440_v24 = vpop.permute.xlu0 %439  ;;  %v467_v53 = vsel %vm465_vm6, %v2517_v18, %v462_v22  ;;  %v466_v13 = vsel %vm465_vm6, %v462_v22, %v2517_v18 }
  0xef   : > { %v443_v47 = vsel %vm441_vm5, %v440_v24, %v2502_v14  ;;  %v474_v8 = vmul.f32 %v2637_v51, %v467_v53  ;;  %v442_v61 = vsel %vm441_vm5, %v2502_v14, %v440_v24  ;;  %v2688_v14 = vperm.slane %v234_v2, 1 }
  0xf0   : > { %v450_v54 = vmul.f32 %v2626_v46, %v443_v47  ;;  %v433_v24 = vrot.slane %v430_v60, 7  ;;  %v449_v47 = vmul.f32 %v2667_v1, %v442_v61  ;;  %v473_v22 = vmul.f32 %v2669_v4, %v466_v13 }
  0xf1   : > { %3722 = vst [vmem:[#allocation30_spill] sm:$0xff] %v2688_v14  ;;  %v478_v48 = vmul.f32 %v476_v0, %v474_v8  ;;  %v524_v61 = vstv %s2653_s26  ;;  %v2713_v13 = vperm.slane %v234_v2, 0  ;;  %s2760_s26 = sld [smem:[#allocation8 + $0x28]] }
  0xf2   : > { %v454_v33 = vmul.f32 %v452_v57, %v450_v54  ;;  %v557_v54 = vstv %s2639_s8  ;;  %v434_v50 = vsel %vm361_vm3, %v429_v56, %v433_v24  ;;  %v453_v10 = vmul.f32 %v452_v57, %v449_v47  ;;  %s2755_s8 = sld [smem:[#allocation8 + $0x3c]] }
  0xf3   : > { %956 = vrot.lane.b32.xlu2 %v2488_v12, %s3655_s23  ;;  %817 = vrot.lane.b32.xlu1 %v2474_v7, %s3653_s25  ;;  %3723 = vst [vmem:[#allocation31_spill] sm:$0xff] %v2713_v13  ;;  %v477_v2 = vmul.f32 %v476_v0, %v473_v22  ;;  %v481_v19 = vrot.slane %v478_v48, 7 }
  0xf4   : > { %815 = vrot.lane.b32.xlu0 %v2465_v3, %s3653_s25 }
  0xf5   : > { %v2596_v25 = vpop.permute.xlu1 %487  ;;  %v2598_v27 = vpop.permute.xlu2 %604 }
  0xf6   : > { %v2600_v31 = vpop.permute.xlu0 %485 }
  0xf7   : > { %v491_v58 = vsel %vm489_vm7, %v2596_v25, %v2600_v31  ;;  %v490_v53 = vsel %vm489_vm7, %v2600_v31, %v2596_v25 }
  0xf8   : > { %v498_v34 = vmul.f32 %v2651_v55, %v491_v58  ;;  %v457_v58 = vrot.slane %v454_v33, 7  ;;  %v497_v33 = vmul.f32 %v2686_v45, %v490_v53 }
  0xfa   : > { %v502_v60 = vmul.f32 %v500_v44, %v498_v34  ;;  %v458_v57 = vsel %vm361_vm3, %v453_v10, %v457_v58  ;;  %v501_v56 = vmul.f32 %v500_v44, %v497_v33  ;;  %v593_v58 = vstv %s2699_s28  ;;  %s2778_s28 = sld [smem:[#allocation8 + $0x40]] }
  0xfb   : > { %835 = vrot.lane.b32.xlu2 %v2474_v7, %s3651_s24  ;;  %833 = vrot.lane.b32.xlu1 %v2465_v3, %s3651_s24 }
  0xfc   : > { %958 = vrot.lane.b32.xlu0 %v2485_v11, %s3655_s23  ;;  %v505_v24 = vrot.slane %v502_v60, 7  ;;  %s3128_s23 = sld [smem:[#allocation8 + $0x50]] }
  0xfd   : > { %v2613_v40 = vpop.permute.xlu1 %548  ;;  %v2615_v41 = vpop.permute.xlu2 %638 }
  0xfe   : > { %v2622_v43 = vpop.permute.xlu0 %511  ;;  %v552_v49 = vsel %vm344_vm2, %v2613_v40, %v2575_v62  ;;  %v553_v34 = vsel %vm344_vm2, %v2575_v62, %v2613_v40  ;;  %v436_v40 = vadd.f32 %v434_v50, %v2580_v17  ;;  %v482_v17 = vsel %vm361_vm3, %v477_v2, %v481_v19 }
  0xff   : > { %v515_v18 = vsel %vm513_vm8, %v2622_v43, %v2548_v36  ;;  %v555_v15 = vmul.f32 %v552_v49, %v2540_v30  ;;  %v514_v47 = vsel %vm513_vm8, %v2548_v36, %v2622_v43  ;;  %v554_v0 = vmul.f32 %v553_v34, %v2538_v29 }
 0x100   : > { %v522_v8 = vmul.f32 %v2688_v14, %v515_v18  ;;  %v575_v18 = vstv %s2676_s27  ;;  %v460_v10 = vadd.f32 %v458_v57, %v436_v40  ;;  %v521_v36 = vmul.f32 %v2713_v13, %v514_v47  ;;  %s2773_s27 = sld [smem:[#allocation8 + $0x27]] }
 0x101   : > { %v559_v22 = vmul.f32 %v557_v54, %v555_v15 }
 0x102   : > { %v526_v48 = vmul.f32 %v524_v61, %v522_v8  ;;  %v506_v8 = vsel %vm361_vm3, %v501_v56, %v505_v24  ;;  %v484_v24 = vadd.f32 %v482_v17, %v460_v10  ;;  %v525_v47 = vmul.f32 %v524_v61, %v521_v36 }
 0x103   : > { %992 = vrot.lane.b32.xlu2 %v2488_v12, %s3651_s24  ;;  %976 = vrot.lane.b32.xlu1 %v2485_v11, %s3653_s25  ;;  %v562_v50 = vrot.slane %v559_v22, 7  ;;  %v629_v61 = vstv %s2739_s7  ;;  %s1857_s7 = sld [smem:[#allocation8 + $0x41]] }
 0x104   : > { %974 = vrot.lane.b32.xlu0 %v2488_v12, %s3653_s25  ;;  %v529_v33 = vrot.slane %v526_v48, 7  ;;  %s2929_s25 = sld [smem:[#allocation8 + $0x36]] }
 0x105   : > { %v2664_v59 = vpop.permute.xlu1 %568  ;;  %v2678_v6 = vpop.permute.xlu2 %658 }
 0x106   : > { %v567_v5 = vpop.permute.xlu0 %566 }
 0x107   : > { %v570_v25 = vsel %vm369_vm1, %v567_v5, %v2664_v59  ;;  %v571_v43 = vsel %vm369_vm1, %v2664_v59, %v567_v5 }
 0x108   : > { %v573_v62 = vmul.f32 %v570_v25, %v2533_v28  ;;  %v541_v25 = vstv %s2707_s16  ;;  %v572_v34 = vmul.f32 %v571_v43, %v2546_v35  ;;  %s2786_s16 = sld [smem:[#allocation8 + $0x29]] }
 0x10a   : > { %v577_v44 = vmul.f32 %v575_v18, %v573_v62  ;;  %v611_v62 = vstv %s2726_s17  ;;  %s2823_s17 = sld [smem:[#allocation8 + $0x3d]] }
 0x10c   : > { %994 = vrot.lane.b32.xlu0 %v2485_v11, %s3651_s24  ;;  %v580_v40 = vrot.slane %v577_v44, 7  ;;  %s2924_s24 = sld [smem:[#allocation8 + $0x35]] }
 0x10d   : > { %v603_v31 = vpop.permute.xlu1 %602  ;;  %v2741_v53 = vpop.permute.xlu2 %707 }
 0x10e   : > { %v587_v49 = vpop.permute.xlu0 %586  ;;  %v606_v15 = vsel %vm417_vm4, %v603_v31, %v2598_v27  ;;  %v607_v19 = vsel %vm417_vm4, %v2598_v27, %v603_v31  ;;  %v508_v27 = vadd.f32 %v506_v8, %v484_v24  ;;  %v530_v31 = vsel %vm361_vm3, %v525_v47, %v529_v33 }
 0x10f   : > { %v588_v9 = vsel %vm393_vm0, %v2588_v23, %v587_v49  ;;  %v589_v59 = vsel %vm393_vm0, %v587_v49, %v2588_v23  ;;  %v609_v2 = vmul.f32 %v606_v15, %v2617_v42  ;;  %v542_v49 = vmul.f32 %v541_v25, %v2414_v37 }
 0x110   : > { %v591_v60 = vmul.f32 %v588_v9, %v2524_v26  ;;  %v558_v9 = vmul.f32 %v557_v54, %v554_v0  ;;  %v590_v0 = vmul.f32 %v589_v59, %v2543_v32  ;;  %v608_v48 = vmul.f32 %v607_v19, %v2645_v52 }
 0x111   : > { %v613_v10 = vmul.f32 %v611_v62, %v609_v2  ;;  %v532_v17 = vadd.f32 %v530_v31, %v508_v27  ;;  %v665_v19 = vstv %s2760_s26  ;;  %s2867_s26 = sld [smem:[#allocation8 + $0x2b]] }
 0x112   : > { %v595_v57 = vmul.f32 %v593_v58, %v591_v60  ;;  %v563_v56 = vsel %vm361_vm3, %v558_v9, %v562_v50  ;;  %v576_v60 = vmul.f32 %v575_v18, %v572_v34  ;;  %v594_v25 = vmul.f32 %v593_v58, %v590_v0 }
 0x113   : > { %v565_v33 = vadd.f32 %v563_v56, %v542_v49  ;;  %v612_v59 = vmul.f32 %v611_v62, %v608_v48  ;;  %v534_v18 = vstv %s2755_s8  ;;  %v616_v50 = vrot.slane %v613_v10, 7  ;;  %s2865_s8 = sld [smem:[#allocation8 + $0x2a]] }
 0x114   : > { %v598_v36 = vrot.slane %v595_v57, 7  ;;  %v581_v8 = vsel %vm361_vm3, %v576_v60, %v580_v40  ;;  %v535_v40 = vmul.f32 %v534_v18, %v532_v17 }
 0x115   : > { %v623_v5 = vpop.permute.xlu1 %622  ;;  %v2783_v15 = vpop.permute.xlu2 %727  ;;  %v583_v57 = vadd.f32 %v581_v8, %v565_v33  ;;  %v617_v31 = vsel %vm361_vm3, %v612_v59, %v616_v50 }
 0x116   : > { %v621_v54 = vpop.permute.xlu0 %620  ;;  %v599_v34 = vsel %vm361_vm3, %v594_v25, %v598_v36 }
 0x117   : > { %v625_v23 = vsel %vm441_vm5, %v623_v5, %v621_v54  ;;  %v624_v43 = vsel %vm441_vm5, %v621_v54, %v623_v5  ;;  %v601_v0 = vadd.f32 %v599_v34, %v583_v57  ;;  %v1017_v34 = vsel %vm361_vm3, %v2377_v20, 0.0 }
 0x118   : > { %v627_v22 = vmul.f32 %v625_v23, %v2626_v46  ;;  %v626_v5 = vmul.f32 %v624_v43, %v2667_v1  ;;  %v647_v23 = vstv %s2773_s27  ;;  %v683_v43 = vstv %s2786_s16  ;;  %s2878_s27 = sld [smem:[#allocation8 + $0x2e]] }
 0x119   : > { %v619_v8 = vadd.f32 %v617_v31, %v601_v0  ;;  %v1036_v31 = vsel %vm361_vm3, %v2485_v11, 0.0  ;;  %s2886_s16 = sld [smem:[#allocation8 + $0x37]] }
 0x11a   : > { %v631_v44 = vmul.f32 %v629_v61, %v627_v22  ;;  %v630_v48 = vmul.f32 %v629_v61, %v626_v5  ;;  %v1018_v5 = vsel %vm361_vm3, %v2386_v21, 0.0 }
 0x11c   : > { %v634_v62 = vrot.slane %v631_v44, 7 }
 0x11d   : > { %v657_v9 = vpop.permute.xlu1 %656  ;;  %v2817_v59 = vpop.permute.xlu2 %743 }
 0x11e   : > { %v661_v2 = vsel %vm489_vm7, %v2678_v6, %v657_v9  ;;  %v641_v58 = vpop.permute.xlu0 %640  ;;  %v660_v54 = vsel %vm489_vm7, %v657_v9, %v2678_v6  ;;  %v537_v6 = vstv %s2778_s28  ;;  %v635_v36 = vsel %vm361_vm3, %v630_v48, %v634_v62  ;;  %s2883_s28 = sld [smem:[#allocation8 + $0x33]] }
 0x11f   : > { %v663_v24 = vmul.f32 %v661_v2, %v2651_v55  ;;  %v642_v47 = vsel %vm465_vm6, %v2615_v41, %v641_v58  ;;  %v643_v49 = vsel %vm465_vm6, %v641_v58, %v2615_v41  ;;  %v662_v56 = vmul.f32 %v660_v54, %v2686_v45 }
 0x120   : > { %v644_v22 = vmul.f32 %v642_v47, %v2669_v4  ;;  %v645_v27 = vmul.f32 %v643_v49, %v2637_v51  ;;  %v1023_v41 = vsel %vm361_vm3, %v2422_v39, 0.0  ;;  %v538_v17 = vadd.f32 %v537_v6, %v535_v40 }
 0x121   : > { %v667_v60 = vmul.f32 %v665_v19, %v663_v24  ;;  %v1024_v9 = vsel %vm361_vm3, %v2419_v38, 0.0  ;;  %v666_v61 = vmul.f32 %v665_v19, %v662_v56  ;;  %v637_v39 = vadd.f32 %v635_v36, %v619_v8 }
 0x122   : > { %v649_v10 = vmul.f32 %v647_v23, %v645_v27  ;;  %v648_v25 = vmul.f32 %v647_v23, %v644_v22  ;;  %v1025_v54 = vadd.f32 %v1024_v9, %v1023_v41  ;;  %v2832_v20 = vmax.f32 %v538_v17, 0.0 }
 0x123   : > { %v670_v18 = vrot.slane %v667_v60, 7  ;;  %v1019_v24 = vadd.f32 %v1018_v5, %v1017_v34  ;;  %v1035_v6 = vsel %vm361_vm3, %v2488_v12, 0.0  ;;  %v693_v60 = vstv %s2823_s17  ;;  %s2889_s17 = sld [smem:[#allocation8 + $0x2c]] }
 0x124   : > { %v652_v44 = vrot.slane %v649_v10, 7  ;;  %v1042_v40 = vperm.slane %v2832_v20, 0  ;;  %v1043_v0 = vperm.slane %v2832_v20, 1  ;;  %v1029_v36 = vsel %vm361_vm3, %v2465_v3, 0.0 }
 0x125   : > { %v677_v33 = vpop.permute.xlu1 %676  ;;  %v671_v47 = vsel %vm361_vm3, %v666_v61, %v670_v18  ;;  %v2847_v41 = vpop.permute.xlu2 %886  ;;  %v1037_v17 = vadd.f32 %v1036_v31, %v1035_v6 }
 0x126   : > { %v675_v50 = vpop.permute.xlu0 %674  ;;  %v653_v2 = vsel %vm361_vm3, %v648_v25, %v652_v44  ;;  %v1046_v8 = vsel %vm361_vm3, %v1042_v40, 0.0  ;;  %v1047_v12 = vsel %vm361_vm3, %v1043_v0, 0.0  ;;  %v696_v25 = vstv %s1857_s7  ;;  %s2899_s7 = sld [smem:[#allocation8 + $0x2d]] }
 0x127   : > { %v678_v58 = vsel %vm513_vm8, %v675_v50, %v677_v33  ;;  %v679_v38 = vsel %vm513_vm8, %v677_v33, %v675_v50  ;;  %v655_v21 = vadd.f32 %v653_v2, %v637_v39  ;;  %v1048_v33 = vadd.f32 %v1047_v12, %v1046_v8 }
 0x128   : > { %v680_v19 = vmul.f32 %v678_v58, %v2713_v13  ;;  %v681_v57 = vmul.f32 %v679_v38, %v2688_v14  ;;  %v716_v40 = vstv %s2865_s8  ;;  %s2903_s8 = sld [smem:[#allocation8 + $0x34]]  ;;  %v700_v8 = vstv %s2878_s27 }
 0x129   : > { %v673_v22 = vadd.f32 %v671_v47, %v655_v21  ;;  %s2932_s27 = sld [smem:[#allocation8 + $0x30]] }
 0x12a   : > { %v685_v62 = vmul.f32 %v683_v43, %v681_v57  ;;  %v684_v23 = vmul.f32 %v683_v43, %v680_v19  ;;  %v1030_v43 = vsel %vm361_vm3, %v2474_v7, 0.0 }
 0x12b   : > { %v1031_v44 = vadd.f32 %v1030_v43, %v1029_v36 }
 0x12c   : > { %v688_v49 = vrot.slane %v685_v62, 7  ;;  %1026 = vadd.xlane.f32.xlu2 %v1025_v54 }
 0x12d   : > { %v726_v27 = vpop.permute.xlu1 %725  ;;  %1020 = vadd.xlane.f32.xlu1 %v1019_v24  ;;  %v2858_v5 = vpop.permute.xlu2 %902 }
 0x12e   : > { %v689_v48 = vsel %vm361_vm3, %v684_v23, %v688_v49  ;;  %v710_v56 = vpop.permute.xlu0 %709  ;;  %v729_v23 = vsel %vm369_vm1, %v726_v27, %v2783_v15  ;;  %v730_v6 = vsel %vm369_vm1, %v2783_v15, %v726_v27 }
 0x12f   : > { %v691_v10 = vadd.f32 %v689_v48, %v673_v22  ;;  %v711_v62 = vsel %vm344_vm2, %v2741_v53, %v710_v56  ;;  %v732_v0 = vmul.f32 %v729_v23, %v2533_v28  ;;  %v734_v22 = vstv %s2867_s26  ;;  %s2910_s26 = sld [smem:[#allocation8 + $0x2f]] }
 0x130   : > { %v714_v49 = vmul.f32 %v711_v62, %v2540_v30  ;;  %v712_v31 = vsel %vm344_vm2, %v710_v56, %v2741_v53  ;;  %v731_v53 = vmul.f32 %v730_v6, %v2546_v35  ;;  %v3724_v62 = vld [vmem:[#allocation26_spill] sm:$0xff] }
 0x131   : > { %v694_v11 = vmul.f32 %v693_v60, %v691_v10  ;;  %v736_v56 = vmul.f32 %v734_v22, %v732_v0  ;;  %v713_v36 = vmul.f32 %v712_v31, %v2538_v29  ;;  %v770_v0 = vstv %s2899_s7  ;;  %s3017_s7 = sld [smem:[#allocation8 + $0x39]] }
 0x132   : > { %v718_v60 = vmul.f32 %v716_v40, %v714_v49 }
 0x133   : > { %v697_v9 = vadd.f32 %v696_v25, %v694_v11  ;;  %v859_v25 = vstv %s2886_s16  ;;  %s2983_s16 = sld [smem:[#allocation8 + $0x32]] }
 0x134   : > { %1038 = vadd.xlane.f32.xlu2 %v1037_v17  ;;  %v721_v12 = vrot.slane %v718_v60, 7  ;;  %v860_v23 = vmul.f32 %v859_v25, %v3724_v62 }
 0x135   : > { %v2851_v61 = vpop.permute.xlu1 %868  ;;  %1049 = vadd.xlane.f32.xlu1 %v1048_v33  ;;  %v2853_v3 = vmax.f32 %v697_v9, 0.0  ;;  %v2863_v19 = vpop.permute.xlu2 %781  ;;  %v752_v33 = vstv %s2889_s17  ;;  %s3010_s17 = sld [smem:[#allocation8 + $0x38]] }
 0x136   : > { %1032 = vadd.xlane.f32.xlu0 %v1031_v44  ;;  %v867_v7 = vpop.permute.xlu0 %866  ;;  %v875_v44 = vstv %s2883_s28  ;;  %s2954_s28 = sld [smem:[#allocation8 + $0x31]] }
 0x137   : > { %v1053_v18 = vperm.slane %v2853_v3, 0  ;;  %v1054_v50 = vperm.slane %v2853_v3, 1  ;;  %v870_v15 = vsel %vm344_vm2, %v867_v7, %v2851_v61  ;;  %v871_v49 = vsel %vm344_vm2, %v2851_v61, %v867_v7 }
 0x138   : > { %v873_v11 = vmul.f32 %v870_v15, %v2540_v30  ;;  %v788_v7 = vstv %s2910_s26  ;;  %s3025_s26 = sld [smem:[#allocation8 + $0x3e]] }
 0x139   : > { %v1057_v34 = vsel %vm361_vm3, %v1053_v18, 0.0  ;;  %v1058_v39 = vsel %vm361_vm3, %v1054_v50, 0.0  ;;  %v735_v18 = vmul.f32 %v734_v22, %v731_v53  ;;  %v739_v50 = vrot.slane %v736_v56, 7 }
 0x13a   : > { %v1059_v2 = vadd.f32 %v1058_v39, %v1057_v34  ;;  %v717_v34 = vmul.f32 %v716_v40, %v713_v36  ;;  %v877_v31 = vmul.f32 %v875_v44, %v873_v11  ;;  %v893_v53 = vstv %s2903_s8  ;;  %s3021_s8 = sld [smem:[#allocation8 + $0x3a]] }
 0x13b   : > { %v740_v36 = vsel %vm361_vm3, %v735_v18, %v739_v50 }
 0x13c   : > { %1060 = vadd.xlane.f32.xlu2 %v1059_v2  ;;  %v701_v2 = vmul.f32 %v700_v8, %v2459_v63  ;;  %v722_v22 = vsel %vm361_vm3, %v717_v34, %v721_v12  ;;  %v880_v25 = vrot.slane %v877_v31, 7 }
 0x13d   : > { %v2861_v58 = vpop.permute.xlu1 %884  ;;  %v2871_v24 = vpop.permute.xlu2 %797 }
 0x13e   : > { %v746_v38 = vpop.permute.xlu0 %745  ;;  %v889_v50 = vsel %vm369_vm1, %v2847_v41, %v2861_v58 }
 0x13f   : > { %v747_v43 = vsel %vm393_vm0, %v2817_v59, %v746_v38  ;;  %v748_v40 = vsel %vm393_vm0, %v746_v38, %v2817_v59  ;;  %v872_v59 = vmul.f32 %v871_v49, %v2538_v29 }
 0x140   : > { %v750_v9 = vmul.f32 %v747_v43, %v2524_v26 }
 0x141   : > { %v876_v49 = vmul.f32 %v875_v44, %v872_v59 }
 0x142   : > { %v754_v56 = vmul.f32 %v752_v33, %v750_v9 }
 0x144   : > { %v757_v34 = vrot.slane %v754_v56, 7 }
 0x145   : > { %v764_v57 = vpop.permute.xlu1 %763  ;;  %v2912_v27 = vpop.permute.xlu2 %940 }
 0x146   : > { %v762_v54 = vpop.permute.xlu0 %761 }
 0x147   : > { %v765_v17 = vsel %vm417_vm4, %v762_v54, %v764_v57  ;;  %v766_v61 = vsel %vm417_vm4, %v764_v57, %v762_v54  ;;  %v888_v57 = vsel %vm369_vm1, %v2861_v58, %v2847_v41  ;;  %v749_v54 = vmul.f32 %v748_v40, %v2543_v32 }
 0x148   : > { %v768_v39 = vmul.f32 %v765_v17, %v2617_v42  ;;  %v724_v17 = vadd.f32 %v722_v22, %v701_v2  ;;  %v767_v11 = vmul.f32 %v766_v61, %v2645_v52  ;;  %v891_v22 = vmul.f32 %v888_v57, %v2533_v28 }
 0x149   : > { %v806_v40 = vstv %s2932_s27  ;;  %v881_v41 = vsel %vm361_vm3, %v876_v49, %v880_v25  ;;  %v890_v58 = vmul.f32 %v889_v50, %v2546_v35  ;;  %v824_v57 = vstv %s2954_s28  ;;  %s3039_s27 = sld [smem:[#allocation8 + $0x42]] }
 0x14a   : > { %v772_v38 = vmul.f32 %v770_v0, %v768_v39  ;;  %v929_v39 = vstv %s2929_s25  ;;  %v771_v56 = vmul.f32 %v770_v0, %v767_v11  ;;  %v3004_v11 = vadd.f32 %v881_v41, %v860_v23  ;;  %s3067_s28 = sld [smem:[#allocation8 + $0x3b]] }
 0x14b   : > { %v894_v50 = vmul.f32 %v893_v53, %v890_v58  ;;  %s1879_s25 = sld [smem:[#allocation8 + $0x43]] }
 0x14c   : > { %v775_v31 = vrot.slane %v772_v38, 7 }
 0x14d   : > { %v2869_v21 = vpop.permute.xlu1 %779  ;;  %v2967_v12 = vpop.permute.xlu2 %956 }
 0x14e   : > { %v2873_v47 = vpop.permute.xlu0 %904  ;;  %v784_v60 = vsel %vm441_vm5, %v2863_v19, %v2869_v21  ;;  %v783_v9 = vsel %vm441_vm5, %v2869_v21, %v2863_v19  ;;  %v753_v19 = vmul.f32 %v752_v33, %v749_v54 }
 0x14f   : > { %v786_v8 = vmul.f32 %v784_v60, %v2626_v46  ;;  %v742_v60 = vadd.f32 %v740_v36, %v724_v17  ;;  %v785_v21 = vmul.f32 %v783_v9, %v2667_v1  ;;  %v895_v36 = vmul.f32 %v893_v53, %v891_v22 }
 0x150   : > { %v758_v38 = vsel %vm361_vm3, %v753_v19, %v757_v34  ;;  %v776_v17 = vsel %vm361_vm3, %v771_v56, %v775_v31  ;;  %v907_v34 = vsel %vm393_vm0, %v2873_v47, %v2858_v5  ;;  %v842_v19 = vstv %s2983_s16  ;;  %s3110_s16 = sld [smem:[#allocation8 + $0x45]] }
 0x151   : > { %v790_v61 = vmul.f32 %v788_v7, %v786_v8  ;;  %v789_v8 = vmul.f32 %v788_v7, %v785_v21  ;;  %v760_v9 = vadd.f32 %v758_v38, %v742_v60  ;;  %v898_v22 = vrot.slane %v895_v36, 7 }
 0x152   : > { %v908_v41 = vmul.f32 %v907_v34, %v2543_v32 }
 0x153   : > { %v793_v25 = vrot.slane %v790_v61, 7  ;;  %v778_v31 = vadd.f32 %v776_v17, %v760_v9  ;;  %v3725_v17 = vstv %s2924_s24  ;;  %v899_v9 = vsel %vm361_vm3, %v894_v50, %v898_v22  ;;  %s1878_s24 = sld [smem:[#allocation8 + $0x3f]] }
 0x154   : > { %v965_v22 = vstv %s3017_s7  ;;  %s3114_s7 = sld [smem:[#allocation8 + $0x44]] }
 0x155   : > { %v2901_v48 = vpop.permute.xlu1 %922  ;;  %v836_v23 = vpop.permute.xlu2 %835  ;;  %v794_v53 = vsel %vm361_vm3, %v789_v8, %v793_v25 }
 0x156   : > { %v2905_v10 = vpop.permute.xlu0 %920  ;;  %v796_v36 = vadd.f32 %v794_v53, %v778_v31 }
 0x15d   : > { %v2940_v6 = vpop.permute.xlu1 %938 }
 0x15e   : > { %v800_v15 = vpop.permute.xlu0 %799  ;;  %v943_v58 = vsel %vm441_vm5, %v2912_v27, %v2940_v6 }
 0x15f   : > { %v802_v43 = vsel %vm465_vm6, %v800_v15, %v2871_v24  ;;  %v801_v44 = vsel %vm465_vm6, %v2871_v24, %v800_v15  ;;  %v906_v24 = vsel %vm393_vm0, %v2858_v5, %v2873_v47 }
 0x160   : > { %v804_v2 = vmul.f32 %v802_v43, %v2637_v51  ;;  %v803_v15 = vmul.f32 %v801_v44, %v2669_v4  ;;  %v909_v60 = vmul.f32 %v906_v24, %v2524_v26 }
 0x162   : > { %v808_v43 = vmul.f32 %v806_v40, %v804_v2  ;;  %v807_v61 = vmul.f32 %v806_v40, %v803_v15 }
 0x164   : > { %v811_v2 = vrot.slane %v808_v43, 7 }
 0x165   : > { %v818_v18 = vpop.permute.xlu1 %817 }
 0x166   : > { %v816_v59 = vpop.permute.xlu0 %815 }
 0x167   : > { %v820_v33 = vsel %vm489_vm7, %v818_v18, %v816_v59  ;;  %v819_v54 = vsel %vm489_vm7, %v816_v59, %v818_v18  ;;  %v924_v18 = vsel %vm417_vm4, %v2905_v10, %v2901_v48  ;;  %v812_v59 = vsel %vm361_vm3, %v807_v61, %v811_v2 }
 0x168   : > { %v822_v0 = vmul.f32 %v820_v33, %v2651_v55  ;;  %v821_v49 = vmul.f32 %v819_v54, %v2686_v45  ;;  %v927_v21 = vmul.f32 %v924_v18, %v2617_v42  ;;  %v913_v54 = vmul.f32 %v3725_v17, %v909_v60 }
 0x169   : > { %v947_v18 = vstv %s3010_s17  ;;  %v814_v34 = vadd.f32 %v812_v59, %v796_v36  ;;  %v983_v61 = vstv %s3021_s8  ;;  %s3112_s17 = sld [smem:[#allocation8 + $0x4d]] }
 0x16a   : > { %v826_v7 = vmul.f32 %v824_v57, %v822_v0  ;;  %v825_v38 = vmul.f32 %v824_v57, %v821_v49  ;;  %v925_v0 = vsel %vm417_vm4, %v2901_v48, %v2905_v10  ;;  %v931_v57 = vmul.f32 %v929_v39, %v927_v21  ;;  %s3116_s8 = sld [smem:[#allocation8 + $0x4c]] }
 0x16b   : > { %v926_v48 = vmul.f32 %v925_v0, %v2645_v52  ;;  %v942_v10 = vsel %vm441_vm5, %v2940_v6, %v2912_v27  ;;  %v916_v60 = vrot.slane %v913_v54, 7  ;;  %v901_v54 = vadd.f32 %v899_v9, %v3004_v11 }
 0x16c   : > { %v829_v5 = vrot.slane %v826_v7, 7  ;;  %v945_v7 = vmul.f32 %v943_v58, %v2626_v46  ;;  %v944_v27 = vmul.f32 %v942_v10, %v2667_v1 }
 0x16d   : > { %v834_v47 = vpop.permute.xlu1 %833 }
 0x16e   : > { %v837_v56 = vsel %vm513_vm8, %v834_v47, %v836_v23  ;;  %v838_v44 = vsel %vm513_vm8, %v836_v23, %v834_v47  ;;  %v959_v40 = vpop.permute.xlu0 %958  ;;  %v830_v25 = vsel %vm361_vm3, %v825_v38, %v829_v5  ;;  %v3726_v23 = vmov %v3725_v17 }
 0x16f   : > { %v839_v43 = vmul.f32 %v837_v56, %v2713_v13  ;;  %v840_v33 = vmul.f32 %v838_v44, %v2688_v14  ;;  %v961_v8 = vsel %vm465_vm6, %v959_v40, %v2967_v12  ;;  %v912_v31 = vmul.f32 %v3726_v23, %v908_v41 }
 0x170   : > { %v963_v49 = vmul.f32 %v961_v8, %v2637_v51  ;;  %v832_v50 = vadd.f32 %v830_v25, %v814_v34  ;;  %v852_v5 = vstv %s3025_s26  ;;  %v949_v6 = vmul.f32 %v947_v18, %v945_v7  ;;  %v993_v7 = vpop.permute.xlu2 %992  ;;  %s3118_s26 = sld [smem:[#allocation8 + $0x47]] }
 0x171   : > { %v843_v24 = vmul.f32 %v842_v19, %v839_v43  ;;  %v844_v15 = vmul.f32 %v842_v19, %v840_v33  ;;  %v934_v19 = vrot.slane %v931_v57, 7  ;;  %v960_v41 = vsel %vm465_vm6, %v2967_v12, %v959_v40 }
 0x172   : > { %v930_v56 = vmul.f32 %v929_v39, %v926_v48  ;;  %v967_v44 = vmul.f32 %v965_v22, %v963_v49  ;;  %v855_v38 = vstv %s3039_s27  ;;  %v917_v43 = vsel %vm361_vm3, %v912_v31, %v916_v60  ;;  %s3120_s27 = sld [smem:[#allocation8 + $0x4f]] }
 0x173   : > { %v847_v2 = vrot.slane %v844_v15, 7  ;;  %v962_v39 = vmul.f32 %v960_v41, %v2669_v4  ;;  %v948_v40 = vmul.f32 %v947_v18, %v944_v27  ;;  %v952_v0 = vrot.slane %v949_v6, 7 }
 0x174   : > { %v935_v12 = vsel %vm361_vm3, %v930_v56, %v934_v19  ;;  %v919_v25 = vadd.f32 %v917_v43, %v901_v54 }
 0x175   : > { %v848_v53 = vsel %vm361_vm3, %v843_v24, %v847_v2  ;;  %v977_v21 = vpop.permute.xlu1 %976  ;;  %v970_v24 = vrot.slane %v967_v44, 7  ;;  %v966_v10 = vmul.f32 %v965_v22, %v962_v39  ;;  %v1001_v2 = vstv %s3067_s28  ;;  %s3122_s28 = sld [smem:[#allocation8 + $0x46]] }
 0x176   : > { %v850_v47 = vadd.f32 %v848_v53, %v832_v50  ;;  %v975_v58 = vpop.permute.xlu0 %974  ;;  %v937_v48 = vadd.f32 %v935_v12, %v919_v25  ;;  %v953_v11 = vsel %vm361_vm3, %v948_v40, %v952_v0 }
 0x177   : > { %v979_v59 = vsel %vm489_vm7, %v977_v21, %v975_v58  ;;  %v978_v33 = vsel %vm489_vm7, %v975_v58, %v977_v21  ;;  %v971_v31 = vsel %vm361_vm3, %v966_v10, %v970_v24 }
 0x178   : > { %v981_v36 = vmul.f32 %v979_v59, %v2651_v55  ;;  %v853_v17 = vmul.f32 %v852_v5, %v850_v47  ;;  %v980_v15 = vmul.f32 %v978_v33, %v2686_v45  ;;  %v955_v27 = vadd.f32 %v953_v11, %v937_v48 }
 0x179   : > { %v1014_v33 = vstv %s1879_s25  ;;  %s3126_s25 = sld [smem:[#allocation8 + $0x48]]  ;;  %v1086_v48 = vstv %s3114_s7  ;;  %v1121_v11 = vstv %s3116_s8 }
 0x17a   : > { %v985_v8 = vmul.f32 %v983_v61, %v981_v36  ;;  %v856_v57 = vadd.f32 %v855_v38, %v853_v17  ;;  %v984_v60 = vmul.f32 %v983_v61, %v980_v15  ;;  %v973_v41 = vadd.f32 %v971_v31, %v955_v27  ;;  %s3166_s7 = sld [smem:[#allocation8 + $0x5b]] }
 0x17b   : > { %v1011_v38 = vstv %s1878_s24  ;;  %s3124_s24 = sld [smem:[#allocation8 + $0x4e]]  ;;  %v1097_v27 = vstv %s3118_s26 }
 0x17c   : > { %v3087_v34 = vmax.f32 %v856_v57, 0.0  ;;  %v988_v9 = vrot.slane %v985_v8, 7  ;;  %s3168_s8 = sld [smem:[#allocation8 + $0x68]] }
 0x17d   : > { %s3180_s26 = sld [smem:[#allocation8 + $0x5f]] }
 0x17e   : > { %v995_v49 = vpop.permute.xlu0 %994  ;;  %v1064_v23 = vperm.slane %v3087_v34, 0  ;;  %v1065_v18 = vperm.slane %v3087_v34, 1  ;;  %v989_v47 = vsel %vm361_vm3, %v984_v60, %v988_v9 }
 0x17f   : > { %v996_v50 = vsel %vm513_vm8, %v993_v7, %v995_v49  ;;  %v997_v19 = vsel %vm513_vm8, %v995_v49, %v993_v7  ;;  %v991_v44 = vadd.f32 %v989_v47, %v973_v41  ;;  %v1089_v7 = vstv %s3110_s16  ;;  %s3161_s16 = sld [smem:[#allocation8 + $0x67]] }
 0x180   : > { %v998_v22 = vmul.f32 %v996_v50, %v2713_v13  ;;  %v999_v53 = vmul.f32 %v997_v19, %v2688_v14  ;;  %v1068_v21 = vsel %vm361_vm3, %v1064_v23, 0.0  ;;  %v1069_v5 = vsel %vm361_vm3, %v1065_v18, 0.0 }
 0x181   : > { %v1070_v6 = vadd.f32 %v1069_v5, %v1068_v21  ;;  %v1093_v50 = vstv %s3122_s28  ;;  %v1128_v19 = vstv %s3124_s24  ;;  %v1132_v47 = vstv %s3120_s27  ;;  %s3174_s28 = sld [smem:[#allocation8 + $0x5d]] }
 0x182   : > { %v1003_v61 = vmul.f32 %v1001_v2, %v999_v53  ;;  %v1002_v58 = vmul.f32 %v1001_v2, %v998_v22  ;;  %v1124_v2 = vstv %s3112_s17  ;;  %s3164_s17 = sld [smem:[#allocation8 + $0x5a]] }
 0x183   : > { %1071 = vadd.xlane.f32.xlu0 %v1070_v6  ;;  %s3176_s24 = sld [smem:[#allocation8 + $0x69]] }
 0x184   : > { %v1006_v56 = vrot.slane %v1003_v61, 7  ;;  %s3185_s27 = sld [smem:[#allocation8 + $0x60]] }
 0x186   : > { %v1007_v59 = vsel %vm361_vm3, %v1002_v58, %v1006_v56 }
 0x187   : > { %v1009_v43 = vadd.f32 %v1007_v59, %v991_v44 }
 0x189   : > { %v1012_v36 = vmul.f32 %v1011_v38, %v1009_v43  ;;  %v1101_v43 = vstv %s3126_s25  ;;  %s3196_s25 = sld [smem:[#allocation8 + $0x63]] }
 0x18b   : > { %v1015_v17 = vadd.f32 %v1014_v33, %v1012_v36  ;;  %v1136_v36 = vstv %s3128_s23  ;;  %s3198_s23 = sld [smem:[#allocation8 + $0x6c]] }
 0x18d   : > { %v3104_v54 = vmax.f32 %v1015_v17, 0.0 }
 0x18f   : > { %v1075_v12 = vperm.slane %v3104_v54, 0  ;;  %v1076_v39 = vperm.slane %v3104_v54, 1 }
 0x191   : > { %v1079_v40 = vsel %vm361_vm3, %v1075_v12, 0.0  ;;  %v1080_v0 = vsel %vm361_vm3, %v1076_v39, 0.0  ;;  %v1105_v39 = vstv %s3130_s21  ;;  %s3202_s21 = sld [smem:[#allocation8 + $0x64]] }
 0x192   : > { %v1081_v8 = vadd.f32 %v1080_v0, %v1079_v40 }
 0x194   : > { %1082 = vadd.xlane.f32.xlu1 %v1081_v8  ;;  %v1140_v8 = vstv %s3132_s20  ;;  %s3204_s20 = sld [smem:[#allocation8 + $0x65]] }
 0x19f   : > { %v1027_v57 = vpop.xlane.xlu2 %1026 }
 0x1a0   : > { %v1021_v25 = vpop.xlane.xlu1 %1020  ;;  %v1028_v24 = vmul.f32 0.00390625, %v1027_v57 }
 0x1a1   : > { %v1022_v15 = vmul.f32 0.00390625, %v1021_v25 }
 0x1a2   : > { %v1090_v49 = vmul.f32 %v1089_v7, %v1028_v24  ;;  %v1125_v31 = vmul.f32 %v1124_v2, %v1028_v24  ;;  %v1144_v2 = vstv %s3136_s18  ;;  %s3213_s18 = sld [smem:[#allocation8 + $0x6f]] }
 0x1a3   : > { %v1087_v23 = vmul.f32 %v1086_v48, %v1022_v15  ;;  %v1122_v60 = vmul.f32 %v1121_v11, %v1022_v15 }
 0x1a5   : > { %v1091_v22 = vadd.f32 %v1090_v49, %v1087_v23  ;;  %v1126_v5 = vadd.f32 %v1125_v31, %v1122_v60  ;;  %v1117_v31 = vstv %s3140_s5  ;;  %v1148_v60 = vstv %s3142_s0  ;;  %s3224_s0 = sld [smem:[#allocation8 + $0x76]] }
 0x1a6   : > { %s1941_s5 = sld [smem:[#allocation8 + $0x81]] }
 0x1a7   : > { %v1039_v9 = vpop.xlane.xlu2 %1038 }
 0x1a8   : > { %v1040_v53 = vmul.f32 0.00390625, %v1039_v9  ;;  %v1050_v61 = vpop.xlane.xlu1 %1049 }
 0x1a9   : > { %v1033_v10 = vpop.xlane.xlu0 %1032  ;;  %v1051_v38 = vmul.f32 0.00390625, %v1050_v61 }
 0x1aa   : > { %v1034_v18 = vmul.f32 0.00390625, %v1033_v10  ;;  %v1098_v41 = vmul.f32 %v1097_v27, %v1040_v53  ;;  %v1133_v56 = vmul.f32 %v1132_v47, %v1040_v53  ;;  %v1109_v10 = vstv %s3134_s29  ;;  %s3218_s29 = sld [smem:[#allocation8 + $0x70]] }
 0x1ab   : > { %v1102_v0 = vmul.f32 %v1101_v43, %v1051_v38  ;;  %v1137_v57 = vmul.f32 %v1136_v36, %v1051_v38  ;;  %v1159_v53 = vstv %s3150_s6  ;;  %v1172_v27 = vstv %s3156_s13  ;;  %s3256_s13 = sld [smem:[#allocation8 + $0x79]] }
 0x1ac   : > { %v1094_v21 = vmul.f32 %v1093_v50, %v1034_v18  ;;  %v1129_v6 = vmul.f32 %v1128_v19, %v1034_v18  ;;  %v1113_v18 = vstv %s3138_s4  ;;  %v1152_v19 = vstv %s3144_s1  ;;  %s3248_s1 = sld [smem:[#allocation8 + $0x77]] }
 0x1ad   : > { %v1179_v47 = vstv %s3161_s16  ;;  %v1195_v38 = vstv %s3168_s8  ;;  %v1204_v43 = vstv %s3171_s15  ;;  %v1211_v36 = vstv %s3176_s24  ;;  %s3260_s15 = sld [smem:[#allocation8 + $0x7a]]  ;;  %s3739_s8 = smov 16  }
 0x1ae   : > { %v1095_v58 = vadd.f32 %v1094_v21, %v1091_v22  ;;  %v1130_v44 = vadd.f32 %v1129_v6, %v1126_v5  ;;  %v1156_v22 = vstv %s3146_s2  ;;  %v1163_v5 = vstv %s3154_s14  ;;  %s3250_s2 = sld [smem:[#allocation8 + $0x71]] }
 0x1af   : > { %v1061_v59 = vpop.xlane.xlu2 %1060  ;;  %v1175_v6 = vstv %s3158_s30  ;;  %s3258_s14 = sld [smem:[#allocation8 + $0x73]] }
 0x1b0   : > { %v1099_v33 = vadd.f32 %v1098_v41, %v1095_v58  ;;  %v1062_v17 = vmul.f32 0.00390625, %v1061_v59  ;;  %v1134_v12 = vadd.f32 %v1133_v56, %v1130_v44  ;;  %v1188_v44 = vstv %s3164_s17  ;;  %s3271_s30 = sld [smem:[#allocation8 + $0x7b]] }
 0x1b1   : > { %v1191_v59 = vstv %s3166_s7  ;;  %s3280_s6 = sld [smem:[#allocation8 + $0x75]]  ;;  %s3738_s7 = smov 17  }
 0x1b2   : > { %v1103_v25 = vadd.f32 %v1102_v0, %v1099_v33  ;;  %v1106_v24 = vmul.f32 %v1105_v39, %v1062_v17  ;;  %v1138_v7 = vadd.f32 %v1137_v57, %v1134_v12  ;;  %v1141_v48 = vmul.f32 %v1140_v8, %v1062_v17  ;;  %s1940_s4 = sld [smem:[#allocation8 + $0x7f]] }
 0x1b3   : > { %v1207_v33 = vstv %s3174_s28  ;;  %v1220_v39 = vstv %s3178_s11  ;;  %v1227_v0 = vstv %s3182_s12  ;;  %v1236_v8 = vstv %s3185_s27  ;;  %s3254_s12 = sld [smem:[#allocation8 + $0x72]]  ;;  %s3742_s27 = smov 1  }
 0x1b4   : > { %v1107_v11 = vadd.f32 %v1106_v24, %v1103_v25  ;;  %v1142_v23 = vadd.f32 %v1141_v48, %v1138_v7  ;;  %v1239_v57 = vstv %s3188_s10  ;;  %v1243_v25 = vstv %s3191_s3  ;;  %s3252_s3 = sld [smem:[#allocation8 + $0x78]] }
 0x1b5   : > { %v1252_v7 = vstv %s3194_s19  ;;  %v1255_v48 = vstv %s3196_s25  ;;  %s3269_s19 = sld [smem:[#allocation8 + $0x74]]  ;;  %s3743_s25 = smov 127  }
 0x1b6   : > { %s3286_s10 = sld [smem:[#allocation8 + $0x7c]] }
 0x1b7   : > { %s3291_s11 = sld [smem:[#allocation8 + $0x7d]] }
 0x1b8   : > { %s3733_s16 = sld [smem:[#allocation24_spill]] }
 0x1b9   : > { %s3734_s17 = sld [smem:[#allocation23_spill]] }
 0x1bf   : > { %s3740_s28 = sshll.u32 %s3734_s17, 3 }
 0x1c0   : > { %s3322_s24 = scalar_lea.vmem [#allocation9], %s3740_s28  ;;  %s3752_s28 = sld [smem:[#allocation18_spill]] }
 0x1f6   : > { %v1072_v40 = vpop.xlane.xlu0 %1071 }
 0x1f7   : > { %v1073_v15 = vmul.f32 0.00390625, %v1072_v40  ;;  %v1223_v40 = vstv %s3180_s26  ;;  %s3741_s26 = smov 15  }
 0x1f9   : > { %v1110_v9 = vmul.f32 %v1109_v10, %v1073_v15  ;;  %v1145_v49 = vmul.f32 %v1144_v2, %v1073_v15  ;;  %v1259_v10 = vstv %s3198_s23  ;;  %v1268_v2 = vstv %s3202_s21  ;;  %s3744_s23 = smov 113   ;;  %s3745_s21 = smov 112  }
 0x1fb   : > { %v1111_v61 = vadd.f32 %v1110_v9, %v1107_v11  ;;  %v1146_v41 = vadd.f32 %v1145_v49, %v1142_v23  ;;  %v1271_v11 = vstv %s3204_s20  ;;  %s3746_s20 = smov 111  }
 0x207   : > { %v1083_v50 = vpop.xlane.xlu1 %1082 }
 0x208   : > { %v1084_v21 = vmul.f32 0.00390625, %v1083_v50 }
 0x20a   : > { %v1114_v58 = vmul.f32 %v1113_v18, %v1084_v21  ;;  %v1149_v56 = vmul.f32 %v1148_v60, %v1084_v21 }
 0x20c   : > { %v1115_v17 = vadd.f32 %v1114_v58, %v1111_v61  ;;  %v1150_v12 = vadd.f32 %v1149_v56, %v1146_v41 }
 0x20e   : > { %v1118_v24 = vadd.f32 %v1117_v31, %v1115_v17  ;;  %v1153_v15 = vadd.f32 %v1152_v19, %v1150_v12 }
 0x210   : > { %v1119_v49 = vmax.f32 %v1118_v24, 0.0  ;;  %v1154_v23 = vmax.f32 %v1153_v15, 0.0 }
 0x212   : > { %v1157_v61 = vmul.f32 %v1156_v22, %v1119_v49  ;;  %v1160_v41 = vmul.f32 %v1159_v53, %v1154_v23  ;;  %v1173_v58 = vmul.f32 %v1172_v27, %v1119_v49  ;;  %v1176_v56 = vmul.f32 %v1175_v6, %v1154_v23 }
 0x213   : > { %v1189_v14 = vmul.f32 %v1188_v44, %v1119_v49  ;;  %v1192_v13 = vmul.f32 %v1191_v59, %v1154_v23  ;;  %v1205_v31 = vmul.f32 %v1204_v43, %v1119_v49  ;;  %v1208_v19 = vmul.f32 %v1207_v33, %v1154_v23 }
 0x214   : > { %v1161_v17 = vadd.f32 %v1160_v41, %v1157_v61  ;;  %v1177_v12 = vadd.f32 %v1176_v56, %v1173_v58  ;;  %v1221_v45 = vmul.f32 %v1220_v39, %v1119_v49  ;;  %v1224_v4 = vmul.f32 %v1223_v40, %v1154_v23 }
 0x215   : > { %v1193_v55 = vadd.f32 %v1192_v13, %v1189_v14  ;;  %v1209_v9 = vadd.f32 %v1208_v19, %v1205_v31  ;;  %v1237_v24 = vmul.f32 %v1236_v8, %v1119_v49  ;;  %v1240_v15 = vmul.f32 %v1239_v57, %v1154_v23 }
 0x216   : > { %v1164_v18 = vadd.f32 %v1163_v5, %v1161_v17  ;;  %v1180_v60 = vadd.f32 %v1179_v47, %v1177_v12  ;;  %v1225_v50 = vadd.f32 %v1224_v4, %v1221_v45  ;;  %v1253_v21 = vmul.f32 %v1252_v7, %v1119_v49 }
 0x217   : > { %v1196_v22 = vadd.f32 %v1195_v38, %v1193_v55  ;;  %v1212_v53 = vadd.f32 %v1211_v36, %v1209_v9  ;;  %v1241_v27 = vadd.f32 %v1240_v15, %v1237_v24  ;;  %v1256_v6 = vmul.f32 %v1255_v48, %v1154_v23 }
 0x218   : > { %v1165_v44 = vmax.f32 %v1164_v18, 0.0  ;;  %v1181_v59 = vmax.f32 %v1180_v60, 0.0  ;;  %v1228_v43 = vadd.f32 %v1227_v0, %v1225_v50  ;;  %v1269_v33 = vmul.f32 %v1268_v2, %v1119_v49  ;;  %v3727_v49 = vld [vmem:[#allocation25_spill] sm:$0xff] }
 0x219   : > { %v1197_v14 = vmax.f32 %v1196_v22, 0.0  ;;  %v1213_v13 = vmax.f32 %v1212_v53, 0.0  ;;  %v1244_v5 = vadd.f32 %v1243_v25, %v1241_v27  ;;  %v1257_v47 = vadd.f32 %v1256_v6, %v1253_v21 }
 0x21a   : > { %v1166_v4 = vmin.f32 %v1165_v44, 1.0  ;;  %v1182_v45 = vmin.f32 %v1181_v59, 1.0  ;;  %v1229_v55 = vmax.f32 %v1228_v43, 0.0  ;;  %v1272_v38 = vmul.f32 %v1271_v11, %v1154_v23 }
 0x21b   : > { %v1198_v36 = vmin.f32 %v1197_v14, 1.0  ;;  %v1214_v39 = vmin.f32 %v1213_v13, 1.0  ;;  %v1245_v40 = vmax.f32 %v1244_v5, 0.0  ;;  %v1260_v0 = vadd.f32 %v1259_v10, %v1257_v47 }
 0x21c   : > { %v1168_v8 = vperm.slane %v1166_v4, 0  ;;  %v1184_v57 = vperm.slane %v1182_v45, 0  ;;  %v1230_v7 = vmin.f32 %v1229_v55, 1.0  ;;  %v1273_v48 = vadd.f32 %v1272_v38, %v1269_v33 }
 0x21d   : > { %v1200_v25 = vperm.slane %v1198_v36, 0  ;;  %v1216_v2 = vperm.slane %v1214_v39, 0  ;;  %v1246_v9 = vmin.f32 %v1245_v40, 1.0  ;;  %v1261_v11 = vmax.f32 %v1260_v0, 0.0 }
 0x21e   : > { %v1170_v23 = vmul.f32 %v1168_v8, %v3727_v49  ;;  %v1186_v10 = vmul.f32 %v1184_v57, %v2414_v37  ;;  %v1232_v18 = vperm.slane %v1230_v7, 0  ;;  %v3728_v60 = vstv %s3206_s9  ;;  %s3294_s9 = sld [smem:[#allocation8 + $0x7e]] }
 0x21f   : > { %v1276_v50 = vadd.f32 %v3728_v60, %v1273_v48  ;;  %v1324_v21 = vstv %s3248_s1  ;;  %v1202_v61 = vmul.f32 %v1200_v25, %v2459_v63  ;;  %v1218_v41 = vmul.f32 %v1216_v2, %v3724_v62  ;;  %s3385_s1 = sld [smem:[#allocation8 + $0x84]] }
 0x220   : > { %v1262_v58 = vmin.f32 %v1261_v11, 1.0  ;;  %v1248_v56 = vperm.slane %v1246_v9, 0  ;;  %v3729_v37 = vstv %s3208_s22  ;;  %v3730_v17 = vstv %s3213_s18  ;;  %s1931_s22 = sld [smem:[#allocation8 + $0x80]] }
 0x221   : > { %v1277_v31 = vmax.f32 %v1276_v50, 0.0  ;;  %v1285_v19 = vmul.f32 %v3729_v37, %v1170_v23  ;;  %v1288_v12 = vmul.f32 %v3730_v17, %v1186_v10  ;;  %v1295_v24 = vstv %s3250_s2  ;;  %s1943_s18 = sld [smem:[#allocation8 + $0x82]] }
 0x222   : > { %v1328_v15 = vstv %s3252_s3  ;;  %v1234_v63 = vmul.f32 %v1232_v18, %v2832_v20  ;;  %v1264_v62 = vperm.slane %v1262_v58, 0  ;;  %v3731_v27 = vstv %s3218_s29  ;;  %s3372_s29 = sld [smem:[#allocation8 + $0x83]] }
 0x223   : > { %v1278_v22 = vmin.f32 %v1277_v31, 1.0  ;;  %v1289_v53 = vadd.f32 %v1288_v12, %v1285_v19  ;;  %v1292_v6 = vmul.f32 %v3731_v27, %v1202_v61  ;;  %v3732_v44 = vstv %s3224_s0  ;;  %s3380_s0 = sld [smem:[#allocation8 + $0x86]] }
 0x224   : > { %v1322_v59 = vmul.f32 %v3732_v44, %v1170_v23  ;;  %v1299_v43 = vstv %s3254_s12  ;;  %v1332_v33 = vstv %s3256_s13  ;;  %v1325_v14 = vmul.f32 %v1324_v21, %v1186_v10  ;;  %s3387_s2 = sld [smem:[#allocation8 + $0x85]] }
 0x225   : > { %v1250_v13 = vmul.f32 %v1248_v56, %v2853_v3  ;;  %v1280_v20 = vperm.slane %v1278_v22, 0  ;;  %v1293_v5 = vadd.f32 %v1292_v6, %v1289_v53  ;;  %v1296_v47 = vmul.f32 %v1295_v24, %v1218_v41  ;;  %v2051_v6 = vld [vmem:[%s3733_s16] ss:$4 sm:$0x3]  ;;  %s3392_s3 = sld [smem:[#allocation8 + $0x8b]] }
 0x226   : > { %v1303_v4 = vstv %s3258_s14  ;;  %v1326_v45 = vadd.f32 %v1325_v14, %v1322_v59  ;;  %v1329_v55 = vmul.f32 %v1328_v15, %v1202_v61  ;;  %v1336_v38 = vstv %s3260_s15  ;;  %s3414_s12 = sld [smem:[#allocation8 + $0x8f]] }
 0x227   : > { %v1266_v36 = vmul.f32 %v1264_v62, %v3087_v34  ;;  %v1297_v39 = vadd.f32 %v1296_v47, %v1293_v5  ;;  %v1300_v40 = vmul.f32 %v1299_v43, %v1234_v63  ;;  %v1333_v3 = vmul.f32 %v1332_v33, %v1218_v41  ;;  %v2052_v43 = vld [vmem:[%s3733_s16 + $0x1] ss:$4 sm:$0x3]  ;;  %s3420_s13 = sld [smem:[#allocation8 + $0x8c]] }
 0x228   : > { %v1330_v0 = vadd.f32 %v1329_v55, %v1326_v45  ;;  %v1307_v8 = vstv %s3269_s19  ;;  %v1340_v57 = vstv %s3271_s30  ;;  %v1282_v7 = vmul.f32 %v1280_v20, %v3104_v54  ;;  %s3433_s14 = sld [smem:[#allocation8 + $0x8d]] }
 0x229   : > { %v1304_v48 = vmul.f32 %v1303_v4, %v1250_v13  ;;  %v1301_v25 = vadd.f32 %v1300_v40, %v1297_v39  ;;  %v1337_v9 = vmul.f32 %v1336_v38, %v1234_v63  ;;  %v1311_v11 = vstv %s3280_s6  ;;  %s3438_s15 = sld [smem:[#allocation8 + $0x8e]] }
 0x22a   : > { %v1334_v2 = vadd.f32 %v1333_v3, %v1330_v0  ;;  %v1308_v34 = vmul.f32 %v1307_v8, %v1266_v36  ;;  %v1344_v23 = vstv %s3286_s10  ;;  %v1341_v10 = vmul.f32 %v1340_v57, %v1250_v13  ;;  %s3442_s19 = sld [smem:[#allocation8 + $0x87]] }
 0x22b   : > { %v1305_v49 = vadd.f32 %v1304_v48, %v1301_v25  ;;  %v1312_v50 = vmul.f32 %v1311_v11, %v1282_v7  ;;  %v1348_v21 = vstv %s3291_s11  ;;  %v1315_v61 = vstv %s3294_s9  ;;  %s3450_s30 = sld [smem:[#allocation8 + $0x90]] }
 0x22c   : > { %v1338_v18 = vadd.f32 %v1337_v9, %v1334_v2  ;;  %v1345_v54 = vmul.f32 %v1344_v23, %v1266_v36  ;;  %v1318_v56 = vstv %s1931_s22  ;;  %v1349_v37 = vmul.f32 %v1348_v21, %v1282_v7  ;;  %s3452_s6 = sld [smem:[#allocation8 + $0x88]] }
 0x22d   : > { %v1309_v60 = vadd.f32 %v1308_v34, %v1305_v49  ;;  %v1352_v17 = vstv %s1940_s4  ;;  %v1355_v15 = vstv %s1941_s5  ;;  %v3735_v62 = vlaneseq  ;;  %s3461_s10 = sld [smem:[#allocation8 + $0x91]] }
 0x22e   : > { %v1342_v41 = vadd.f32 %v1341_v10, %v1338_v18  ;;  %v1374_v11 = vstv %s1943_s18  ;;  %v1392_v18 = vstv %s3372_s29  ;;  %s3473_s11 = sld [smem:[#allocation8 + $0x89]]  ;;  %s1702_s29 = sshll.u32 %s3322_s24, 4  ;;  %s1703_s29 = int_to_ptr.vmem [resolvable:$true] %s1702_s29 }
 0x22f   : > { %v1313_v58 = vadd.f32 %v1312_v50, %v1309_v60  ;;  %vm3308_vm9 = vcmp.lt.s32.totalorder %v3735_v62, 256  ;;  %v1358_v62 = vstv %s3380_s0  ;;  %s3510_s9 = sld [smem:[#allocation8 + $0x92]] }
 0x230   : > { %v1346_v31 = vadd.f32 %v1345_v54, %v1342_v41  ;;  %s3516_s22 = sld [smem:[#allocation8 + $0x8a]] }
 0x231   : > { %v1316_v19 = vmul.f32 %v1315_v61, %v1313_v58  ;;  %s3552_s4 = sld [smem:[#allocation8 + $0x94]] }
 0x232   : > { %v1350_v12 = vadd.f32 %v1349_v37, %v1346_v31  ;;  %s3558_s5 = sld [smem:[#allocation8 + $0x93]] }
 0x233   : > { %v3305_v24 = vadd.f32 %v1318_v56, %v1316_v19 }
 0x234   : > { %v1353_v63 = vmul.f32 %v1352_v17, %v1350_v12  ;;  %v1410_v12 = vstv %s3385_s1  ;;  %s1689_s1 = scalar_lea.sflag [#allocation4], %s3734_s17 }
 0x235   : > { %v1362_v53 = vperm.slane %v3305_v24, 1  ;;  %v1361_v27 = vperm.slane %v3305_v24, 0  ;;  %v1673_v44 = vadd.f32 %v2051_v6, %v3305_v24  ;;  %v1532_v6 = vstv %s3392_s3 }
 0x236   : > { %v3316_v59 = vadd.f32 %v1355_v15, %v1353_v63 }
 0x237   : > { %1367 = vrot.lane.b32.xlu0 %v1362_v53, %s3738_s7  ;;  %1383 = vrot.lane.b32.xlu1 %v1361_v27, %s3739_s8  ;;  %1678 = vst.msk [vmem:[%s3322_s24] ss:$4 sm:$0x3] %vm3308_vm9, %v1673_v44 }
 0x238   : > { %1365 = vrot.lane.b32.xlu2 %v1361_v27, %s3738_s7  ;;  %v1679_v33 = vadd.f32 %v2052_v43, %v3316_v59  ;;  %v1519_v14 = vperm.slane %v3316_v59, 0  ;;  %v1520_v13 = vperm.slane %v3316_v59, 1 }
 0x23a   : > { %1964 = vst.msk [vmem:[%s3322_s24 + $0x1] ss:$4 sm:$0x3] %vm3308_vm9, %v1679_v33 }
 0x23f   : > { %1385 = vrot.lane.b32.xlu0 %v1362_v53, %s3739_s8  ;;  %1403 = vrot.lane.b32.xlu1 %v1362_v53, %s3741_s26 }
 0x240   : > { %1401 = vrot.lane.b32.xlu2 %v1361_v27, %s3741_s26 }
 0x247   : > { %1419 = vrot.lane.b32.xlu0 %v1361_v27, %s3742_s27  ;;  %1437 = vrot.lane.b32.xlu1 %v1361_v27, %s3743_s25 }
 0x248   : > { %1421 = vrot.lane.b32.xlu2 %v1362_v53, %s3742_s27 }
 0x24f   : > { %1523 = vrot.lane.b32.xlu0 %v1519_v14, %s3738_s7  ;;  %1541 = vrot.lane.b32.xlu1 %v1519_v14, %s3739_s8 }
 0x250   : > { %1525 = vrot.lane.b32.xlu2 %v1520_v13, %s3738_s7  ;;  %s3573_s7 = sld [smem:[#allocation8 + $0x96]] }
 0x257   : > { %1543 = vrot.lane.b32.xlu0 %v1520_v13, %s3739_s8  ;;  %1561 = vrot.lane.b32.xlu1 %v1520_v13, %s3741_s26  ;;  %s3587_s8 = sld [smem:[#allocation8 + $0x95]] }
 0x258   : > { %1559 = vrot.lane.b32.xlu2 %v1519_v14, %s3741_s26  ;;  %s1963_s26 = sld [smem:[#allocation8 + $0x97]] }
 0x25f   : > { %1577 = vrot.lane.b32.xlu0 %v1519_v14, %s3742_s27  ;;  %1439 = vrot.lane.b32.xlu1 %v1362_v53, %s3743_s25 }
 0x260   : > { %1579 = vrot.lane.b32.xlu2 %v1520_v13, %s3742_s27  ;;  %s1973_s27 = sshll.u32 %s3752_s28, 3 }
 0x267   : > { %1595 = vrot.lane.b32.xlu0 %v1519_v14, %s3743_s25  ;;  %1455 = vrot.lane.b32.xlu1 %v1361_v27, %s3744_s23 }
 0x268   : > { %1597 = vrot.lane.b32.xlu2 %v1520_v13, %s3743_s25 }
 0x26f   : > { %1457 = vrot.lane.b32.xlu0 %v1362_v53, %s3744_s23  ;;  %1615 = vrot.lane.b32.xlu1 %v1520_v13, %s3744_s23 }
 0x270   : > { %1613 = vrot.lane.b32.xlu2 %v1519_v14, %s3744_s23 }
 0x277   : > { %1473 = vrot.lane.b32.xlu0 %v1361_v27, %s3745_s21  ;;  %1631 = vrot.lane.b32.xlu1 %v1519_v14, %s3745_s21 }
 0x278   : > { %1475 = vrot.lane.b32.xlu2 %v1362_v53, %s3745_s21 }
 0x27f   : > { %1633 = vrot.lane.b32.xlu0 %v1520_v13, %s3745_s21  ;;  %1493 = vrot.lane.b32.xlu1 %v1362_v53, %s3746_s20  ;;  %s3753_s21 = sld [smem:[#allocation35_spill]] }
 0x280   : > { %1491 = vrot.lane.b32.xlu2 %v1361_v27, %s3746_s20  ;;  %v1428_v27 = vstv %s3387_s2 }
 0x287   : > { %1649 = vrot.lane.b32.xlu0 %v1519_v14, %s3746_s20 }
 0x288   : > { %1651 = vrot.lane.b32.xlu2 %v1520_v13, %s3746_s20  ;;  %s1700_s20 = scalar_lea.hbm %s3753_s21, %s1973_s27 }
 0x289   : > { %s1704_s0 = sshll.u32 %s1700_s20, 4  ;;  %s1705_s0 = int_to_ptr.hbm [resolvable:$true] %s1704_s0 }
 0x28a   : > { %s2144_s2 = sshra.s32 %s1705_s0, 4  ;;  %s2145_s2 = int_to_ptr.hbm [resolvable:$true] %s2144_s2 }
 0x28b   : > { %s2146_s3 = scalar_lea.hbm %s2145_s2, 8  ;;  %p2151_p12 = scmp.lt.s32.totalorder %s2145_s2, %s3753_s21 }
 0x28c   : > { %p2147_p1 = scmp.ne.s32.totalorder %s2145_s2, %s2146_s3 }
 0x28e   : > { %p2148_p3 = pnand %p2147_p1, %p2307_p4 }
 0x290   : > { %p2149_p5 = pneg %p2148_p3 }
 0x292   : > { %v1366_v20 = vpop.permute.xlu2 %1365 }
 0x29a   : > { %v1402_v5 = vpop.permute.xlu2 %1401 }
 0x2a2   : > { %v1422_v47 = vpop.permute.xlu2 %1421 }
 0x2a9   : > { %v1368_v4 = vpop.permute.xlu0 %1367  ;;  %v1384_v45 = vpop.permute.xlu1 %1383 }
 0x2aa   : > { %v1526_v36 = vpop.permute.xlu2 %1525  ;;  %v1369_v25 = vsel %vm344_vm2, %v1366_v20, %v1368_v4  ;;  %v1370_v49 = vsel %vm344_vm2, %v1368_v4, %v1366_v20 }
 0x2ab   : > { %v1372_v2 = vmul.f32 %v1369_v25, %v2540_v30  ;;  %v1371_v21 = vmul.f32 %v1370_v49, %v2538_v29  ;;  %v1516_v49 = vstv %s3414_s12 }
 0x2ad   : > { %v1376_v10 = vmul.f32 %v1374_v11, %v1372_v2  ;;  %v1375_v17 = vmul.f32 %v1374_v11, %v1371_v21 }
 0x2af   : > { %v1379_v31 = vrot.slane %v1376_v10, 7 }
 0x2b1   : > { %v1386_v55 = vpop.permute.xlu0 %1385  ;;  %v1404_v38 = vpop.permute.xlu1 %1403  ;;  %v1380_v44 = vsel %vm361_vm3, %v1375_v17, %v1379_v31  ;;  %v1568_v17 = vstv %s3433_s14  ;;  %s2150_s14 = scalar_lea.hbm %s3753_s21, 16 }
 0x2b2   : > { %v3366_v0 = vpop.permute.xlu2 %1559  ;;  %v1387_v9 = vsel %vm369_vm1, %v1384_v45, %v1386_v55  ;;  %v1388_v61 = vsel %vm369_vm1, %v1386_v55, %v1384_v45  ;;  %v1405_v41 = vsel %vm393_vm0, %v1402_v5, %v1404_v38  ;;  %v1406_v43 = vsel %vm393_vm0, %v1404_v38, %v1402_v5  ;;  %p2152_p7 = scmp.lt.s32.totalorder %s2150_s14, %s2146_s3 }
 0x2b3   : > { %v1390_v34 = vmul.f32 %v1387_v9, %v2533_v28  ;;  %v1389_v37 = vmul.f32 %v1388_v61, %v2546_v35  ;;  %v1408_v19 = vmul.f32 %v1405_v41, %v2524_v26  ;;  %v1359_v45 = vmul.f32 %v1358_v62, %v3305_v24 }
 0x2b4   : > { %v1407_v2 = vmul.f32 %v1406_v43, %v2543_v32  ;;  %v1446_v43 = vstv %s3442_s19  ;;  %p2153_p8 = por %p2152_p7, %p2151_p12 }
 0x2b5   : > { %v1394_v54 = vmul.f32 %v1392_v18, %v1390_v34  ;;  %v1393_v13 = vmul.f32 %v1392_v18, %v1389_v37  ;;  %v1412_v20 = vmul.f32 %v1410_v12, %v1408_v19  ;;  %v1550_v18 = vstv %s3420_s13 }
 0x2b6   : > { %v1411_v10 = vmul.f32 %v1410_v12, %v1407_v2  ;;  %v1517_v37 = vmul.f32 %v1516_v49, %v3316_v59  ;;  %p2154_p9 = pnand %p2153_p8, %p2149_p5 }
 0x2b7   : > { %v1397_v53 = vrot.slane %v1394_v54, 7 }
 0x2b9   : > { %v1420_v39 = vpop.permute.xlu0 %1419  ;;  %v3364_v40 = vpop.permute.xlu1 %1437  ;;  %v1398_v38 = vsel %vm361_vm3, %v1393_v13, %v1397_v53 }
 0x2ba   : > { %v3370_v57 = vpop.permute.xlu2 %1579  ;;  %v1423_v58 = vsel %vm417_vm4, %v1420_v39, %v1422_v47 }
 0x2bb   : > { %v1426_v15 = vmul.f32 %v1423_v58, %v2617_v42 }
 0x2bd   : > { %v1430_v55 = vmul.f32 %v1428_v27, %v1426_v15 }
 0x2bf   : > { %v1433_v11 = vrot.slane %v1430_v55, 7 }
 0x2c1   : > { %v1524_v3 = vpop.permute.xlu0 %1523  ;;  %v3368_v8 = vpop.permute.xlu1 %1541 }
 0x2c2   : > { %v3394_v23 = vpop.permute.xlu2 %1597  ;;  %v1527_v56 = vsel %vm344_vm2, %v1524_v3, %v1526_v36  ;;  %v1528_v4 = vsel %vm344_vm2, %v1526_v36, %v1524_v3  ;;  %v1415_v3 = vrot.slane %v1412_v20, 7  ;;  %v1604_v20 = vstv %s3450_s30 }
 0x2c3   : > { %v1530_v63 = vmul.f32 %v1527_v56, %v2540_v30  ;;  %v1424_v30 = vsel %vm417_vm4, %v1422_v47, %v1420_v39  ;;  %v1382_v47 = vadd.f32 %v1380_v44, %v1359_v45  ;;  %v1529_v39 = vmul.f32 %v1528_v4, %v2538_v29 }
 0x2c4   : > { %v1425_v36 = vmul.f32 %v1424_v30, %v2645_v52  ;;  %v1416_v31 = vsel %vm361_vm3, %v1411_v10, %v1415_v3  ;;  %v1586_v44 = vstv %s3438_s15  ;;  %v1464_v30 = vstv %s3452_s6 }
 0x2c5   : > { %v1534_v25 = vmul.f32 %v1532_v6, %v1530_v63  ;;  %v1400_v9 = vadd.f32 %v1398_v38, %v1382_v47  ;;  %v1533_v41 = vmul.f32 %v1532_v6, %v1529_v39  ;;  %v1482_v47 = vstv %s3473_s11 }
 0x2c6   : > { %v1429_v61 = vmul.f32 %v1428_v27, %v1425_v36 }
 0x2c7   : > { %v1537_v34 = vrot.slane %v1534_v25, 7  ;;  %v1418_v12 = vadd.f32 %v1416_v31, %v1400_v9 }
 0x2c8   : > { %v1434_v15 = vsel %vm361_vm3, %v1429_v61, %v1433_v11  ;;  %v3747_v11 = vld [vmem:[#allocation27_spill] sm:$0xff]  ;;  %v3748_v61 = vld [vmem:[#allocation28_spill] sm:$0xff] }
 0x2c9   : > { %v3374_v7 = vpop.permute.xlu0 %1543  ;;  %v3376_v48 = vpop.permute.xlu1 %1561  ;;  %v1538_v63 = vsel %vm361_vm3, %v1533_v41, %v1537_v34 }
 0x2ca   : > { %v3436_v5 = vpop.permute.xlu2 %1613  ;;  %v1545_v24 = vsel %vm369_vm1, %v3368_v8, %v3374_v7  ;;  %v1563_v29 = vsel %vm393_vm0, %v3366_v0, %v3376_v48  ;;  %v1546_v19 = vsel %vm369_vm1, %v3374_v7, %v3368_v8  ;;  %v1564_v7 = vsel %vm393_vm0, %v3376_v48, %v3366_v0 }
 0x2cb   : > { %v1548_v21 = vmul.f32 %v1545_v24, %v2533_v28  ;;  %v1566_v62 = vmul.f32 %v1563_v29, %v2524_v26  ;;  %v1547_v8 = vmul.f32 %v1546_v19, %v2546_v35  ;;  %v3497_v26 = vadd.f32 %v1434_v15, %v1418_v12 }
 0x2cc   : > { %v1540_v35 = vadd.f32 %v1538_v63, %v1517_v37  ;;  %v1565_v55 = vmul.f32 %v1564_v7, %v2543_v32  ;;  %v1640_v15 = vstv %s3510_s9 }
 0x2cd   : > { %v1552_v53 = vmul.f32 %v1550_v18, %v1548_v21  ;;  %v1570_v4 = vmul.f32 %v1568_v17, %v1566_v62  ;;  %v1551_v2 = vmul.f32 %v1550_v18, %v1547_v8  ;;  %v1500_v8 = vstv %s3516_s22 }
 0x2ce   : > { %v1569_v10 = vmul.f32 %v1568_v17, %v1565_v55 }
 0x2cf   : > { %v1555_v45 = vrot.slane %v1552_v53, 7  ;;  %v1573_v24 = vrot.slane %v1570_v4, 7 }
 0x2d1   : > { %v3397_v60 = vpop.permute.xlu0 %1577  ;;  %v3399_v50 = vpop.permute.xlu1 %1439  ;;  %v1556_v34 = vsel %vm361_vm3, %v1551_v2, %v1555_v45  ;;  %v1574_v17 = vsel %vm361_vm3, %v1569_v10, %v1573_v24  ;;  %v3751_v45 = vld [vmem:[#allocation30_spill] sm:$0xff] }
 0x2d2   : > { %v1581_v54 = vsel %vm417_vm4, %v3397_v60, %v3370_v57  ;;  %v1442_v58 = vsel %vm441_vm5, %v3399_v50, %v3364_v40  ;;  %v1476_v13 = vpop.permute.xlu2 %1475  ;;  %v1441_v0 = vsel %vm441_vm5, %v3364_v40, %v3399_v50  ;;  %v1558_v19 = vadd.f32 %v1556_v34, %v1540_v35 }
 0x2d3   : > { %v1584_v27 = vmul.f32 %v1581_v54, %v2617_v42  ;;  %v1444_v59 = vmul.f32 %v1442_v58, %v2626_v46  ;;  %v1582_v42 = vsel %vm417_vm4, %v3370_v57, %v3397_v60  ;;  %v1622_v60 = vstv %s3461_s10 }
 0x2d4   : > { %v1583_v57 = vmul.f32 %v1582_v42, %v2645_v52  ;;  %v1443_v40 = vmul.f32 %v1441_v0, %v2667_v1  ;;  %v3750_v0 = vld [vmem:[#allocation31_spill] sm:$0xff] }
 0x2d5   : > { %v1588_v25 = vmul.f32 %v1586_v44, %v1584_v27  ;;  %v1448_v38 = vmul.f32 %v1446_v43, %v1444_v59 }
 0x2d6   : > { %v1587_v29 = vmul.f32 %v1586_v44, %v1583_v57  ;;  %v1447_v58 = vmul.f32 %v1446_v43, %v1443_v40 }
 0x2d7   : > { %v1591_v18 = vrot.slane %v1588_v25, 7  ;;  %v1451_v21 = vrot.slane %v1448_v38, 7  ;;  %v1576_v25 = vadd.f32 %v1574_v17, %v1558_v19 }
 0x2d9   : > { %v3425_v33 = vpop.permute.xlu0 %1595  ;;  %v3427_v14 = vpop.permute.xlu1 %1455  ;;  %v1592_v63 = vsel %vm361_vm3, %v1587_v29, %v1591_v18  ;;  %v1452_v62 = vsel %vm361_vm3, %v1447_v58, %v1451_v21  ;;  %v1658_v18 = vstv %s3558_s5 }
 0x2da   : > { %v1600_v50 = vsel %vm441_vm5, %v3394_v23, %v3425_v33  ;;  %v1454_v38 = vadd.f32 %v1452_v62, %v3497_v26  ;;  %v1668_v62 = vstv %s3587_s8 }
 0x2e1   : > { %v1458_v28 = vpop.permute.xlu0 %1457  ;;  %v3471_v56 = vpop.permute.xlu1 %1615 }
 0x2e2   : > { %v1460_v6 = vsel %vm465_vm6, %v1458_v28, %v3427_v14  ;;  %v1459_v32 = vsel %vm465_vm6, %v3427_v14, %v1458_v28  ;;  %v1618_v9 = vsel %vm465_vm6, %v3471_v56, %v3436_v5  ;;  %v1602_v14 = vmul.f32 %v1600_v50, %v2626_v46  ;;  %v1492_v46 = vpop.permute.xlu2 %1491 }
 0x2e3   : > { %v1462_v48 = vmul.f32 %v1460_v6, %v2637_v51  ;;  %v1461_v41 = vmul.f32 %v1459_v32, %v3748_v61  ;;  %v1599_v28 = vsel %vm441_vm5, %v3425_v33, %v3394_v23  ;;  %v1620_v31 = vmul.f32 %v1618_v9, %v2637_v51  ;;  %v3749_v33 = vld [vmem:[#allocation29_spill] sm:$0xff] }
 0x2e4   : > { %v1617_v23 = vsel %vm465_vm6, %v3436_v5, %v3471_v56  ;;  %v1601_v53 = vmul.f32 %v1599_v28, %v2667_v1  ;;  %v1606_v27 = vmul.f32 %v1604_v20, %v1602_v14  ;;  %v1594_v50 = vadd.f32 %v1592_v63, %v1576_v25 }
 0x2e5   : > { %v1466_v3 = vmul.f32 %v1464_v30, %v1462_v48  ;;  %v1465_v59 = vmul.f32 %v1464_v30, %v1461_v41  ;;  %v1624_v44 = vmul.f32 %v1622_v60, %v1620_v31  ;;  %v1619_v1 = vmul.f32 %v1617_v23, %v3748_v61 }
 0x2e6   : > { %v1609_v2 = vrot.slane %v1606_v27, 7  ;;  %v1513_v31 = vstv %s3573_s7  ;;  %v1671_v27 = vstv %s1963_s26 }
 0x2e7   : > { %v1469_v12 = vrot.slane %v1466_v3, 7  ;;  %v1623_v24 = vmul.f32 %v1622_v60, %v1619_v1  ;;  %v1510_v3 = vstv %s3552_s4 }
 0x2e9   : > { %v1474_v36 = vpop.permute.xlu0 %1473  ;;  %v1632_v39 = vpop.permute.xlu1 %1631 }
 0x2ea   : > { %v1478_v52 = vsel %vm489_vm7, %v1476_v13, %v1474_v36  ;;  %v1477_v54 = vsel %vm489_vm7, %v1474_v36, %v1476_v13  ;;  %v1470_v13 = vsel %vm361_vm3, %v1465_v59, %v1469_v12  ;;  %v1627_v36 = vrot.slane %v1624_v44, 7 }
 0x2eb   : > { %v1480_v49 = vmul.f32 %v1478_v52, %v3747_v11  ;;  %v1479_v51 = vmul.f32 %v1477_v54, %v3749_v33  ;;  %v1472_v32 = vadd.f32 %v1470_v13, %v1454_v38 }
 0x2ed   : > { %v1484_v37 = vmul.f32 %v1482_v47, %v1480_v49  ;;  %v1483_v35 = vmul.f32 %v1482_v47, %v1479_v51  ;;  %v1652_v49 = vpop.permute.xlu2 %1651 }
 0x2ef   : > { %v1487_v43 = vrot.slane %v1484_v37, 7 }
 0x2f1   : > { %v1634_v6 = vpop.permute.xlu0 %1633  ;;  %v1494_v7 = vpop.permute.xlu1 %1493  ;;  %v1488_v47 = vsel %vm361_vm3, %v1483_v35, %v1487_v43 }
 0x2f2   : > { %v1636_v5 = vsel %vm489_vm7, %v1634_v6, %v1632_v39  ;;  %v1495_v56 = vsel %vm513_vm8, %v1492_v46, %v1494_v7  ;;  %v1496_v30 = vsel %vm513_vm8, %v1494_v7, %v1492_v46  ;;  %v1635_v4 = vsel %vm489_vm7, %v1632_v39, %v1634_v6 }
 0x2f3   : > { %v1638_v42 = vmul.f32 %v1636_v5, %v3747_v11  ;;  %v1497_v48 = vmul.f32 %v1495_v56, %v3750_v0  ;;  %v1498_v55 = vmul.f32 %v1496_v30, %v3751_v45  ;;  %v1605_v39 = vmul.f32 %v1604_v20, %v1601_v53 }
 0x2f4   : > { %v1637_v52 = vmul.f32 %v1635_v4, %v3749_v33  ;;  %v1490_v34 = vadd.f32 %v1488_v47, %v1472_v32  ;;  %v1628_v20 = vsel %vm361_vm3, %v1623_v24, %v1627_v36  ;;  %v2053_v33 = vld [vmem:[%s3733_s16 + $0x2] ss:$4 sm:$0x3] }
 0x2f5   : > { %v1642_v57 = vmul.f32 %v1640_v15, %v1638_v42  ;;  %v1502_v40 = vmul.f32 %v1500_v8, %v1498_v55  ;;  %v1501_v9 = vmul.f32 %v1500_v8, %v1497_v48  ;;  %v1610_v26 = vsel %vm361_vm3, %v1605_v39, %v1609_v2  ;;  %v2054_v8 = vld [vmem:[%s3733_s16 + $0x3] ss:$4 sm:$0x3] }
 0x2f6   : > { %v1641_v61 = vmul.f32 %v1640_v15, %v1637_v52  ;;  %v1612_v28 = vadd.f32 %v1610_v26, %v1594_v50 }
 0x2f7   : > { %v1505_v11 = vrot.slane %v1502_v40, 7  ;;  %v1645_v10 = vrot.slane %v1642_v57, 7 }
 0x2f8   : > { %v1630_v16 = vadd.f32 %v1628_v20, %v1612_v28 }
 0x2f9   : > { %v1650_v21 = vpop.permute.xlu0 %1649  ;;  %v1506_v29 = vsel %vm361_vm3, %v1501_v9, %v1505_v11  ;;  %v1646_v37 = vsel %vm361_vm3, %v1641_v61, %v1645_v10 }
 0x2fa   : > { %v1653_v60 = vsel %vm513_vm8, %v1650_v21, %v1652_v49  ;;  %v1654_v14 = vsel %vm513_vm8, %v1652_v49, %v1650_v21  ;;  %v1508_v41 = vadd.f32 %v1506_v29, %v1490_v34  ;;  %v1648_v63 = vadd.f32 %v1646_v37, %v1630_v16 }
 0x2fb   : > { %v1655_v54 = vmul.f32 %v1653_v60, %v3750_v0  ;;  %v1656_v58 = vmul.f32 %v1654_v14, %v3751_v45 }
 0x2fc   : > { %v1511_v19 = vmul.f32 %v1510_v3, %v1508_v41 }
 0x2fd   : > { %v1660_v17 = vmul.f32 %v1658_v18, %v1656_v58  ;;  %v1659_v12 = vmul.f32 %v1658_v18, %v1655_v54 }
 0x2fe   : > { %v1514_v46 = vadd.f32 %v1513_v31, %v1511_v19 }
 0x2ff   : > { %v1663_v15 = vrot.slane %v1660_v17, 7 }
 0x300   : > { %v1682_v51 = vadd.f32 %v2053_v33, %v1514_v46 }
 0x301   : > { %v1664_v23 = vsel %vm361_vm3, %v1659_v12, %v1663_v15 }
 0x302   : > { %v1666_v53 = vadd.f32 %v1664_v23, %v1648_v63  ;;  %1965 = vst.msk [vmem:[%s3322_s24 + $0x2] ss:$4 sm:$0x3] %vm3308_vm9, %v1682_v51 }
 0x304   : > { %v1669_v59 = vmul.f32 %v1668_v62, %v1666_v53 }
 0x306   : > { %v1672_v6 = vadd.f32 %v1671_v27, %v1669_v59 }
 0x308   : > { %v1685_v7 = vadd.f32 %v2054_v8, %v1672_v6 }
 0x30a   : > { %1966 = vst.msk [vmem:[%s3322_s24 + $0x3] ss:$4 sm:$0x3] %vm3308_vm9, %v1685_v7 }
 0x30b   : > { %2157 = shalt.err (!%p2154_p9)
}
 0x30c   : > { %1984 = dma.vmem_to_hbm [thread:$0]  (%p2307_p4), %s1703_s29, 128, %s1705_s0, %s1689_s1  }
 0x30d PF: > { %s3755_s17 = sld [smem:[#allocation14_spill]] }
 0x30e   : > { %s3757_s19 = sld [smem:[#allocation17_spill]] }
 0x313   : > { %s1716_s30 = sand.u32 1, %s3755_s17  }
 0x314   : > { %p3758_p10 = scmp.ge.s32.totalorder %s3757_s19, 2  ;;  %s1717_s6 = scalar_lea.sflag [#allocation4], %s1716_s30 }
 0x316   : > { %p1998_p13 = pnand %p3758_p10, %p2311_p6 }
 0x318   : > { %p1999_p11 = pneg %p1998_p13 }
 0x31a   : > { %2187 = dma.done.wait (%p1999_p11), %s1717_s6, 128  }
 0x31b   : > { %2189 = vsyncadd (%p1999_p11), %s1717_s6, 4294967168  ;;  %s3759_s15 = sld [smem:[#allocation19_spill]] }
 0x31c   : > { %s3760_s12 = sld [smem:[#allocation15_spill]] }
 0x31d   : > { %s3761_s13 = sld [smem:[#allocation16_spill]] }
 0x31e   : > { %s3762_s14 = sld [smem:[#allocation20_spill]] }
 0x321   : > { %p18_p0 = scmp.ge.s32.totalorder %s3759_s15, 4  }
 0x323   :  { %20 = sbr.rel (!%p18_p0) target bundleno = 12 (0xc), region = 99 }
 0x328   :  { %1723 = vsyncpa [#allocation3], 1 }
 0x329   :  { %1725 = vsyncpa [#allocation3 + $0x1], 1 }
 0x32a   :  { %1726 = vsyncpa [#allocation7], 1 }
 0x32b   :  { %1727 = vsyncpa [#allocation4], 1 }
 0x32c   :  { %1729 = vsyncpa [#allocation4 + $0x1], 1 }
 0x32d   :  { %1730 = vsyncpa [#allocation5], 1 }
 0x32e   :  { %1732 = vsyncpa [#allocation5 + $0x1], 1 }

</bundles_post_ra>
